<compile_context>
chip_gen: v7x
topology: tpu7x:2x2x1
jax: 0.10.0
libtpu: 0.0.40
codegen_flags: <defaults>
</compile_context>

<pallas_src>
import jax
import jax.numpy as jnp
from jax.experimental import pallas as pl
from jax.experimental.pallas import tpu as pltpu

# ----------------------------- small synthetic config ------------------------------
BATCH = 2
SEQ = 8
HIDDEN = 32
NUM_HEADS = 4
NUM_KV_HEADS = 2
HEAD_DIM = 8
FEATURE_DIM = 8           # hedgehog per-branch feature dim -> 2*FEATURE_DIM features
INTERMEDIATE = 64
LAYER_IDX = [1, 3]        # odd original-model layer indices replaced by GemmaLinearAttention
RMS_EPS = 1e-6
MASK_MIN = -2.3819763e38  # Gemma causal-mask fill value
ROPE_THETA = 10000.0

# per-layer kernel parameter orderings (must match prepare_kernel_params / wrapper flattening)
_LINEAR_PARAMS = ('wqkv', 'wo', 'fq_top', 'fq_bot', 'fk_top', 'fk_bot',
                  'ln_in', 'ln_pa', 'ln_pf', 'ln_pff', 'w_gu', 'w_down')
_SOFTMAX_PARAMS = ('wqkv', 'wo', 'ln_in', 'ln_pa', 'ln_pf', 'ln_pff', 'w_gu', 'w_down')


# ------------------------------- in-kernel helpers ---------------------------------
def _rmsnorm(x, w):
    # Gemma RMSNorm: x * rsqrt(mean(x^2)+eps) * (1 + w), all in f32.
    var = jnp.mean(x * x, axis=-1, keepdims=True)
    return x * jax.lax.rsqrt(var + RMS_EPS) * (1.0 + w)


def _phi(z):
    # Exact softmax over the minor (feature) axis: feeds the exported attn_scores_pred,
    # so no approximate reciprocal here.
    m = jnp.max(z, axis=-1, keepdims=True)
    e = jnp.exp(z - m)
    return e / jnp.sum(e, axis=-1, keepdims=True)


def _softmax_approx(z):
    # Hidden-state-only path: the reciprocal can go to the EUP (approx vrcp).
    m = jnp.max(z, axis=-1, keepdims=True)
    e = jnp.exp(z - m)
    return e * pl.reciprocal(jnp.sum(e, axis=-1, keepdims=True), approx=True)


def _causal_mask(s):
    row = jax.lax.broadcasted_iota(jnp.int32, (s, s), 0)
    col = jax.lax.broadcasted_iota(jnp.int32, (s, s), 1)
    return col <= row


def _repeat_kv(x, group):
    # (Hk, S, d) -> (Hk*group, S, d) with repeat_interleave order [kv0,kv0,kv1,kv1,...].
    # Only the leading (untiled) axis is touched: no lane/sublane shuffles.
    if group == 1:
        return x
    hk = x.shape[0]
    return jnp.concatenate([x[i:i + 1] for i in range(hk) for _ in range(group)], axis=0)


# --------------------------- fused whole-stack kernel builder -----------------------
def _build_stack_kernel(layer_kinds):
    """Builds one kernel that runs the whole decoder stack for a single batch element.

    layer_kinds: tuple[bool], True => hedgehog linear-attention layer, False => softmax layer.
    Ref order: (x, cos, sin, *per-layer params, *hidden outs, *score outs, oh_scratch).
    """
    H, Hk, Dh, F = NUM_HEADS, NUM_KV_HEADS, HEAD_DIM, FEATURE_DIM
    D, I = HIDDEN, INTERMEDIATE
    d2 = Dh // 2
    group = H // Hk
    n_layers = len(layer_kinds)
    n_linear = sum(1 for k in layer_kinds if k)
    scale = Dh ** -0.5

    def kernel(*refs):
        x_ref, cos_ref, sin_ref = refs[0], refs[1], refs[2]
        pos = 3
        layer_refs = []
        for kind in layer_kinds:
            n = len(_LINEAR_PARAMS) if kind else len(_SOFTMAX_PARAMS)
            layer_refs.append(refs[pos:pos + n])
            pos += n
        hid_refs = refs[pos:pos + n_layers]
        pos += n_layers
        score_refs = refs[pos:pos + n_linear]
        pos += n_linear
        oh_scratch = refs[pos]                       # (S, H*Dh) f32 VMEM scratch

        S = x_ref.shape[1]
        x = x_ref[0]                                 # (S, D) f32, resident for the whole stack
        cos = cos_ref[...]                           # (S, Dh//2) f32 -- hoisted once
        sin = sin_ref[...]
        causal = _causal_mask(S)                     # (S, S) bool -- hoisted once

        si = 0
        for li, kind in enumerate(layer_kinds):
            prefs = layer_refs[li]
            if kind:
                (wqkv, wo, fqt, fqb, fkt, fkb,
                 ln_in, ln_pa, ln_pf, ln_pff, w_gu, w_dn) = prefs
            else:
                (wqkv, wo, ln_in, ln_pa, ln_pf, ln_pff, w_gu, w_dn) = prefs

            # ---- attention: input norm + head-batched packed QKV projection ----
            hn = _rmsnorm(x, ln_in[...]).astype(jnp.bfloat16)                  # (S, D)
            hb = jnp.broadcast_to(hn[None], (H + 2 * Hk, S, D))                # head-batched LHS
            qkv = jnp.einsum('hsd,hdx->hsx', hb, wqkv[...],
                             preferred_element_type=jnp.float32)               # (H+2Hk, S, Dh)
            q3, k3, v3 = qkv[:H], qkv[H:H + Hk], qkv[H + Hk:]                  # leading-axis splits

            # ---- RoPE on whole head-batched slabs (Gemma half-split convention) ----
            q1, q2 = q3[..., :d2], q3[..., d2:]
            k1, k2 = k3[..., :d2], k3[..., d2:]
            q1r, q2r = q1 * cos - q2 * sin, q2 * cos + q1 * sin                # (H, S, d2)
            k1r, k2r = k1 * cos - k2 * sin, k2 * cos + k1 * sin                # (Hk, S, d2): GQA hoist
            k1r_r, k2r_r = _repeat_kv(k1r, group), _repeat_kv(k2r, group)      # (H, S, d2)
            v3_r = _repeat_kv(v3, group)                                       # (H, S, Dh)

            if kind:
                # Hedgehog feature maps.  NOTE: the reference applies feature_map_k AFTER
                # repeat_kv, so per-query-head fk weights act on the shared rotated kv head.
                zq = (jnp.einsum('hsd,hdf->hsf', q1r.astype(jnp.bfloat16), fqt[...],
                                 preferred_element_type=jnp.float32)
                      + jnp.einsum('hsd,hdf->hsf', q2r.astype(jnp.bfloat16), fqb[...],
                                   preferred_element_type=jnp.float32))        # (H, S, F)
                zk = (jnp.einsum('hsd,hdf->hsf', k1r_r.astype(jnp.bfloat16), fkt[...],
                                 preferred_element_type=jnp.float32)
                      + jnp.einsum('hsd,hdf->hsf', k2r_r.astype(jnp.bfloat16), fkb[...],
                                   preferred_element_type=jnp.float32))        # (H, S, F)
                # phi(z) = [softmax(z), softmax(-z)] kept as two branches (no lane concat);
                # phi(q) @ phi(k)^T is the sum of the two partial products, bf16 in / f32 acc.
                pqp, pqn = _phi(zq), _phi(-zq)
                pkp, pkn = _phi(zk), _phi(-zk)
                a = (jnp.einsum('hqf,hkf->hqk', pqp.astype(jnp.bfloat16),
                                pkp.astype(jnp.bfloat16),
                                preferred_element_type=jnp.float32)
                     + jnp.einsum('hqf,hkf->hqk', pqn.astype(jnp.bfloat16),
                                  pkn.astype(jnp.bfloat16),
                                  preferred_element_type=jnp.float32))         # (H, S, S)
                a = jnp.where(causal, a, 0.0)
                # exact division: these scores are an exported model output.
                a = a / jnp.sum(a, axis=-1, keepdims=True)
                score_refs[si][0] = a
                si += 1
                p = a
            else:
                s = (jnp.einsum('hqd,hkd->hqk', q1r.astype(jnp.bfloat16),
                                k1r_r.astype(jnp.bfloat16),
                                preferred_element_type=jnp.float32)
                     + jnp.einsum('hqd,hkd->hqk', q2r.astype(jnp.bfloat16),
                                  k2r_r.astype(jnp.bfloat16),
                                  preferred_element_type=jnp.float32))         # (H, S, S)
                s = jnp.where(causal, s * scale, MASK_MIN)
                p = _softmax_approx(s)

            o3 = jnp.einsum('hqk,hkd->hqd', p.astype(jnp.bfloat16),
                            v3_r.astype(jnp.bfloat16),
                            preferred_element_type=jnp.float32)                # (H, S, Dh)

            # Per-head results placed at static lane offsets in a (S, H*Dh) scratch, then a
            # single K=H*Dh o-projection matmul (placement stores only; no per-head matmuls).
            for h in range(H):
                oh_scratch[:, h * Dh:(h + 1) * Dh] = o3[h]
            attn = jnp.dot(oh_scratch[...].astype(jnp.bfloat16), wo[...],
                           preferred_element_type=jnp.float32)                 # (S, D)
            x = x + _rmsnorm(attn, ln_pa[...])

            # ---- GeGLU MLP (gate & up packed -> one 128-lane-dense matmul) ----
            h2 = _rmsnorm(x, ln_pf[...]).astype(jnp.bfloat16)
            gu = jnp.dot(h2, w_gu[...], preferred_element_type=jnp.float32)    # (S, 2I)
            act = jax.nn.gelu(gu[:, :I], approximate=True) * gu[:, I:]
            mlp = jnp.dot(act.astype(jnp.bfloat16), w_dn[...],
                          preferred_element_type=jnp.float32)
            x = x + _rmsnorm(mlp, ln_pff[...])

            hid_refs[li][0] = x

    return kernel


# ------------------------------- pallas_call wrapper --------------------------------
def _batch_spec(shape):
    """Block = one batch element, full extent on every other axis."""
    tail = (0,) * (len(shape) - 1)
    return pl.BlockSpec((1,) + tuple(shape[1:]), lambda b: (b,) + tail)


def _bcast_spec(a):
    """Whole-array block, identical for every grid step (weights / rope tables / norms)."""
    zeros = (0,) * a.ndim
    return pl.BlockSpec(tuple(a.shape), lambda b: zeros)


def sub_gemma_forward(layers, hidden_states):
    """Runs the whole decoder stack in ONE pallas_call; grid=(B,) feeds both v7x TensorCores."""
    B, S, D = hidden_states.shape
    cos, sin = precompute_rope(S, HEAD_DIM)
    kinds = tuple(bool(p['linear_attn']) for p in layers)
    kernel = _build_stack_kernel(kinds)

    flat_inputs = [hidden_states, cos, sin]
    in_specs = [_batch_spec(hidden_states.shape), _bcast_spec(cos), _bcast_spec(sin)]
    for p in layers:
        for name in (_LINEAR_PARAMS if p['linear_attn'] else _SOFTMAX_PARAMS):
            flat_inputs.append(p[name])
            in_specs.append(_bcast_spec(p[name]))

    n_layers = len(layers)
    n_linear = sum(kinds)
    out_shape = ([jax.ShapeDtypeStruct((B, S, D), jnp.float32)] * n_layers
                 + [jax.ShapeDtypeStruct((B, NUM_HEADS, S, S), jnp.float32)] * n_linear)
    out_specs = ([_batch_spec((B, S, D))] * n_layers
                 + [_batch_spec((B, NUM_HEADS, S, S))] * n_linear)

    outs = pl.pallas_call(
        kernel,
        grid=(B,),
        in_specs=in_specs,
        out_specs=out_specs,
        out_shape=out_shape,
        scratch_shapes=[pltpu.VMEM((S, NUM_HEADS * HEAD_DIM), jnp.float32)],
        compiler_params=pltpu.CompilerParams(dimension_semantics=("parallel",)),
    )(*flat_inputs)

    hiddens = list(outs[:n_layers])
    scores = list(outs[n_layers:])
    all_outputs = {'hidden_states': hiddens}
    if scores:
        all_outputs['attn_scores_pred'] = scores
    return {'hidden_states': hiddens[-1], 'all_outputs': all_outputs}


# ------------------------------- model glue (plain JAX) -----------------------------
def precompute_rope(seq_len, dim, theta=ROPE_THETA):
    inv = 1.0 / (theta ** (jnp.arange(0, dim, 2, dtype=jnp.float32) / dim))
    t = jnp.arange(seq_len, dtype=jnp.float32)
    freqs = jnp.outer(t, inv)                         # (S, dim//2)
    return jnp.cos(freqs), jnp.sin(freqs)


# --------------------------- deterministic parameter init ---------------------------
def build_sub_gemma_params(key, layer_idx):
    li = list(layer_idx)
    if li[0] != 1:
        li = list(range(1, li[0], 2)) + li
    if li[0] % 2 == 0 or li[-1] % 2 == 0:
        raise ValueError('Both the first and last indices in layer_idx must be odd.')
    full_idx = list(range(1, li[-1] + 1))

    keys = iter(jax.random.split(key, 512))

    def rnd(shape, scale):
        return scale * jax.random.normal(next(keys), shape, dtype=jnp.float32)

    layers = []
    for idx in full_idx:
        is_lin = idx in li
        layer = dict(
            linear_attn=is_lin,
            wq=rnd((HIDDEN, NUM_HEADS * HEAD_DIM), 0.05),
            wk=rnd((HIDDEN, NUM_KV_HEADS * HEAD_DIM), 0.05),
            wv=rnd((HIDDEN, NUM_KV_HEADS * HEAD_DIM), 0.05),
            wo=rnd((NUM_HEADS * HEAD_DIM, HIDDEN), 0.05),
            gate=rnd((HIDDEN, INTERMEDIATE), 0.05),
            up=rnd((HIDDEN, INTERMEDIATE), 0.05),
            down=rnd((INTERMEDIATE, HIDDEN), 0.05),
            ln_in=rnd((1, HIDDEN), 0.1),
            ln_pa=rnd((1, HIDDEN), 0.1),
            ln_pf=rnd((1, HIDDEN), 0.1),
            ln_pff=rnd((1, HIDDEN), 0.1),
        )
        if is_lin:
            layer['fmap_q'] = rnd((NUM_HEADS, HEAD_DIM, FEATURE_DIM), 0.5)
            layer['fmap_k'] = rnd((NUM_HEADS, HEAD_DIM, FEATURE_DIM), 0.5)
        layers.append(layer)
    return layers


def prepare_kernel_params(layer):
    """Wrapper-side layout plumbing only: head-batched packed QKV, split fmap halves, packed
    gate/up, bf16 casts of all MXU weights.  No compute is hoisted out of the kernel."""
    H, Hk, Dh = NUM_HEADS, NUM_KV_HEADS, HEAD_DIM
    d2 = Dh // 2
    wq3 = layer['wq'].reshape(HIDDEN, H, Dh).transpose(1, 0, 2)      # (H,  D, Dh)
    wk3 = layer['wk'].reshape(HIDDEN, Hk, Dh).transpose(1, 0, 2)     # (Hk, D, Dh)
    wv3 = layer['wv'].reshape(HIDDEN, Hk, Dh).transpose(1, 0, 2)     # (Hk, D, Dh)
    out = dict(
        linear_attn=layer['linear_attn'],
        wqkv=jnp.concatenate([wq3, wk3, wv3], axis=0).astype(jnp.bfloat16),   # (H+2Hk, D, Dh)
        wo=layer['wo'].astype(jnp.bfloat16),
        ln_in=layer['ln_in'], ln_pa=layer['ln_pa'],
        ln_pf=layer['ln_pf'], ln_pff=layer['ln_pff'],
        w_gu=jnp.concatenate([layer['gate'], layer['up']], axis=1).astype(jnp.bfloat16),
        w_down=layer['down'].astype(jnp.bfloat16),
    )
    if layer['linear_attn']:
        out['fq_top'] = layer['fmap_q'][:, :d2, :].astype(jnp.bfloat16)
        out['fq_bot'] = layer['fmap_q'][:, d2:, :].astype(jnp.bfloat16)
        out['fk_top'] = layer['fmap_k'][:, :d2, :].astype(jnp.bfloat16)
        out['fk_bot'] = layer['fmap_k'][:, d2:, :].astype(jnp.bfloat16)
    return out


# ---------------------------------------- main --------------------------------------
if __name__ == "__main__":
    root = jax.random.PRNGKey(0)
    pkey, xkey = jax.random.split(root)
    raw_layers = build_sub_gemma_params(pkey, LAYER_IDX)
    layers = [prepare_kernel_params(p) for p in raw_layers]
    hidden_states = jax.random.normal(xkey, (BATCH, SEQ, HIDDEN), dtype=jnp.float32)

    out = sub_gemma_forward(layers, hidden_states)

    jax.block_until_ready(out['hidden_states'])
    for v_list in out['all_outputs'].values():
        for v in v_list:
            jax.block_until_ready(v)

    assert out['hidden_states'].shape == (BATCH, SEQ, HIDDEN)
    assert len(out['all_outputs']['hidden_states']) == 3
    assert len(out['all_outputs']['attn_scores_pred']) == 2
    assert out['all_outputs']['attn_scores_pred'][0].shape == (BATCH, NUM_HEADS, SEQ, SEQ)
    assert bool(jnp.all(jnp.isfinite(out['hidden_states'])))
    for sc in out['all_outputs']['attn_scores_pred']:
        assert bool(jnp.all(jnp.isfinite(sc)))

    print("KERNEL_OK")
</pallas_src>

<mosaic_0001>
module attributes {stable_mosaic.version = 11 : i64} {
  func.func @kernel(%arg0: i32, %arg1: memref<1x8x32xf32, #tpu.memory_space<vmem>>, %arg2: memref<8x4xf32, #tpu.memory_space<vmem>>, %arg3: memref<8x4xf32, #tpu.memory_space<vmem>>, %arg4: memref<8x32x8xbf16, #tpu.memory_space<vmem>>, %arg5: memref<32x32xbf16, #tpu.memory_space<vmem>>, %arg6: memref<4x4x8xbf16, #tpu.memory_space<vmem>>, %arg7: memref<4x4x8xbf16, #tpu.memory_space<vmem>>, %arg8: memref<4x4x8xbf16, #tpu.memory_space<vmem>>, %arg9: memref<4x4x8xbf16, #tpu.memory_space<vmem>>, %arg10: memref<1x32xf32, #tpu.memory_space<vmem>>, %arg11: memref<1x32xf32, #tpu.memory_space<vmem>>, %arg12: memref<1x32xf32, #tpu.memory_space<vmem>>, %arg13: memref<1x32xf32, #tpu.memory_space<vmem>>, %arg14: memref<32x128xbf16, #tpu.memory_space<vmem>>, %arg15: memref<64x32xbf16, #tpu.memory_space<vmem>>, %arg16: memref<8x32x8xbf16, #tpu.memory_space<vmem>>, %arg17: memref<32x32xbf16, #tpu.memory_space<vmem>>, %arg18: memref<1x32xf32, #tpu.memory_space<vmem>>, %arg19: memref<1x32xf32, #tpu.memory_space<vmem>>, %arg20: memref<1x32xf32, #tpu.memory_space<vmem>>, %arg21: memref<1x32xf32, #tpu.memory_space<vmem>>, %arg22: memref<32x128xbf16, #tpu.memory_space<vmem>>, %arg23: memref<64x32xbf16, #tpu.memory_space<vmem>>, %arg24: memref<8x32x8xbf16, #tpu.memory_space<vmem>>, %arg25: memref<32x32xbf16, #tpu.memory_space<vmem>>, %arg26: memref<4x4x8xbf16, #tpu.memory_space<vmem>>, %arg27: memref<4x4x8xbf16, #tpu.memory_space<vmem>>, %arg28: memref<4x4x8xbf16, #tpu.memory_space<vmem>>, %arg29: memref<4x4x8xbf16, #tpu.memory_space<vmem>>, %arg30: memref<1x32xf32, #tpu.memory_space<vmem>>, %arg31: memref<1x32xf32, #tpu.memory_space<vmem>>, %arg32: memref<1x32xf32, #tpu.memory_space<vmem>>, %arg33: memref<1x32xf32, #tpu.memory_space<vmem>>, %arg34: memref<32x128xbf16, #tpu.memory_space<vmem>>, %arg35: memref<64x32xbf16, #tpu.memory_space<vmem>>, %arg36: memref<1x8x32xf32, #tpu.memory_space<vmem>>, %arg37: memref<1x8x32xf32, #tpu.memory_space<vmem>>, %arg38: memref<1x8x32xf32, #tpu.memory_space<vmem>>, %arg39: memref<1x4x8x8xf32, #tpu.memory_space<vmem>>, %arg40: memref<1x4x8x8xf32, #tpu.memory_space<vmem>>, %arg41: memref<8x32xf32, #tpu.memory_space<vmem>>) attributes {dimension_semantics = [#tpu.dimension_semantics<parallel>], iteration_bounds = array<i64: 2>, scalar_prefetch = 0 : i64, scratch_operands = 1 : i64, tpu.core_type = #tpu.core_type<tc>, window_params = [{transform_indices = @transform_0, window_bounds = array<i64: 1, 8, 32>}, {pipeline_mode = #tpu.pipeline_mode<synchronous>, transform_indices = @transform_1, window_bounds = array<i64: 8, 4>}, {pipeline_mode = #tpu.pipeline_mode<synchronous>, transform_indices = @transform_2, window_bounds = array<i64: 8, 4>}, {pipeline_mode = #tpu.pipeline_mode<synchronous>, transform_indices = @transform_3, window_bounds = array<i64: 8, 32, 8>}, {pipeline_mode = #tpu.pipeline_mode<synchronous>, transform_indices = @transform_4, window_bounds = array<i64: 32, 32>}, {pipeline_mode = #tpu.pipeline_mode<synchronous>, transform_indices = @transform_5, window_bounds = array<i64: 4, 4, 8>}, {pipeline_mode = #tpu.pipeline_mode<synchronous>, transform_indices = @transform_6, window_bounds = array<i64: 4, 4, 8>}, {pipeline_mode = #tpu.pipeline_mode<synchronous>, transform_indices = @transform_7, window_bounds = array<i64: 4, 4, 8>}, {pipeline_mode = #tpu.pipeline_mode<synchronous>, transform_indices = @transform_8, window_bounds = array<i64: 4, 4, 8>}, {pipeline_mode = #tpu.pipeline_mode<synchronous>, transform_indices = @transform_9, window_bounds = array<i64: 1, 32>}, {pipeline_mode = #tpu.pipeline_mode<synchronous>, transform_indices = @transform_10, window_bounds = array<i64: 1, 32>}, {pipeline_mode = #tpu.pipeline_mode<synchronous>, transform_indices = @transform_11, window_bounds = array<i64: 1, 32>}, {pipeline_mode = #tpu.pipeline_mode<synchronous>, transform_indices = @transform_12, window_bounds = array<i64: 1, 32>}, {pipeline_mode = #tpu.pipeline_mode<synchronous>, transform_indices = @transform_13, window_bounds = array<i64: 32, 128>}, {pipeline_mode = #tpu.pipeline_mode<synchronous>, transform_indices = @transform_14, window_bounds = array<i64: 64, 32>}, {pipeline_mode = #tpu.pipeline_mode<synchronous>, transform_indices = @transform_15, window_bounds = array<i64: 8, 32, 8>}, {pipeline_mode = #tpu.pipeline_mode<synchronous>, transform_indices = @transform_16, window_bounds = array<i64: 32, 32>}, {pipeline_mode = #tpu.pipeline_mode<synchronous>, transform_indices = @transform_17, window_bounds = array<i64: 1, 32>}, {pipeline_mode = #tpu.pipeline_mode<synchronous>, transform_indices = @transform_18, window_bounds = array<i64: 1, 32>}, {pipeline_mode = #tpu.pipeline_mode<synchronous>, transform_indices = @transform_19, window_bounds = array<i64: 1, 32>}, {pipeline_mode = #tpu.pipeline_mode<synchronous>, transform_indices = @transform_20, window_bounds = array<i64: 1, 32>}, {pipeline_mode = #tpu.pipeline_mode<synchronous>, transform_indices = @transform_21, window_bounds = array<i64: 32, 128>}, {pipeline_mode = #tpu.pipeline_mode<synchronous>, transform_indices = @transform_22, window_bounds = array<i64: 64, 32>}, {pipeline_mode = #tpu.pipeline_mode<synchronous>, transform_indices = @transform_23, window_bounds = array<i64: 8, 32, 8>}, {pipeline_mode = #tpu.pipeline_mode<synchronous>, transform_indices = @transform_24, window_bounds = array<i64: 32, 32>}, {pipeline_mode = #tpu.pipeline_mode<synchronous>, transform_indices = @transform_25, window_bounds = array<i64: 4, 4, 8>}, {pipeline_mode = #tpu.pipeline_mode<synchronous>, transform_indices = @transform_26, window_bounds = array<i64: 4, 4, 8>}, {pipeline_mode = #tpu.pipeline_mode<synchronous>, transform_indices = @transform_27, window_bounds = array<i64: 4, 4, 8>}, {pipeline_mode = #tpu.pipeline_mode<synchronous>, transform_indices = @transform_28, window_bounds = array<i64: 4, 4, 8>}, {pipeline_mode = #tpu.pipeline_mode<synchronous>, transform_indices = @transform_29, window_bounds = array<i64: 1, 32>}, {pipeline_mode = #tpu.pipeline_mode<synchronous>, transform_indices = @transform_30, window_bounds = array<i64: 1, 32>}, {pipeline_mode = #tpu.pipeline_mode<synchronous>, transform_indices = @transform_31, window_bounds = array<i64: 1, 32>}, {pipeline_mode = #tpu.pipeline_mode<synchronous>, transform_indices = @transform_32, window_bounds = array<i64: 1, 32>}, {pipeline_mode = #tpu.pipeline_mode<synchronous>, transform_indices = @transform_33, window_bounds = array<i64: 32, 128>}, {pipeline_mode = #tpu.pipeline_mode<synchronous>, transform_indices = @transform_34, window_bounds = array<i64: 64, 32>}, {transform_indices = @transform_35, window_bounds = array<i64: 1, 8, 32>}, {transform_indices = @transform_36, window_bounds = array<i64: 1, 8, 32>}, {transform_indices = @transform_37, window_bounds = array<i64: 1, 8, 32>}, {transform_indices = @transform_38, window_bounds = array<i64: 1, 4, 8, 8>}, {transform_indices = @transform_39, window_bounds = array<i64: 1, 4, 8, 8>}]} {
    %c0 = arith.constant 0 : index
    %c0_0 = arith.constant 0 : index
    %c0_1 = arith.constant 0 : index
    %0 = vector.load %arg1[%c0, %c0_0, %c0_1] : memref<1x8x32xf32, #tpu.memory_space<vmem>>, vector<1x8x32xf32>
    %1 = vector.shape_cast %0 : vector<1x8x32xf32> to vector<8x32xf32>
    %c0_2 = arith.constant 0 : index
    %c0_3 = arith.constant 0 : index
    %2 = vector.load %arg2[%c0_2, %c0_3] : memref<8x4xf32, #tpu.memory_space<vmem>>, vector<8x4xf32>
    %c0_4 = arith.constant 0 : index
    %c0_5 = arith.constant 0 : index
    %3 = vector.load %arg3[%c0_4, %c0_5] : memref<8x4xf32, #tpu.memory_space<vmem>>, vector<8x4xf32>
    %4 = tpu.iota {dimensions = array<i32: 0>} : vector<8x8xi32>
    %5 = tpu.iota {dimensions = array<i32: 1>} : vector<8x8xi32>
    %6 = arith.cmpi sle, %5, %4 : vector<8x8xi32>
    %c0_6 = arith.constant 0 : index
    %c0_7 = arith.constant 0 : index
    %7 = vector.load %arg10[%c0_6, %c0_7] : memref<1x32xf32, #tpu.memory_space<vmem>>, vector<1x32xf32>
    %8 = arith.mulf %1, %1 : vector<8x32xf32>
    %cst = arith.constant dense<0.000000e+00> : vector<8xf32>
    %9 = vector.multi_reduction <add>, %8, %cst [1] : vector<8x32xf32> to vector<8xf32>
    %10 = vector.shape_cast %9 : vector<8xf32> to vector<8x1xf32>
    %cst_8 = arith.constant 3.200000e+01 : f32
    %11 = vector.broadcast %cst_8 : f32 to vector<8x1xf32>
    %12 = arith.divf %10, %11 : vector<8x1xf32>
    %cst_9 = arith.constant 9.99999997E-7 : f32
    %13 = vector.broadcast %cst_9 : f32 to vector<8x1xf32>
    %14 = arith.addf %12, %13 : vector<8x1xf32>
    %15 = math.rsqrt %14 : vector<8x1xf32>
    %16 = vector.broadcast %15 : vector<8x1xf32> to vector<8x32xf32>
    %17 = arith.mulf %1, %16 : vector<8x32xf32>
    %cst_10 = arith.constant 1.000000e+00 : f32
    %18 = vector.broadcast %cst_10 : f32 to vector<1x32xf32>
    %19 = arith.addf %18, %7 : vector<1x32xf32>
    %20 = vector.broadcast %19 : vector<1x32xf32> to vector<8x32xf32>
    %21 = arith.mulf %17, %20 : vector<8x32xf32>
    %22 = arith.truncf %21 : vector<8x32xf32> to vector<8x32xbf16>
    %23 = vector.shape_cast %22 : vector<8x32xbf16> to vector<1x8x32xbf16>
    %24 = vector.shape_cast %23 : vector<1x8x32xbf16> to vector<1x8x32xbf16>
    %25 = vector.broadcast %24 : vector<1x8x32xbf16> to vector<8x8x32xbf16>
    %c0_11 = arith.constant 0 : index
    %c0_12 = arith.constant 0 : index
    %c0_13 = arith.constant 0 : index
    %26 = vector.load %arg4[%c0_11, %c0_12, %c0_13] : memref<8x32x8xbf16, #tpu.memory_space<vmem>>, vector<8x32x8xbf16>
    "tpu.trace_start"() <{level = 10 : i32, message = "hsd,hdx->hsx"}> : () -> ()
    %cst_14 = arith.constant dense<0.000000e+00> : vector<8x8x8xf32>
    %27 = tpu.matmul %25, %26, %cst_14 {dimension_numbers = #tpu.dot_dimension_numbers<[2], [1], [1], [2], [0, 0, 0, 1, 1, 2], [0], [0]>} : vector<8x8x32xbf16>, vector<8x32x8xbf16>, vector<8x8x8xf32> -> vector<8x8x8xf32>
    "tpu.trace_stop"() : () -> ()
    %28 = vector.extract_strided_slice %27 {offsets = [0, 0, 0], sizes = [4, 8, 8], strides = [1, 1, 1]} : vector<8x8x8xf32> to vector<4x8x8xf32>
    %29 = vector.extract_strided_slice %27 {offsets = [4, 0, 0], sizes = [2, 8, 8], strides = [1, 1, 1]} : vector<8x8x8xf32> to vector<2x8x8xf32>
    %30 = vector.extract_strided_slice %27 {offsets = [6, 0, 0], sizes = [2, 8, 8], strides = [1, 1, 1]} : vector<8x8x8xf32> to vector<2x8x8xf32>
    %31 = vector.extract_strided_slice %28 {offsets = [0, 0, 0], sizes = [4, 8, 4], strides = [1, 1, 1]} : vector<4x8x8xf32> to vector<4x8x4xf32>
    %32 = vector.extract_strided_slice %28 {offsets = [0, 0, 4], sizes = [4, 8, 4], strides = [1, 1, 1]} : vector<4x8x8xf32> to vector<4x8x4xf32>
    %33 = vector.extract_strided_slice %29 {offsets = [0, 0, 0], sizes = [2, 8, 4], strides = [1, 1, 1]} : vector<2x8x8xf32> to vector<2x8x4xf32>
    %34 = vector.extract_strided_slice %29 {offsets = [0, 0, 4], sizes = [2, 8, 4], strides = [1, 1, 1]} : vector<2x8x8xf32> to vector<2x8x4xf32>
    %35 = vector.shape_cast %2 : vector<8x4xf32> to vector<1x8x4xf32>
    %36 = vector.broadcast %35 : vector<1x8x4xf32> to vector<4x8x4xf32>
    %37 = arith.mulf %31, %36 : vector<4x8x4xf32>
    %38 = vector.shape_cast %3 : vector<8x4xf32> to vector<1x8x4xf32>
    %39 = vector.broadcast %38 : vector<1x8x4xf32> to vector<4x8x4xf32>
    %40 = arith.mulf %32, %39 : vector<4x8x4xf32>
    %41 = arith.subf %37, %40 : vector<4x8x4xf32>
    %42 = vector.shape_cast %2 : vector<8x4xf32> to vector<1x8x4xf32>
    %43 = vector.broadcast %42 : vector<1x8x4xf32> to vector<4x8x4xf32>
    %44 = arith.mulf %32, %43 : vector<4x8x4xf32>
    %45 = vector.shape_cast %3 : vector<8x4xf32> to vector<1x8x4xf32>
    %46 = vector.broadcast %45 : vector<1x8x4xf32> to vector<4x8x4xf32>
    %47 = arith.mulf %31, %46 : vector<4x8x4xf32>
    %48 = arith.addf %44, %47 : vector<4x8x4xf32>
    %49 = vector.shape_cast %2 : vector<8x4xf32> to vector<1x8x4xf32>
    %50 = vector.broadcast %49 : vector<1x8x4xf32> to vector<2x8x4xf32>
    %51 = arith.mulf %33, %50 : vector<2x8x4xf32>
    %52 = vector.shape_cast %3 : vector<8x4xf32> to vector<1x8x4xf32>
    %53 = vector.broadcast %52 : vector<1x8x4xf32> to vector<2x8x4xf32>
    %54 = arith.mulf %34, %53 : vector<2x8x4xf32>
    %55 = arith.subf %51, %54 : vector<2x8x4xf32>
    %56 = vector.shape_cast %2 : vector<8x4xf32> to vector<1x8x4xf32>
    %57 = vector.broadcast %56 : vector<1x8x4xf32> to vector<2x8x4xf32>
    %58 = arith.mulf %34, %57 : vector<2x8x4xf32>
    %59 = vector.shape_cast %3 : vector<8x4xf32> to vector<1x8x4xf32>
    %60 = vector.broadcast %59 : vector<1x8x4xf32> to vector<2x8x4xf32>
    %61 = arith.mulf %33, %60 : vector<2x8x4xf32>
    %62 = arith.addf %58, %61 : vector<2x8x4xf32>
    %63 = vector.extract_strided_slice %55 {offsets = [0, 0, 0], sizes = [1, 8, 4], strides = [1, 1, 1]} : vector<2x8x4xf32> to vector<1x8x4xf32>
    %64 = vector.extract_strided_slice %55 {offsets = [0, 0, 0], sizes = [1, 8, 4], strides = [1, 1, 1]} : vector<2x8x4xf32> to vector<1x8x4xf32>
    %65 = vector.extract_strided_slice %55 {offsets = [1, 0, 0], sizes = [1, 8, 4], strides = [1, 1, 1]} : vector<2x8x4xf32> to vector<1x8x4xf32>
    %66 = vector.extract_strided_slice %55 {offsets = [1, 0, 0], sizes = [1, 8, 4], strides = [1, 1, 1]} : vector<2x8x4xf32> to vector<1x8x4xf32>
    %67 = tpu.concatenate %63, %64, %65, %66 in 0 : vector<1x8x4xf32>, vector<1x8x4xf32>, vector<1x8x4xf32>, vector<1x8x4xf32> -> vector<4x8x4xf32>
    %68 = vector.extract_strided_slice %62 {offsets = [0, 0, 0], sizes = [1, 8, 4], strides = [1, 1, 1]} : vector<2x8x4xf32> to vector<1x8x4xf32>
    %69 = vector.extract_strided_slice %62 {offsets = [0, 0, 0], sizes = [1, 8, 4], strides = [1, 1, 1]} : vector<2x8x4xf32> to vector<1x8x4xf32>
    %70 = vector.extract_strided_slice %62 {offsets = [1, 0, 0], sizes = [1, 8, 4], strides = [1, 1, 1]} : vector<2x8x4xf32> to vector<1x8x4xf32>
    %71 = vector.extract_strided_slice %62 {offsets = [1, 0, 0], sizes = [1, 8, 4], strides = [1, 1, 1]} : vector<2x8x4xf32> to vector<1x8x4xf32>
    %72 = tpu.concatenate %68, %69, %70, %71 in 0 : vector<1x8x4xf32>, vector<1x8x4xf32>, vector<1x8x4xf32>, vector<1x8x4xf32> -> vector<4x8x4xf32>
    %73 = vector.extract_strided_slice %30 {offsets = [0, 0, 0], sizes = [1, 8, 8], strides = [1, 1, 1]} : vector<2x8x8xf32> to vector<1x8x8xf32>
    %74 = vector.extract_strided_slice %30 {offsets = [0, 0, 0], sizes = [1, 8, 8], strides = [1, 1, 1]} : vector<2x8x8xf32> to vector<1x8x8xf32>
    %75 = vector.extract_strided_slice %30 {offsets = [1, 0, 0], sizes = [1, 8, 8], strides = [1, 1, 1]} : vector<2x8x8xf32> to vector<1x8x8xf32>
    %76 = vector.extract_strided_slice %30 {offsets = [1, 0, 0], sizes = [1, 8, 8], strides = [1, 1, 1]} : vector<2x8x8xf32> to vector<1x8x8xf32>
    %77 = tpu.concatenate %73, %74, %75, %76 in 0 : vector<1x8x8xf32>, vector<1x8x8xf32>, vector<1x8x8xf32>, vector<1x8x8xf32> -> vector<4x8x8xf32>
    %78 = arith.truncf %41 : vector<4x8x4xf32> to vector<4x8x4xbf16>
    %c0_15 = arith.constant 0 : index
    %c0_16 = arith.constant 0 : index
    %c0_17 = arith.constant 0 : index
    %79 = vector.load %arg6[%c0_15, %c0_16, %c0_17] : memref<4x4x8xbf16, #tpu.memory_space<vmem>>, vector<4x4x8xbf16>
    "tpu.trace_start"() <{level = 10 : i32, message = "hsd,hdf->hsf"}> : () -> ()
    %cst_18 = arith.constant dense<0.000000e+00> : vector<4x8x8xf32>
    %80 = tpu.matmul %78, %79, %cst_18 {dimension_numbers = #tpu.dot_dimension_numbers<[2], [1], [1], [2], [0, 0, 0, 1, 1, 2], [0], [0]>} : vector<4x8x4xbf16>, vector<4x4x8xbf16>, vector<4x8x8xf32> -> vector<4x8x8xf32>
    "tpu.trace_stop"() : () -> ()
    %81 = arith.truncf %48 : vector<4x8x4xf32> to vector<4x8x4xbf16>
    %c0_19 = arith.constant 0 : index
    %c0_20 = arith.constant 0 : index
    %c0_21 = arith.constant 0 : index
    %82 = vector.load %arg7[%c0_19, %c0_20, %c0_21] : memref<4x4x8xbf16, #tpu.memory_space<vmem>>, vector<4x4x8xbf16>
    "tpu.trace_start"() <{level = 10 : i32, message = "hsd,hdf->hsf"}> : () -> ()
    %cst_22 = arith.constant dense<0.000000e+00> : vector<4x8x8xf32>
    %83 = tpu.matmul %81, %82, %cst_22 {dimension_numbers = #tpu.dot_dimension_numbers<[2], [1], [1], [2], [0, 0, 0, 1, 1, 2], [0], [0]>} : vector<4x8x4xbf16>, vector<4x4x8xbf16>, vector<4x8x8xf32> -> vector<4x8x8xf32>
    "tpu.trace_stop"() : () -> ()
    %84 = arith.addf %80, %83 : vector<4x8x8xf32>
    %85 = arith.truncf %67 : vector<4x8x4xf32> to vector<4x8x4xbf16>
    %c0_23 = arith.constant 0 : index
    %c0_24 = arith.constant 0 : index
    %c0_25 = arith.constant 0 : index
    %86 = vector.load %arg8[%c0_23, %c0_24, %c0_25] : memref<4x4x8xbf16, #tpu.memory_space<vmem>>, vector<4x4x8xbf16>
    "tpu.trace_start"() <{level = 10 : i32, message = "hsd,hdf->hsf"}> : () -> ()
    %cst_26 = arith.constant dense<0.000000e+00> : vector<4x8x8xf32>
    %87 = tpu.matmul %85, %86, %cst_26 {dimension_numbers = #tpu.dot_dimension_numbers<[2], [1], [1], [2], [0, 0, 0, 1, 1, 2], [0], [0]>} : vector<4x8x4xbf16>, vector<4x4x8xbf16>, vector<4x8x8xf32> -> vector<4x8x8xf32>
    "tpu.trace_stop"() : () -> ()
    %88 = arith.truncf %72 : vector<4x8x4xf32> to vector<4x8x4xbf16>
    %c0_27 = arith.constant 0 : index
    %c0_28 = arith.constant 0 : index
    %c0_29 = arith.constant 0 : index
    %89 = vector.load %arg9[%c0_27, %c0_28, %c0_29] : memref<4x4x8xbf16, #tpu.memory_space<vmem>>, vector<4x4x8xbf16>
    "tpu.trace_start"() <{level = 10 : i32, message = "hsd,hdf->hsf"}> : () -> ()
    %cst_30 = arith.constant dense<0.000000e+00> : vector<4x8x8xf32>
    %90 = tpu.matmul %88, %89, %cst_30 {dimension_numbers = #tpu.dot_dimension_numbers<[2], [1], [1], [2], [0, 0, 0, 1, 1, 2], [0], [0]>} : vector<4x8x4xbf16>, vector<4x4x8xbf16>, vector<4x8x8xf32> -> vector<4x8x8xf32>
    "tpu.trace_stop"() : () -> ()
    %91 = arith.addf %87, %90 : vector<4x8x8xf32>
    %cst_31 = arith.constant dense<0xFF800000> : vector<4x8xf32>
    %92 = vector.multi_reduction <maximumf>, %84, %cst_31 [2] : vector<4x8x8xf32> to vector<4x8xf32>
    %93 = vector.shape_cast %92 : vector<4x8xf32> to vector<4x8x1xf32>
    %94 = vector.broadcast %93 : vector<4x8x1xf32> to vector<4x8x8xf32>
    %95 = arith.subf %84, %94 : vector<4x8x8xf32>
    %96 = math.exp %95 : vector<4x8x8xf32>
    %cst_32 = arith.constant dense<0.000000e+00> : vector<4x8xf32>
    %97 = vector.multi_reduction <add>, %96, %cst_32 [2] : vector<4x8x8xf32> to vector<4x8xf32>
    %98 = vector.shape_cast %97 : vector<4x8xf32> to vector<4x8x1xf32>
    %99 = vector.broadcast %98 : vector<4x8x1xf32> to vector<4x8x8xf32>
    %100 = arith.divf %96, %99 : vector<4x8x8xf32>
    %cst_33 = arith.constant 0.000000e+00 : f32
    %101 = vector.broadcast %cst_33 : f32 to vector<4x8x8xf32>
    %102 = arith.subf %101, %84 : vector<4x8x8xf32>
    %cst_34 = arith.constant dense<0xFF800000> : vector<4x8xf32>
    %103 = vector.multi_reduction <maximumf>, %102, %cst_34 [2] : vector<4x8x8xf32> to vector<4x8xf32>
    %104 = vector.shape_cast %103 : vector<4x8xf32> to vector<4x8x1xf32>
    %105 = vector.broadcast %104 : vector<4x8x1xf32> to vector<4x8x8xf32>
    %106 = arith.subf %102, %105 : vector<4x8x8xf32>
    %107 = math.exp %106 : vector<4x8x8xf32>
    %cst_35 = arith.constant dense<0.000000e+00> : vector<4x8xf32>
    %108 = vector.multi_reduction <add>, %107, %cst_35 [2] : vector<4x8x8xf32> to vector<4x8xf32>
    %109 = vector.shape_cast %108 : vector<4x8xf32> to vector<4x8x1xf32>
    %110 = vector.broadcast %109 : vector<4x8x1xf32> to vector<4x8x8xf32>
    %111 = arith.divf %107, %110 : vector<4x8x8xf32>
    %cst_36 = arith.constant dense<0xFF800000> : vector<4x8xf32>
    %112 = vector.multi_reduction <maximumf>, %91, %cst_36 [2] : vector<4x8x8xf32> to vector<4x8xf32>
    %113 = vector.shape_cast %112 : vector<4x8xf32> to vector<4x8x1xf32>
    %114 = vector.broadcast %113 : vector<4x8x1xf32> to vector<4x8x8xf32>
    %115 = arith.subf %91, %114 : vector<4x8x8xf32>
    %116 = math.exp %115 : vector<4x8x8xf32>
    %cst_37 = arith.constant dense<0.000000e+00> : vector<4x8xf32>
    %117 = vector.multi_reduction <add>, %116, %cst_37 [2] : vector<4x8x8xf32> to vector<4x8xf32>
    %118 = vector.shape_cast %117 : vector<4x8xf32> to vector<4x8x1xf32>
    %119 = vector.broadcast %118 : vector<4x8x1xf32> to vector<4x8x8xf32>
    %120 = arith.divf %116, %119 : vector<4x8x8xf32>
    %cst_38 = arith.constant 0.000000e+00 : f32
    %121 = vector.broadcast %cst_38 : f32 to vector<4x8x8xf32>
    %122 = arith.subf %121, %91 : vector<4x8x8xf32>
    %cst_39 = arith.constant dense<0xFF800000> : vector<4x8xf32>
    %123 = vector.multi_reduction <maximumf>, %122, %cst_39 [2] : vector<4x8x8xf32> to vector<4x8xf32>
    %124 = vector.shape_cast %123 : vector<4x8xf32> to vector<4x8x1xf32>
    %125 = vector.broadcast %124 : vector<4x8x1xf32> to vector<4x8x8xf32>
    %126 = arith.subf %122, %125 : vector<4x8x8xf32>
    %127 = math.exp %126 : vector<4x8x8xf32>
    %cst_40 = arith.constant dense<0.000000e+00> : vector<4x8xf32>
    %128 = vector.multi_reduction <add>, %127, %cst_40 [2] : vector<4x8x8xf32> to vector<4x8xf32>
    %129 = vector.shape_cast %128 : vector<4x8xf32> to vector<4x8x1xf32>
    %130 = vector.broadcast %129 : vector<4x8x1xf32> to vector<4x8x8xf32>
    %131 = arith.divf %127, %130 : vector<4x8x8xf32>
    %132 = arith.truncf %100 : vector<4x8x8xf32> to vector<4x8x8xbf16>
    %133 = arith.truncf %120 : vector<4x8x8xf32> to vector<4x8x8xbf16>
    "tpu.trace_start"() <{level = 10 : i32, message = "hqf,hkf->hqk"}> : () -> ()
    %cst_41 = arith.constant dense<0.000000e+00> : vector<4x8x8xf32>
    %134 = tpu.matmul %132, %133, %cst_41 {dimension_numbers = #tpu.dot_dimension_numbers<[2], [2], [1], [1], [0, 0, 0, 1, 1, 1], [0], [0]>} : vector<4x8x8xbf16>, vector<4x8x8xbf16>, vector<4x8x8xf32> -> vector<4x8x8xf32>
    "tpu.trace_stop"() : () -> ()
    %135 = arith.truncf %111 : vector<4x8x8xf32> to vector<4x8x8xbf16>
    %136 = arith.truncf %131 : vector<4x8x8xf32> to vector<4x8x8xbf16>
    "tpu.trace_start"() <{level = 10 : i32, message = "hqf,hkf->hqk"}> : () -> ()
    %cst_42 = arith.constant dense<0.000000e+00> : vector<4x8x8xf32>
    %137 = tpu.matmul %135, %136, %cst_42 {dimension_numbers = #tpu.dot_dimension_numbers<[2], [2], [1], [1], [0, 0, 0, 1, 1, 1], [0], [0]>} : vector<4x8x8xbf16>, vector<4x8x8xbf16>, vector<4x8x8xf32> -> vector<4x8x8xf32>
    "tpu.trace_stop"() : () -> ()
    %138 = arith.addf %134, %137 : vector<4x8x8xf32>
    %cst_43 = arith.constant 0.000000e+00 : f32
    %139 = vector.shape_cast %6 : vector<8x8xi1> to vector<1x8x8xi1>
    %140 = vector.broadcast %139 : vector<1x8x8xi1> to vector<4x8x8xi1>
    %141 = vector.broadcast %cst_43 : f32 to vector<4x8x8xf32>
    %142 = arith.select %140, %138, %141 : vector<4x8x8xi1>, vector<4x8x8xf32>
    %cst_44 = arith.constant dense<0.000000e+00> : vector<4x8xf32>
    %143 = vector.multi_reduction <add>, %142, %cst_44 [2] : vector<4x8x8xf32> to vector<4x8xf32>
    %144 = vector.shape_cast %143 : vector<4x8xf32> to vector<4x8x1xf32>
    %145 = vector.broadcast %144 : vector<4x8x1xf32> to vector<4x8x8xf32>
    %146 = arith.divf %142, %145 : vector<4x8x8xf32>
    %c0_45 = arith.constant 0 : index
    %c0_46 = arith.constant 0 : index
    %c0_47 = arith.constant 0 : index
    %c0_48 = arith.constant 0 : index
    %147 = vector.load %arg39[%c0_45, %c0_46, %c0_47, %c0_48] : memref<1x4x8x8xf32, #tpu.memory_space<vmem>>, vector<1x4x8x8xf32>
    %148 = vector.shape_cast %147 : vector<1x4x8x8xf32> to vector<4x8x8xf32>
    %149 = vector.shape_cast %146 : vector<4x8x8xf32> to vector<1x4x8x8xf32>
    tpu.vector_store %arg39[%c0_45, %c0_46, %c0_47, %c0_48], %149 {strides = array<i32>} : memref<1x4x8x8xf32, #tpu.memory_space<vmem>>, vector<1x4x8x8xf32>,
    %150 = arith.truncf %146 : vector<4x8x8xf32> to vector<4x8x8xbf16>
    %151 = arith.truncf %77 : vector<4x8x8xf32> to vector<4x8x8xbf16>
    "tpu.trace_start"() <{level = 10 : i32, message = "hqk,hkd->hqd"}> : () -> ()
    %cst_49 = arith.constant dense<0.000000e+00> : vector<4x8x8xf32>
    %152 = tpu.matmul %150, %151, %cst_49 {dimension_numbers = #tpu.dot_dimension_numbers<[2], [1], [1], [2], [0, 0, 0, 1, 1, 2], [0], [0]>} : vector<4x8x8xbf16>, vector<4x8x8xbf16>, vector<4x8x8xf32> -> vector<4x8x8xf32>
    "tpu.trace_stop"() : () -> ()
    %153 = vector.extract_strided_slice %152 {offsets = [0, 0, 0], sizes = [1, 8, 8], strides = [1, 1, 1]} : vector<4x8x8xf32> to vector<1x8x8xf32>
    %154 = vector.shape_cast %153 : vector<1x8x8xf32> to vector<8x8xf32>
    %c0_50 = arith.constant 0 : index
    %c0_51 = arith.constant 0 : index
    %155 = vector.load %arg41[%c0_50, %c0_51] : memref<8x32xf32, #tpu.memory_space<vmem>>, vector<8x8xf32>
    tpu.vector_store %arg41[%c0_50, %c0_51], %154 {strides = array<i32>} : memref<8x32xf32, #tpu.memory_space<vmem>>, vector<8x8xf32>,
    %156 = vector.extract_strided_slice %152 {offsets = [1, 0, 0], sizes = [1, 8, 8], strides = [1, 1, 1]} : vector<4x8x8xf32> to vector<1x8x8xf32>
    %157 = vector.shape_cast %156 : vector<1x8x8xf32> to vector<8x8xf32>
    %c0_52 = arith.constant 0 : index
    %c8 = arith.constant 8 : index
    %158 = vector.load %arg41[%c0_52, %c8] : memref<8x32xf32, #tpu.memory_space<vmem>>, vector<8x8xf32>
    tpu.vector_store %arg41[%c0_52, %c8], %157 {strides = array<i32>} : memref<8x32xf32, #tpu.memory_space<vmem>>, vector<8x8xf32>,
    %159 = vector.extract_strided_slice %152 {offsets = [2, 0, 0], sizes = [1, 8, 8], strides = [1, 1, 1]} : vector<4x8x8xf32> to vector<1x8x8xf32>
    %160 = vector.shape_cast %159 : vector<1x8x8xf32> to vector<8x8xf32>
    %c0_53 = arith.constant 0 : index
    %c16 = arith.constant 16 : index
    %161 = vector.load %arg41[%c0_53, %c16] : memref<8x32xf32, #tpu.memory_space<vmem>>, vector<8x8xf32>
    tpu.vector_store %arg41[%c0_53, %c16], %160 {strides = array<i32>} : memref<8x32xf32, #tpu.memory_space<vmem>>, vector<8x8xf32>,
    %162 = vector.extract_strided_slice %152 {offsets = [3, 0, 0], sizes = [1, 8, 8], strides = [1, 1, 1]} : vector<4x8x8xf32> to vector<1x8x8xf32>
    %163 = vector.shape_cast %162 : vector<1x8x8xf32> to vector<8x8xf32>
    %c0_54 = arith.constant 0 : index
    %c24 = arith.constant 24 : index
    %164 = vector.load %arg41[%c0_54, %c24] : memref<8x32xf32, #tpu.memory_space<vmem>>, vector<8x8xf32>
    tpu.vector_store %arg41[%c0_54, %c24], %163 {strides = array<i32>} : memref<8x32xf32, #tpu.memory_space<vmem>>, vector<8x8xf32>,
    %c0_55 = arith.constant 0 : index
    %c0_56 = arith.constant 0 : index
    %165 = vector.load %arg41[%c0_55, %c0_56] : memref<8x32xf32, #tpu.memory_space<vmem>>, vector<8x32xf32>
    %166 = arith.truncf %165 : vector<8x32xf32> to vector<8x32xbf16>
    %c0_57 = arith.constant 0 : index
    %c0_58 = arith.constant 0 : index
    %167 = vector.load %arg5[%c0_57, %c0_58] : memref<32x32xbf16, #tpu.memory_space<vmem>>, vector<32x32xbf16>
    %cst_59 = arith.constant dense<0.000000e+00> : vector<8x32xf32>
    %168 = tpu.matmul %166, %167, %cst_59 {dimension_numbers = #tpu.dot_dimension_numbers<[1], [0], [0], [1], [0, 0, 1, 1], [], []>} : vector<8x32xbf16>, vector<32x32xbf16>, vector<8x32xf32> -> vector<8x32xf32>
    %c0_60 = arith.constant 0 : index
    %c0_61 = arith.constant 0 : index
    %169 = vector.load %arg11[%c0_60, %c0_61] : memref<1x32xf32, #tpu.memory_space<vmem>>, vector<1x32xf32>
    %170 = arith.mulf %168, %168 : vector<8x32xf32>
    %cst_62 = arith.constant dense<0.000000e+00> : vector<8xf32>
    %171 = vector.multi_reduction <add>, %170, %cst_62 [1] : vector<8x32xf32> to vector<8xf32>
    %172 = vector.shape_cast %171 : vector<8xf32> to vector<8x1xf32>
    %cst_63 = arith.constant 3.200000e+01 : f32
    %173 = vector.broadcast %cst_63 : f32 to vector<8x1xf32>
    %174 = arith.divf %172, %173 : vector<8x1xf32>
    %cst_64 = arith.constant 9.99999997E-7 : f32
    %175 = vector.broadcast %cst_64 : f32 to vector<8x1xf32>
    %176 = arith.addf %174, %175 : vector<8x1xf32>
    %177 = math.rsqrt %176 : vector<8x1xf32>
    %178 = vector.broadcast %177 : vector<8x1xf32> to vector<8x32xf32>
    %179 = arith.mulf %168, %178 : vector<8x32xf32>
    %cst_65 = arith.constant 1.000000e+00 : f32
    %180 = vector.broadcast %cst_65 : f32 to vector<1x32xf32>
    %181 = arith.addf %180, %169 : vector<1x32xf32>
    %182 = vector.broadcast %181 : vector<1x32xf32> to vector<8x32xf32>
    %183 = arith.mulf %179, %182 : vector<8x32xf32>
    %184 = arith.addf %1, %183 : vector<8x32xf32>
    %c0_66 = arith.constant 0 : index
    %c0_67 = arith.constant 0 : index
    %185 = vector.load %arg12[%c0_66, %c0_67] : memref<1x32xf32, #tpu.memory_space<vmem>>, vector<1x32xf32>
    %186 = arith.mulf %184, %184 : vector<8x32xf32>
    %cst_68 = arith.constant dense<0.000000e+00> : vector<8xf32>
    %187 = vector.multi_reduction <add>, %186, %cst_68 [1] : vector<8x32xf32> to vector<8xf32>
    %188 = vector.shape_cast %187 : vector<8xf32> to vector<8x1xf32>
    %cst_69 = arith.constant 3.200000e+01 : f32
    %189 = vector.broadcast %cst_69 : f32 to vector<8x1xf32>
    %190 = arith.divf %188, %189 : vector<8x1xf32>
    %cst_70 = arith.constant 9.99999997E-7 : f32
    %191 = vector.broadcast %cst_70 : f32 to vector<8x1xf32>
    %192 = arith.addf %190, %191 : vector<8x1xf32>
    %193 = math.rsqrt %192 : vector<8x1xf32>
    %194 = vector.broadcast %193 : vector<8x1xf32> to vector<8x32xf32>
    %195 = arith.mulf %184, %194 : vector<8x32xf32>
    %cst_71 = arith.constant 1.000000e+00 : f32
    %196 = vector.broadcast %cst_71 : f32 to vector<1x32xf32>
    %197 = arith.addf %196, %185 : vector<1x32xf32>
    %198 = vector.broadcast %197 : vector<1x32xf32> to vector<8x32xf32>
    %199 = arith.mulf %195, %198 : vector<8x32xf32>
    %200 = arith.truncf %199 : vector<8x32xf32> to vector<8x32xbf16>
    %c0_72 = arith.constant 0 : index
    %c0_73 = arith.constant 0 : index
    %201 = vector.load %arg14[%c0_72, %c0_73] : memref<32x128xbf16, #tpu.memory_space<vmem>>, vector<32x128xbf16>
    %cst_74 = arith.constant dense<0.000000e+00> : vector<8x128xf32>
    %202 = tpu.matmul %200, %201, %cst_74 {dimension_numbers = #tpu.dot_dimension_numbers<[1], [0], [0], [1], [0, 0, 1, 1], [], []>} : vector<8x32xbf16>, vector<32x128xbf16>, vector<8x128xf32> -> vector<8x128xf32>
    %203 = vector.extract_strided_slice %202 {offsets = [0, 0], sizes = [8, 64], strides = [1, 1]} : vector<8x128xf32> to vector<8x64xf32>
    %204 = arith.mulf %203, %203 : vector<8x64xf32>
    %205 = arith.mulf %203, %204 : vector<8x64xf32>
    %cst_75 = arith.constant 4.471500e-02 : f32
    %206 = vector.broadcast %cst_75 : f32 to vector<8x64xf32>
    %207 = arith.mulf %206, %205 : vector<8x64xf32>
    %208 = arith.addf %203, %207 : vector<8x64xf32>
    %cst_76 = arith.constant 0.797884583 : f32
    %209 = vector.broadcast %cst_76 : f32 to vector<8x64xf32>
    %210 = arith.mulf %209, %208 : vector<8x64xf32>
    %211 = math.tanh %210 : vector<8x64xf32>
    %cst_77 = arith.constant 1.000000e+00 : f32
    %212 = vector.broadcast %cst_77 : f32 to vector<8x64xf32>
    %213 = arith.addf %212, %211 : vector<8x64xf32>
    %cst_78 = arith.constant 5.000000e-01 : f32
    %214 = vector.broadcast %cst_78 : f32 to vector<8x64xf32>
    %215 = arith.mulf %214, %213 : vector<8x64xf32>
    %216 = arith.mulf %203, %215 : vector<8x64xf32>
    %217 = vector.extract_strided_slice %202 {offsets = [0, 64], sizes = [8, 64], strides = [1, 1]} : vector<8x128xf32> to vector<8x64xf32>
    %218 = arith.mulf %216, %217 : vector<8x64xf32>
    %219 = arith.truncf %218 : vector<8x64xf32> to vector<8x64xbf16>
    %c0_79 = arith.constant 0 : index
    %c0_80 = arith.constant 0 : index
    %220 = vector.load %arg15[%c0_79, %c0_80] : memref<64x32xbf16, #tpu.memory_space<vmem>>, vector<64x32xbf16>
    %cst_81 = arith.constant dense<0.000000e+00> : vector<8x32xf32>
    %221 = tpu.matmul %219, %220, %cst_81 {dimension_numbers = #tpu.dot_dimension_numbers<[1], [0], [0], [1], [0, 0, 1, 1], [], []>} : vector<8x64xbf16>, vector<64x32xbf16>, vector<8x32xf32> -> vector<8x32xf32>
    %c0_82 = arith.constant 0 : index
    %c0_83 = arith.constant 0 : index
    %222 = vector.load %arg13[%c0_82, %c0_83] : memref<1x32xf32, #tpu.memory_space<vmem>>, vector<1x32xf32>
    %223 = arith.mulf %221, %221 : vector<8x32xf32>
    %cst_84 = arith.constant dense<0.000000e+00> : vector<8xf32>
    %224 = vector.multi_reduction <add>, %223, %cst_84 [1] : vector<8x32xf32> to vector<8xf32>
    %225 = vector.shape_cast %224 : vector<8xf32> to vector<8x1xf32>
    %cst_85 = arith.constant 3.200000e+01 : f32
    %226 = vector.broadcast %cst_85 : f32 to vector<8x1xf32>
    %227 = arith.divf %225, %226 : vector<8x1xf32>
    %cst_86 = arith.constant 9.99999997E-7 : f32
    %228 = vector.broadcast %cst_86 : f32 to vector<8x1xf32>
    %229 = arith.addf %227, %228 : vector<8x1xf32>
    %230 = math.rsqrt %229 : vector<8x1xf32>
    %231 = vector.broadcast %230 : vector<8x1xf32> to vector<8x32xf32>
    %232 = arith.mulf %221, %231 : vector<8x32xf32>
    %cst_87 = arith.constant 1.000000e+00 : f32
    %233 = vector.broadcast %cst_87 : f32 to vector<1x32xf32>
    %234 = arith.addf %233, %222 : vector<1x32xf32>
    %235 = vector.broadcast %234 : vector<1x32xf32> to vector<8x32xf32>
    %236 = arith.mulf %232, %235 : vector<8x32xf32>
    %237 = arith.addf %184, %236 : vector<8x32xf32>
    %c0_88 = arith.constant 0 : index
    %c0_89 = arith.constant 0 : index
    %c0_90 = arith.constant 0 : index
    %238 = vector.load %arg36[%c0_88, %c0_89, %c0_90] : memref<1x8x32xf32, #tpu.memory_space<vmem>>, vector<1x8x32xf32>
    %239 = vector.shape_cast %238 : vector<1x8x32xf32> to vector<8x32xf32>
    %240 = vector.shape_cast %237 : vector<8x32xf32> to vector<1x8x32xf32>
    tpu.vector_store %arg36[%c0_88, %c0_89, %c0_90], %240 {strides = array<i32>} : memref<1x8x32xf32, #tpu.memory_space<vmem>>, vector<1x8x32xf32>,
    %c0_91 = arith.constant 0 : index
    %c0_92 = arith.constant 0 : index
    %241 = vector.load %arg18[%c0_91, %c0_92] : memref<1x32xf32, #tpu.memory_space<vmem>>, vector<1x32xf32>
    %242 = arith.mulf %237, %237 : vector<8x32xf32>
    %cst_93 = arith.constant dense<0.000000e+00> : vector<8xf32>
    %243 = vector.multi_reduction <add>, %242, %cst_93 [1] : vector<8x32xf32> to vector<8xf32>
    %244 = vector.shape_cast %243 : vector<8xf32> to vector<8x1xf32>
    %cst_94 = arith.constant 3.200000e+01 : f32
    %245 = vector.broadcast %cst_94 : f32 to vector<8x1xf32>
    %246 = arith.divf %244, %245 : vector<8x1xf32>
    %cst_95 = arith.constant 9.99999997E-7 : f32
    %247 = vector.broadcast %cst_95 : f32 to vector<8x1xf32>
    %248 = arith.addf %246, %247 : vector<8x1xf32>
    %249 = math.rsqrt %248 : vector<8x1xf32>
    %250 = vector.broadcast %249 : vector<8x1xf32> to vector<8x32xf32>
    %251 = arith.mulf %237, %250 : vector<8x32xf32>
    %cst_96 = arith.constant 1.000000e+00 : f32
    %252 = vector.broadcast %cst_96 : f32 to vector<1x32xf32>
    %253 = arith.addf %252, %241 : vector<1x32xf32>
    %254 = vector.broadcast %253 : vector<1x32xf32> to vector<8x32xf32>
    %255 = arith.mulf %251, %254 : vector<8x32xf32>
    %256 = arith.truncf %255 : vector<8x32xf32> to vector<8x32xbf16>
    %257 = vector.shape_cast %256 : vector<8x32xbf16> to vector<1x8x32xbf16>
    %258 = vector.shape_cast %257 : vector<1x8x32xbf16> to vector<1x8x32xbf16>
    %259 = vector.broadcast %258 : vector<1x8x32xbf16> to vector<8x8x32xbf16>
    %c0_97 = arith.constant 0 : index
    %c0_98 = arith.constant 0 : index
    %c0_99 = arith.constant 0 : index
    %260 = vector.load %arg16[%c0_97, %c0_98, %c0_99] : memref<8x32x8xbf16, #tpu.memory_space<vmem>>, vector<8x32x8xbf16>
    "tpu.trace_start"() <{level = 10 : i32, message = "hsd,hdx->hsx"}> : () -> ()
    %cst_100 = arith.constant dense<0.000000e+00> : vector<8x8x8xf32>
    %261 = tpu.matmul %259, %260, %cst_100 {dimension_numbers = #tpu.dot_dimension_numbers<[2], [1], [1], [2], [0, 0, 0, 1, 1, 2], [0], [0]>} : vector<8x8x32xbf16>, vector<8x32x8xbf16>, vector<8x8x8xf32> -> vector<8x8x8xf32>
    "tpu.trace_stop"() : () -> ()
    %262 = vector.extract_strided_slice %261 {offsets = [0, 0, 0], sizes = [4, 8, 8], strides = [1, 1, 1]} : vector<8x8x8xf32> to vector<4x8x8xf32>
    %263 = vector.extract_strided_slice %261 {offsets = [4, 0, 0], sizes = [2, 8, 8], strides = [1, 1, 1]} : vector<8x8x8xf32> to vector<2x8x8xf32>
    %264 = vector.extract_strided_slice %261 {offsets = [6, 0, 0], sizes = [2, 8, 8], strides = [1, 1, 1]} : vector<8x8x8xf32> to vector<2x8x8xf32>
    %265 = vector.extract_strided_slice %262 {offsets = [0, 0, 0], sizes = [4, 8, 4], strides = [1, 1, 1]} : vector<4x8x8xf32> to vector<4x8x4xf32>
    %266 = vector.extract_strided_slice %262 {offsets = [0, 0, 4], sizes = [4, 8, 4], strides = [1, 1, 1]} : vector<4x8x8xf32> to vector<4x8x4xf32>
    %267 = vector.extract_strided_slice %263 {offsets = [0, 0, 0], sizes = [2, 8, 4], strides = [1, 1, 1]} : vector<2x8x8xf32> to vector<2x8x4xf32>
    %268 = vector.extract_strided_slice %263 {offsets = [0, 0, 4], sizes = [2, 8, 4], strides = [1, 1, 1]} : vector<2x8x8xf32> to vector<2x8x4xf32>
    %269 = vector.shape_cast %2 : vector<8x4xf32> to vector<1x8x4xf32>
    %270 = vector.broadcast %269 : vector<1x8x4xf32> to vector<4x8x4xf32>
    %271 = arith.mulf %265, %270 : vector<4x8x4xf32>
    %272 = vector.shape_cast %3 : vector<8x4xf32> to vector<1x8x4xf32>
    %273 = vector.broadcast %272 : vector<1x8x4xf32> to vector<4x8x4xf32>
    %274 = arith.mulf %266, %273 : vector<4x8x4xf32>
    %275 = arith.subf %271, %274 : vector<4x8x4xf32>
    %276 = vector.shape_cast %2 : vector<8x4xf32> to vector<1x8x4xf32>
    %277 = vector.broadcast %276 : vector<1x8x4xf32> to vector<4x8x4xf32>
    %278 = arith.mulf %266, %277 : vector<4x8x4xf32>
    %279 = vector.shape_cast %3 : vector<8x4xf32> to vector<1x8x4xf32>
    %280 = vector.broadcast %279 : vector<1x8x4xf32> to vector<4x8x4xf32>
    %281 = arith.mulf %265, %280 : vector<4x8x4xf32>
    %282 = arith.addf %278, %281 : vector<4x8x4xf32>
    %283 = vector.shape_cast %2 : vector<8x4xf32> to vector<1x8x4xf32>
    %284 = vector.broadcast %283 : vector<1x8x4xf32> to vector<2x8x4xf32>
    %285 = arith.mulf %267, %284 : vector<2x8x4xf32>
    %286 = vector.shape_cast %3 : vector<8x4xf32> to vector<1x8x4xf32>
    %287 = vector.broadcast %286 : vector<1x8x4xf32> to vector<2x8x4xf32>
    %288 = arith.mulf %268, %287 : vector<2x8x4xf32>
    %289 = arith.subf %285, %288 : vector<2x8x4xf32>
    %290 = vector.shape_cast %2 : vector<8x4xf32> to vector<1x8x4xf32>
    %291 = vector.broadcast %290 : vector<1x8x4xf32> to vector<2x8x4xf32>
    %292 = arith.mulf %268, %291 : vector<2x8x4xf32>
    %293 = vector.shape_cast %3 : vector<8x4xf32> to vector<1x8x4xf32>
    %294 = vector.broadcast %293 : vector<1x8x4xf32> to vector<2x8x4xf32>
    %295 = arith.mulf %267, %294 : vector<2x8x4xf32>
    %296 = arith.addf %292, %295 : vector<2x8x4xf32>
    %297 = vector.extract_strided_slice %289 {offsets = [0, 0, 0], sizes = [1, 8, 4], strides = [1, 1, 1]} : vector<2x8x4xf32> to vector<1x8x4xf32>
    %298 = vector.extract_strided_slice %289 {offsets = [0, 0, 0], sizes = [1, 8, 4], strides = [1, 1, 1]} : vector<2x8x4xf32> to vector<1x8x4xf32>
    %299 = vector.extract_strided_slice %289 {offsets = [1, 0, 0], sizes = [1, 8, 4], strides = [1, 1, 1]} : vector<2x8x4xf32> to vector<1x8x4xf32>
    %300 = vector.extract_strided_slice %289 {offsets = [1, 0, 0], sizes = [1, 8, 4], strides = [1, 1, 1]} : vector<2x8x4xf32> to vector<1x8x4xf32>
    %301 = tpu.concatenate %297, %298, %299, %300 in 0 : vector<1x8x4xf32>, vector<1x8x4xf32>, vector<1x8x4xf32>, vector<1x8x4xf32> -> vector<4x8x4xf32>
    %302 = vector.extract_strided_slice %296 {offsets = [0, 0, 0], sizes = [1, 8, 4], strides = [1, 1, 1]} : vector<2x8x4xf32> to vector<1x8x4xf32>
    %303 = vector.extract_strided_slice %296 {offsets = [0, 0, 0], sizes = [1, 8, 4], strides = [1, 1, 1]} : vector<2x8x4xf32> to vector<1x8x4xf32>
    %304 = vector.extract_strided_slice %296 {offsets = [1, 0, 0], sizes = [1, 8, 4], strides = [1, 1, 1]} : vector<2x8x4xf32> to vector<1x8x4xf32>
    %305 = vector.extract_strided_slice %296 {offsets = [1, 0, 0], sizes = [1, 8, 4], strides = [1, 1, 1]} : vector<2x8x4xf32> to vector<1x8x4xf32>
    %306 = tpu.concatenate %302, %303, %304, %305 in 0 : vector<1x8x4xf32>, vector<1x8x4xf32>, vector<1x8x4xf32>, vector<1x8x4xf32> -> vector<4x8x4xf32>
    %307 = vector.extract_strided_slice %264 {offsets = [0, 0, 0], sizes = [1, 8, 8], strides = [1, 1, 1]} : vector<2x8x8xf32> to vector<1x8x8xf32>
    %308 = vector.extract_strided_slice %264 {offsets = [0, 0, 0], sizes = [1, 8, 8], strides = [1, 1, 1]} : vector<2x8x8xf32> to vector<1x8x8xf32>
    %309 = vector.extract_strided_slice %264 {offsets = [1, 0, 0], sizes = [1, 8, 8], strides = [1, 1, 1]} : vector<2x8x8xf32> to vector<1x8x8xf32>
    %310 = vector.extract_strided_slice %264 {offsets = [1, 0, 0], sizes = [1, 8, 8], strides = [1, 1, 1]} : vector<2x8x8xf32> to vector<1x8x8xf32>
    %311 = tpu.concatenate %307, %308, %309, %310 in 0 : vector<1x8x8xf32>, vector<1x8x8xf32>, vector<1x8x8xf32>, vector<1x8x8xf32> -> vector<4x8x8xf32>
    %312 = arith.truncf %275 : vector<4x8x4xf32> to vector<4x8x4xbf16>
    %313 = arith.truncf %301 : vector<4x8x4xf32> to vector<4x8x4xbf16>
    "tpu.trace_start"() <{level = 10 : i32, message = "hqd,hkd->hqk"}> : () -> ()
    %cst_101 = arith.constant dense<0.000000e+00> : vector<4x8x8xf32>
    %314 = tpu.matmul %312, %313, %cst_101 {dimension_numbers = #tpu.dot_dimension_numbers<[2], [2], [1], [1], [0, 0, 0, 1, 1, 1], [0], [0]>} : vector<4x8x4xbf16>, vector<4x8x4xbf16>, vector<4x8x8xf32> -> vector<4x8x8xf32>
    "tpu.trace_stop"() : () -> ()
    %315 = arith.truncf %282 : vector<4x8x4xf32> to vector<4x8x4xbf16>
    %316 = arith.truncf %306 : vector<4x8x4xf32> to vector<4x8x4xbf16>
    "tpu.trace_start"() <{level = 10 : i32, message = "hqd,hkd->hqk"}> : () -> ()
    %cst_102 = arith.constant dense<0.000000e+00> : vector<4x8x8xf32>
    %317 = tpu.matmul %315, %316, %cst_102 {dimension_numbers = #tpu.dot_dimension_numbers<[2], [2], [1], [1], [0, 0, 0, 1, 1, 1], [0], [0]>} : vector<4x8x4xbf16>, vector<4x8x4xbf16>, vector<4x8x8xf32> -> vector<4x8x8xf32>
    "tpu.trace_stop"() : () -> ()
    %318 = arith.addf %314, %317 : vector<4x8x8xf32>
    %cst_103 = arith.constant 0.353553385 : f32
    %319 = vector.broadcast %cst_103 : f32 to vector<4x8x8xf32>
    %320 = arith.mulf %318, %319 : vector<4x8x8xf32>
    %cst_104 = arith.constant -2.38197633E+38 : f32
    %321 = vector.shape_cast %6 : vector<8x8xi1> to vector<1x8x8xi1>
    %322 = vector.broadcast %321 : vector<1x8x8xi1> to vector<4x8x8xi1>
    %323 = vector.broadcast %cst_104 : f32 to vector<4x8x8xf32>
    %324 = arith.select %322, %320, %323 : vector<4x8x8xi1>, vector<4x8x8xf32>
    %cst_105 = arith.constant dense<0xFF800000> : vector<4x8xf32>
    %325 = vector.multi_reduction <maximumf>, %324, %cst_105 [2] : vector<4x8x8xf32> to vector<4x8xf32>
    %326 = vector.shape_cast %325 : vector<4x8xf32> to vector<4x8x1xf32>
    %327 = vector.broadcast %326 : vector<4x8x1xf32> to vector<4x8x8xf32>
    %328 = arith.subf %324, %327 : vector<4x8x8xf32>
    %329 = math.exp %328 : vector<4x8x8xf32>
    %cst_106 = arith.constant dense<0.000000e+00> : vector<4x8xf32>
    %330 = vector.multi_reduction <add>, %329, %cst_106 [2] : vector<4x8x8xf32> to vector<4x8xf32>
    %331 = vector.shape_cast %330 : vector<4x8xf32> to vector<4x8x1xf32>
    %332 = tpu.reciprocal %331 {approx = true} : vector<4x8x1xf32> -> vector<4x8x1xf32>
    %333 = vector.broadcast %332 : vector<4x8x1xf32> to vector<4x8x8xf32>
    %334 = arith.mulf %329, %333 : vector<4x8x8xf32>
    %335 = arith.truncf %334 : vector<4x8x8xf32> to vector<4x8x8xbf16>
    %336 = arith.truncf %311 : vector<4x8x8xf32> to vector<4x8x8xbf16>
    "tpu.trace_start"() <{level = 10 : i32, message = "hqk,hkd->hqd"}> : () -> ()
    %cst_107 = arith.constant dense<0.000000e+00> : vector<4x8x8xf32>
    %337 = tpu.matmul %335, %336, %cst_107 {dimension_numbers = #tpu.dot_dimension_numbers<[2], [1], [1], [2], [0, 0, 0, 1, 1, 2], [0], [0]>} : vector<4x8x8xbf16>, vector<4x8x8xbf16>, vector<4x8x8xf32> -> vector<4x8x8xf32>
    "tpu.trace_stop"() : () -> ()
    %338 = vector.extract_strided_slice %337 {offsets = [0, 0, 0], sizes = [1, 8, 8], strides = [1, 1, 1]} : vector<4x8x8xf32> to vector<1x8x8xf32>
    %339 = vector.shape_cast %338 : vector<1x8x8xf32> to vector<8x8xf32>
    %c0_108 = arith.constant 0 : index
    %c0_109 = arith.constant 0 : index
    %340 = vector.load %arg41[%c0_108, %c0_109] : memref<8x32xf32, #tpu.memory_space<vmem>>, vector<8x8xf32>
    tpu.vector_store %arg41[%c0_108, %c0_109], %339 {strides = array<i32>} : memref<8x32xf32, #tpu.memory_space<vmem>>, vector<8x8xf32>,
    %341 = vector.extract_strided_slice %337 {offsets = [1, 0, 0], sizes = [1, 8, 8], strides = [1, 1, 1]} : vector<4x8x8xf32> to vector<1x8x8xf32>
    %342 = vector.shape_cast %341 : vector<1x8x8xf32> to vector<8x8xf32>
    %c0_110 = arith.constant 0 : index
    %c8_111 = arith.constant 8 : index
    %343 = vector.load %arg41[%c0_110, %c8_111] : memref<8x32xf32, #tpu.memory_space<vmem>>, vector<8x8xf32>
    tpu.vector_store %arg41[%c0_110, %c8_111], %342 {strides = array<i32>} : memref<8x32xf32, #tpu.memory_space<vmem>>, vector<8x8xf32>,
    %344 = vector.extract_strided_slice %337 {offsets = [2, 0, 0], sizes = [1, 8, 8], strides = [1, 1, 1]} : vector<4x8x8xf32> to vector<1x8x8xf32>
    %345 = vector.shape_cast %344 : vector<1x8x8xf32> to vector<8x8xf32>
    %c0_112 = arith.constant 0 : index
    %c16_113 = arith.constant 16 : index
    %346 = vector.load %arg41[%c0_112, %c16_113] : memref<8x32xf32, #tpu.memory_space<vmem>>, vector<8x8xf32>
    tpu.vector_store %arg41[%c0_112, %c16_113], %345 {strides = array<i32>} : memref<8x32xf32, #tpu.memory_space<vmem>>, vector<8x8xf32>,
    %347 = vector.extract_strided_slice %337 {offsets = [3, 0, 0], sizes = [1, 8, 8], strides = [1, 1, 1]} : vector<4x8x8xf32> to vector<1x8x8xf32>
    %348 = vector.shape_cast %347 : vector<1x8x8xf32> to vector<8x8xf32>
    %c0_114 = arith.constant 0 : index
    %c24_115 = arith.constant 24 : index
    %349 = vector.load %arg41[%c0_114, %c24_115] : memref<8x32xf32, #tpu.memory_space<vmem>>, vector<8x8xf32>
    tpu.vector_store %arg41[%c0_114, %c24_115], %348 {strides = array<i32>} : memref<8x32xf32, #tpu.memory_space<vmem>>, vector<8x8xf32>,
    %c0_116 = arith.constant 0 : index
    %c0_117 = arith.constant 0 : index
    %350 = vector.load %arg41[%c0_116, %c0_117] : memref<8x32xf32, #tpu.memory_space<vmem>>, vector<8x32xf32>
    %351 = arith.truncf %350 : vector<8x32xf32> to vector<8x32xbf16>
    %c0_118 = arith.constant 0 : index
    %c0_119 = arith.constant 0 : index
    %352 = vector.load %arg17[%c0_118, %c0_119] : memref<32x32xbf16, #tpu.memory_space<vmem>>, vector<32x32xbf16>
    %cst_120 = arith.constant dense<0.000000e+00> : vector<8x32xf32>
    %353 = tpu.matmul %351, %352, %cst_120 {dimension_numbers = #tpu.dot_dimension_numbers<[1], [0], [0], [1], [0, 0, 1, 1], [], []>} : vector<8x32xbf16>, vector<32x32xbf16>, vector<8x32xf32> -> vector<8x32xf32>
    %c0_121 = arith.constant 0 : index
    %c0_122 = arith.constant 0 : index
    %354 = vector.load %arg19[%c0_121, %c0_122] : memref<1x32xf32, #tpu.memory_space<vmem>>, vector<1x32xf32>
    %355 = arith.mulf %353, %353 : vector<8x32xf32>
    %cst_123 = arith.constant dense<0.000000e+00> : vector<8xf32>
    %356 = vector.multi_reduction <add>, %355, %cst_123 [1] : vector<8x32xf32> to vector<8xf32>
    %357 = vector.shape_cast %356 : vector<8xf32> to vector<8x1xf32>
    %cst_124 = arith.constant 3.200000e+01 : f32
    %358 = vector.broadcast %cst_124 : f32 to vector<8x1xf32>
    %359 = arith.divf %357, %358 : vector<8x1xf32>
    %cst_125 = arith.constant 9.99999997E-7 : f32
    %360 = vector.broadcast %cst_125 : f32 to vector<8x1xf32>
    %361 = arith.addf %359, %360 : vector<8x1xf32>
    %362 = math.rsqrt %361 : vector<8x1xf32>
    %363 = vector.broadcast %362 : vector<8x1xf32> to vector<8x32xf32>
    %364 = arith.mulf %353, %363 : vector<8x32xf32>
    %cst_126 = arith.constant 1.000000e+00 : f32
    %365 = vector.broadcast %cst_126 : f32 to vector<1x32xf32>
    %366 = arith.addf %365, %354 : vector<1x32xf32>
    %367 = vector.broadcast %366 : vector<1x32xf32> to vector<8x32xf32>
    %368 = arith.mulf %364, %367 : vector<8x32xf32>
    %369 = arith.addf %237, %368 : vector<8x32xf32>
    %c0_127 = arith.constant 0 : index
    %c0_128 = arith.constant 0 : index
    %370 = vector.load %arg20[%c0_127, %c0_128] : memref<1x32xf32, #tpu.memory_space<vmem>>, vector<1x32xf32>
    %371 = arith.mulf %369, %369 : vector<8x32xf32>
    %cst_129 = arith.constant dense<0.000000e+00> : vector<8xf32>
    %372 = vector.multi_reduction <add>, %371, %cst_129 [1] : vector<8x32xf32> to vector<8xf32>
    %373 = vector.shape_cast %372 : vector<8xf32> to vector<8x1xf32>
    %cst_130 = arith.constant 3.200000e+01 : f32
    %374 = vector.broadcast %cst_130 : f32 to vector<8x1xf32>
    %375 = arith.divf %373, %374 : vector<8x1xf32>
    %cst_131 = arith.constant 9.99999997E-7 : f32
    %376 = vector.broadcast %cst_131 : f32 to vector<8x1xf32>
    %377 = arith.addf %375, %376 : vector<8x1xf32>
    %378 = math.rsqrt %377 : vector<8x1xf32>
    %379 = vector.broadcast %378 : vector<8x1xf32> to vector<8x32xf32>
    %380 = arith.mulf %369, %379 : vector<8x32xf32>
    %cst_132 = arith.constant 1.000000e+00 : f32
    %381 = vector.broadcast %cst_132 : f32 to vector<1x32xf32>
    %382 = arith.addf %381, %370 : vector<1x32xf32>
    %383 = vector.broadcast %382 : vector<1x32xf32> to vector<8x32xf32>
    %384 = arith.mulf %380, %383 : vector<8x32xf32>
    %385 = arith.truncf %384 : vector<8x32xf32> to vector<8x32xbf16>
    %c0_133 = arith.constant 0 : index
    %c0_134 = arith.constant 0 : index
    %386 = vector.load %arg22[%c0_133, %c0_134] : memref<32x128xbf16, #tpu.memory_space<vmem>>, vector<32x128xbf16>
    %cst_135 = arith.constant dense<0.000000e+00> : vector<8x128xf32>
    %387 = tpu.matmul %385, %386, %cst_135 {dimension_numbers = #tpu.dot_dimension_numbers<[1], [0], [0], [1], [0, 0, 1, 1], [], []>} : vector<8x32xbf16>, vector<32x128xbf16>, vector<8x128xf32> -> vector<8x128xf32>
    %388 = vector.extract_strided_slice %387 {offsets = [0, 0], sizes = [8, 64], strides = [1, 1]} : vector<8x128xf32> to vector<8x64xf32>
    %389 = arith.mulf %388, %388 : vector<8x64xf32>
    %390 = arith.mulf %388, %389 : vector<8x64xf32>
    %cst_136 = arith.constant 4.471500e-02 : f32
    %391 = vector.broadcast %cst_136 : f32 to vector<8x64xf32>
    %392 = arith.mulf %391, %390 : vector<8x64xf32>
    %393 = arith.addf %388, %392 : vector<8x64xf32>
    %cst_137 = arith.constant 0.797884583 : f32
    %394 = vector.broadcast %cst_137 : f32 to vector<8x64xf32>
    %395 = arith.mulf %394, %393 : vector<8x64xf32>
    %396 = math.tanh %395 : vector<8x64xf32>
    %cst_138 = arith.constant 1.000000e+00 : f32
    %397 = vector.broadcast %cst_138 : f32 to vector<8x64xf32>
    %398 = arith.addf %397, %396 : vector<8x64xf32>
    %cst_139 = arith.constant 5.000000e-01 : f32
    %399 = vector.broadcast %cst_139 : f32 to vector<8x64xf32>
    %400 = arith.mulf %399, %398 : vector<8x64xf32>
    %401 = arith.mulf %388, %400 : vector<8x64xf32>
    %402 = vector.extract_strided_slice %387 {offsets = [0, 64], sizes = [8, 64], strides = [1, 1]} : vector<8x128xf32> to vector<8x64xf32>
    %403 = arith.mulf %401, %402 : vector<8x64xf32>
    %404 = arith.truncf %403 : vector<8x64xf32> to vector<8x64xbf16>
    %c0_140 = arith.constant 0 : index
    %c0_141 = arith.constant 0 : index
    %405 = vector.load %arg23[%c0_140, %c0_141] : memref<64x32xbf16, #tpu.memory_space<vmem>>, vector<64x32xbf16>
    %cst_142 = arith.constant dense<0.000000e+00> : vector<8x32xf32>
    %406 = tpu.matmul %404, %405, %cst_142 {dimension_numbers = #tpu.dot_dimension_numbers<[1], [0], [0], [1], [0, 0, 1, 1], [], []>} : vector<8x64xbf16>, vector<64x32xbf16>, vector<8x32xf32> -> vector<8x32xf32>
    %c0_143 = arith.constant 0 : index
    %c0_144 = arith.constant 0 : index
    %407 = vector.load %arg21[%c0_143, %c0_144] : memref<1x32xf32, #tpu.memory_space<vmem>>, vector<1x32xf32>
    %408 = arith.mulf %406, %406 : vector<8x32xf32>
    %cst_145 = arith.constant dense<0.000000e+00> : vector<8xf32>
    %409 = vector.multi_reduction <add>, %408, %cst_145 [1] : vector<8x32xf32> to vector<8xf32>
    %410 = vector.shape_cast %409 : vector<8xf32> to vector<8x1xf32>
    %cst_146 = arith.constant 3.200000e+01 : f32
    %411 = vector.broadcast %cst_146 : f32 to vector<8x1xf32>
    %412 = arith.divf %410, %411 : vector<8x1xf32>
    %cst_147 = arith.constant 9.99999997E-7 : f32
    %413 = vector.broadcast %cst_147 : f32 to vector<8x1xf32>
    %414 = arith.addf %412, %413 : vector<8x1xf32>
    %415 = math.rsqrt %414 : vector<8x1xf32>
    %416 = vector.broadcast %415 : vector<8x1xf32> to vector<8x32xf32>
    %417 = arith.mulf %406, %416 : vector<8x32xf32>
    %cst_148 = arith.constant 1.000000e+00 : f32
    %418 = vector.broadcast %cst_148 : f32 to vector<1x32xf32>
    %419 = arith.addf %418, %407 : vector<1x32xf32>
    %420 = vector.broadcast %419 : vector<1x32xf32> to vector<8x32xf32>
    %421 = arith.mulf %417, %420 : vector<8x32xf32>
    %422 = arith.addf %369, %421 : vector<8x32xf32>
    %c0_149 = arith.constant 0 : index
    %c0_150 = arith.constant 0 : index
    %c0_151 = arith.constant 0 : index
    %423 = vector.load %arg37[%c0_149, %c0_150, %c0_151] : memref<1x8x32xf32, #tpu.memory_space<vmem>>, vector<1x8x32xf32>
    %424 = vector.shape_cast %423 : vector<1x8x32xf32> to vector<8x32xf32>
    %425 = vector.shape_cast %422 : vector<8x32xf32> to vector<1x8x32xf32>
    tpu.vector_store %arg37[%c0_149, %c0_150, %c0_151], %425 {strides = array<i32>} : memref<1x8x32xf32, #tpu.memory_space<vmem>>, vector<1x8x32xf32>,
    %c0_152 = arith.constant 0 : index
    %c0_153 = arith.constant 0 : index
    %426 = vector.load %arg30[%c0_152, %c0_153] : memref<1x32xf32, #tpu.memory_space<vmem>>, vector<1x32xf32>
    %427 = arith.mulf %422, %422 : vector<8x32xf32>
    %cst_154 = arith.constant dense<0.000000e+00> : vector<8xf32>
    %428 = vector.multi_reduction <add>, %427, %cst_154 [1] : vector<8x32xf32> to vector<8xf32>
    %429 = vector.shape_cast %428 : vector<8xf32> to vector<8x1xf32>
    %cst_155 = arith.constant 3.200000e+01 : f32
    %430 = vector.broadcast %cst_155 : f32 to vector<8x1xf32>
    %431 = arith.divf %429, %430 : vector<8x1xf32>
    %cst_156 = arith.constant 9.99999997E-7 : f32
    %432 = vector.broadcast %cst_156 : f32 to vector<8x1xf32>
    %433 = arith.addf %431, %432 : vector<8x1xf32>
    %434 = math.rsqrt %433 : vector<8x1xf32>
    %435 = vector.broadcast %434 : vector<8x1xf32> to vector<8x32xf32>
    %436 = arith.mulf %422, %435 : vector<8x32xf32>
    %cst_157 = arith.constant 1.000000e+00 : f32
    %437 = vector.broadcast %cst_157 : f32 to vector<1x32xf32>
    %438 = arith.addf %437, %426 : vector<1x32xf32>
    %439 = vector.broadcast %438 : vector<1x32xf32> to vector<8x32xf32>
    %440 = arith.mulf %436, %439 : vector<8x32xf32>
    %441 = arith.truncf %440 : vector<8x32xf32> to vector<8x32xbf16>
    %442 = vector.shape_cast %441 : vector<8x32xbf16> to vector<1x8x32xbf16>
    %443 = vector.shape_cast %442 : vector<1x8x32xbf16> to vector<1x8x32xbf16>
    %444 = vector.broadcast %443 : vector<1x8x32xbf16> to vector<8x8x32xbf16>
    %c0_158 = arith.constant 0 : index
    %c0_159 = arith.constant 0 : index
    %c0_160 = arith.constant 0 : index
    %445 = vector.load %arg24[%c0_158, %c0_159, %c0_160] : memref<8x32x8xbf16, #tpu.memory_space<vmem>>, vector<8x32x8xbf16>
    "tpu.trace_start"() <{level = 10 : i32, message = "hsd,hdx->hsx"}> : () -> ()
    %cst_161 = arith.constant dense<0.000000e+00> : vector<8x8x8xf32>
    %446 = tpu.matmul %444, %445, %cst_161 {dimension_numbers = #tpu.dot_dimension_numbers<[2], [1], [1], [2], [0, 0, 0, 1, 1, 2], [0], [0]>} : vector<8x8x32xbf16>, vector<8x32x8xbf16>, vector<8x8x8xf32> -> vector<8x8x8xf32>
    "tpu.trace_stop"() : () -> ()
    %447 = vector.extract_strided_slice %446 {offsets = [0, 0, 0], sizes = [4, 8, 8], strides = [1, 1, 1]} : vector<8x8x8xf32> to vector<4x8x8xf32>
    %448 = vector.extract_strided_slice %446 {offsets = [4, 0, 0], sizes = [2, 8, 8], strides = [1, 1, 1]} : vector<8x8x8xf32> to vector<2x8x8xf32>
    %449 = vector.extract_strided_slice %446 {offsets = [6, 0, 0], sizes = [2, 8, 8], strides = [1, 1, 1]} : vector<8x8x8xf32> to vector<2x8x8xf32>
    %450 = vector.extract_strided_slice %447 {offsets = [0, 0, 0], sizes = [4, 8, 4], strides = [1, 1, 1]} : vector<4x8x8xf32> to vector<4x8x4xf32>
    %451 = vector.extract_strided_slice %447 {offsets = [0, 0, 4], sizes = [4, 8, 4], strides = [1, 1, 1]} : vector<4x8x8xf32> to vector<4x8x4xf32>
    %452 = vector.extract_strided_slice %448 {offsets = [0, 0, 0], sizes = [2, 8, 4], strides = [1, 1, 1]} : vector<2x8x8xf32> to vector<2x8x4xf32>
    %453 = vector.extract_strided_slice %448 {offsets = [0, 0, 4], sizes = [2, 8, 4], strides = [1, 1, 1]} : vector<2x8x8xf32> to vector<2x8x4xf32>
    %454 = vector.shape_cast %2 : vector<8x4xf32> to vector<1x8x4xf32>
    %455 = vector.broadcast %454 : vector<1x8x4xf32> to vector<4x8x4xf32>
    %456 = arith.mulf %450, %455 : vector<4x8x4xf32>
    %457 = vector.shape_cast %3 : vector<8x4xf32> to vector<1x8x4xf32>
    %458 = vector.broadcast %457 : vector<1x8x4xf32> to vector<4x8x4xf32>
    %459 = arith.mulf %451, %458 : vector<4x8x4xf32>
    %460 = arith.subf %456, %459 : vector<4x8x4xf32>
    %461 = vector.shape_cast %2 : vector<8x4xf32> to vector<1x8x4xf32>
    %462 = vector.broadcast %461 : vector<1x8x4xf32> to vector<4x8x4xf32>
    %463 = arith.mulf %451, %462 : vector<4x8x4xf32>
    %464 = vector.shape_cast %3 : vector<8x4xf32> to vector<1x8x4xf32>
    %465 = vector.broadcast %464 : vector<1x8x4xf32> to vector<4x8x4xf32>
    %466 = arith.mulf %450, %465 : vector<4x8x4xf32>
    %467 = arith.addf %463, %466 : vector<4x8x4xf32>
    %468 = vector.shape_cast %2 : vector<8x4xf32> to vector<1x8x4xf32>
    %469 = vector.broadcast %468 : vector<1x8x4xf32> to vector<2x8x4xf32>
    %470 = arith.mulf %452, %469 : vector<2x8x4xf32>
    %471 = vector.shape_cast %3 : vector<8x4xf32> to vector<1x8x4xf32>
    %472 = vector.broadcast %471 : vector<1x8x4xf32> to vector<2x8x4xf32>
    %473 = arith.mulf %453, %472 : vector<2x8x4xf32>
    %474 = arith.subf %470, %473 : vector<2x8x4xf32>
    %475 = vector.shape_cast %2 : vector<8x4xf32> to vector<1x8x4xf32>
    %476 = vector.broadcast %475 : vector<1x8x4xf32> to vector<2x8x4xf32>
    %477 = arith.mulf %453, %476 : vector<2x8x4xf32>
    %478 = vector.shape_cast %3 : vector<8x4xf32> to vector<1x8x4xf32>
    %479 = vector.broadcast %478 : vector<1x8x4xf32> to vector<2x8x4xf32>
    %480 = arith.mulf %452, %479 : vector<2x8x4xf32>
    %481 = arith.addf %477, %480 : vector<2x8x4xf32>
    %482 = vector.extract_strided_slice %474 {offsets = [0, 0, 0], sizes = [1, 8, 4], strides = [1, 1, 1]} : vector<2x8x4xf32> to vector<1x8x4xf32>
    %483 = vector.extract_strided_slice %474 {offsets = [0, 0, 0], sizes = [1, 8, 4], strides = [1, 1, 1]} : vector<2x8x4xf32> to vector<1x8x4xf32>
    %484 = vector.extract_strided_slice %474 {offsets = [1, 0, 0], sizes = [1, 8, 4], strides = [1, 1, 1]} : vector<2x8x4xf32> to vector<1x8x4xf32>
    %485 = vector.extract_strided_slice %474 {offsets = [1, 0, 0], sizes = [1, 8, 4], strides = [1, 1, 1]} : vector<2x8x4xf32> to vector<1x8x4xf32>
    %486 = tpu.concatenate %482, %483, %484, %485 in 0 : vector<1x8x4xf32>, vector<1x8x4xf32>, vector<1x8x4xf32>, vector<1x8x4xf32> -> vector<4x8x4xf32>
    %487 = vector.extract_strided_slice %481 {offsets = [0, 0, 0], sizes = [1, 8, 4], strides = [1, 1, 1]} : vector<2x8x4xf32> to vector<1x8x4xf32>
    %488 = vector.extract_strided_slice %481 {offsets = [0, 0, 0], sizes = [1, 8, 4], strides = [1, 1, 1]} : vector<2x8x4xf32> to vector<1x8x4xf32>
    %489 = vector.extract_strided_slice %481 {offsets = [1, 0, 0], sizes = [1, 8, 4], strides = [1, 1, 1]} : vector<2x8x4xf32> to vector<1x8x4xf32>
    %490 = vector.extract_strided_slice %481 {offsets = [1, 0, 0], sizes = [1, 8, 4], strides = [1, 1, 1]} : vector<2x8x4xf32> to vector<1x8x4xf32>
    %491 = tpu.concatenate %487, %488, %489, %490 in 0 : vector<1x8x4xf32>, vector<1x8x4xf32>, vector<1x8x4xf32>, vector<1x8x4xf32> -> vector<4x8x4xf32>
    %492 = vector.extract_strided_slice %449 {offsets = [0, 0, 0], sizes = [1, 8, 8], strides = [1, 1, 1]} : vector<2x8x8xf32> to vector<1x8x8xf32>
    %493 = vector.extract_strided_slice %449 {offsets = [0, 0, 0], sizes = [1, 8, 8], strides = [1, 1, 1]} : vector<2x8x8xf32> to vector<1x8x8xf32>
    %494 = vector.extract_strided_slice %449 {offsets = [1, 0, 0], sizes = [1, 8, 8], strides = [1, 1, 1]} : vector<2x8x8xf32> to vector<1x8x8xf32>
    %495 = vector.extract_strided_slice %449 {offsets = [1, 0, 0], sizes = [1, 8, 8], strides = [1, 1, 1]} : vector<2x8x8xf32> to vector<1x8x8xf32>
    %496 = tpu.concatenate %492, %493, %494, %495 in 0 : vector<1x8x8xf32>, vector<1x8x8xf32>, vector<1x8x8xf32>, vector<1x8x8xf32> -> vector<4x8x8xf32>
    %497 = arith.truncf %460 : vector<4x8x4xf32> to vector<4x8x4xbf16>
    %c0_162 = arith.constant 0 : index
    %c0_163 = arith.constant 0 : index
    %c0_164 = arith.constant 0 : index
    %498 = vector.load %arg26[%c0_162, %c0_163, %c0_164] : memref<4x4x8xbf16, #tpu.memory_space<vmem>>, vector<4x4x8xbf16>
    "tpu.trace_start"() <{level = 10 : i32, message = "hsd,hdf->hsf"}> : () -> ()
    %cst_165 = arith.constant dense<0.000000e+00> : vector<4x8x8xf32>
    %499 = tpu.matmul %497, %498, %cst_165 {dimension_numbers = #tpu.dot_dimension_numbers<[2], [1], [1], [2], [0, 0, 0, 1, 1, 2], [0], [0]>} : vector<4x8x4xbf16>, vector<4x4x8xbf16>, vector<4x8x8xf32> -> vector<4x8x8xf32>
    "tpu.trace_stop"() : () -> ()
    %500 = arith.truncf %467 : vector<4x8x4xf32> to vector<4x8x4xbf16>
    %c0_166 = arith.constant 0 : index
    %c0_167 = arith.constant 0 : index
    %c0_168 = arith.constant 0 : index
    %501 = vector.load %arg27[%c0_166, %c0_167, %c0_168] : memref<4x4x8xbf16, #tpu.memory_space<vmem>>, vector<4x4x8xbf16>
    "tpu.trace_start"() <{level = 10 : i32, message = "hsd,hdf->hsf"}> : () -> ()
    %cst_169 = arith.constant dense<0.000000e+00> : vector<4x8x8xf32>
    %502 = tpu.matmul %500, %501, %cst_169 {dimension_numbers = #tpu.dot_dimension_numbers<[2], [1], [1], [2], [0, 0, 0, 1, 1, 2], [0], [0]>} : vector<4x8x4xbf16>, vector<4x4x8xbf16>, vector<4x8x8xf32> -> vector<4x8x8xf32>
    "tpu.trace_stop"() : () -> ()
    %503 = arith.addf %499, %502 : vector<4x8x8xf32>
    %504 = arith.truncf %486 : vector<4x8x4xf32> to vector<4x8x4xbf16>
    %c0_170 = arith.constant 0 : index
    %c0_171 = arith.constant 0 : index
    %c0_172 = arith.constant 0 : index
    %505 = vector.load %arg28[%c0_170, %c0_171, %c0_172] : memref<4x4x8xbf16, #tpu.memory_space<vmem>>, vector<4x4x8xbf16>
    "tpu.trace_start"() <{level = 10 : i32, message = "hsd,hdf->hsf"}> : () -> ()
    %cst_173 = arith.constant dense<0.000000e+00> : vector<4x8x8xf32>
    %506 = tpu.matmul %504, %505, %cst_173 {dimension_numbers = #tpu.dot_dimension_numbers<[2], [1], [1], [2], [0, 0, 0, 1, 1, 2], [0], [0]>} : vector<4x8x4xbf16>, vector<4x4x8xbf16>, vector<4x8x8xf32> -> vector<4x8x8xf32>
    "tpu.trace_stop"() : () -> ()
    %507 = arith.truncf %491 : vector<4x8x4xf32> to vector<4x8x4xbf16>
    %c0_174 = arith.constant 0 : index
    %c0_175 = arith.constant 0 : index
    %c0_176 = arith.constant 0 : index
    %508 = vector.load %arg29[%c0_174, %c0_175, %c0_176] : memref<4x4x8xbf16, #tpu.memory_space<vmem>>, vector<4x4x8xbf16>
    "tpu.trace_start"() <{level = 10 : i32, message = "hsd,hdf->hsf"}> : () -> ()
    %cst_177 = arith.constant dense<0.000000e+00> : vector<4x8x8xf32>
    %509 = tpu.matmul %507, %508, %cst_177 {dimension_numbers = #tpu.dot_dimension_numbers<[2], [1], [1], [2], [0, 0, 0, 1, 1, 2], [0], [0]>} : vector<4x8x4xbf16>, vector<4x4x8xbf16>, vector<4x8x8xf32> -> vector<4x8x8xf32>
    "tpu.trace_stop"() : () -> ()
    %510 = arith.addf %506, %509 : vector<4x8x8xf32>
    %cst_178 = arith.constant dense<0xFF800000> : vector<4x8xf32>
    %511 = vector.multi_reduction <maximumf>, %503, %cst_178 [2] : vector<4x8x8xf32> to vector<4x8xf32>
    %512 = vector.shape_cast %511 : vector<4x8xf32> to vector<4x8x1xf32>
    %513 = vector.broadcast %512 : vector<4x8x1xf32> to vector<4x8x8xf32>
    %514 = arith.subf %503, %513 : vector<4x8x8xf32>
    %515 = math.exp %514 : vector<4x8x8xf32>
    %cst_179 = arith.constant dense<0.000000e+00> : vector<4x8xf32>
    %516 = vector.multi_reduction <add>, %515, %cst_179 [2] : vector<4x8x8xf32> to vector<4x8xf32>
    %517 = vector.shape_cast %516 : vector<4x8xf32> to vector<4x8x1xf32>
    %518 = vector.broadcast %517 : vector<4x8x1xf32> to vector<4x8x8xf32>
    %519 = arith.divf %515, %518 : vector<4x8x8xf32>
    %cst_180 = arith.constant 0.000000e+00 : f32
    %520 = vector.broadcast %cst_180 : f32 to vector<4x8x8xf32>
    %521 = arith.subf %520, %503 : vector<4x8x8xf32>
    %cst_181 = arith.constant dense<0xFF800000> : vector<4x8xf32>
    %522 = vector.multi_reduction <maximumf>, %521, %cst_181 [2] : vector<4x8x8xf32> to vector<4x8xf32>
    %523 = vector.shape_cast %522 : vector<4x8xf32> to vector<4x8x1xf32>
    %524 = vector.broadcast %523 : vector<4x8x1xf32> to vector<4x8x8xf32>
    %525 = arith.subf %521, %524 : vector<4x8x8xf32>
    %526 = math.exp %525 : vector<4x8x8xf32>
    %cst_182 = arith.constant dense<0.000000e+00> : vector<4x8xf32>
    %527 = vector.multi_reduction <add>, %526, %cst_182 [2] : vector<4x8x8xf32> to vector<4x8xf32>
    %528 = vector.shape_cast %527 : vector<4x8xf32> to vector<4x8x1xf32>
    %529 = vector.broadcast %528 : vector<4x8x1xf32> to vector<4x8x8xf32>
    %530 = arith.divf %526, %529 : vector<4x8x8xf32>
    %cst_183 = arith.constant dense<0xFF800000> : vector<4x8xf32>
    %531 = vector.multi_reduction <maximumf>, %510, %cst_183 [2] : vector<4x8x8xf32> to vector<4x8xf32>
    %532 = vector.shape_cast %531 : vector<4x8xf32> to vector<4x8x1xf32>
    %533 = vector.broadcast %532 : vector<4x8x1xf32> to vector<4x8x8xf32>
    %534 = arith.subf %510, %533 : vector<4x8x8xf32>
    %535 = math.exp %534 : vector<4x8x8xf32>
    %cst_184 = arith.constant dense<0.000000e+00> : vector<4x8xf32>
    %536 = vector.multi_reduction <add>, %535, %cst_184 [2] : vector<4x8x8xf32> to vector<4x8xf32>
    %537 = vector.shape_cast %536 : vector<4x8xf32> to vector<4x8x1xf32>
    %538 = vector.broadcast %537 : vector<4x8x1xf32> to vector<4x8x8xf32>
    %539 = arith.divf %535, %538 : vector<4x8x8xf32>
    %cst_185 = arith.constant 0.000000e+00 : f32
    %540 = vector.broadcast %cst_185 : f32 to vector<4x8x8xf32>
    %541 = arith.subf %540, %510 : vector<4x8x8xf32>
    %cst_186 = arith.constant dense<0xFF800000> : vector<4x8xf32>
    %542 = vector.multi_reduction <maximumf>, %541, %cst_186 [2] : vector<4x8x8xf32> to vector<4x8xf32>
    %543 = vector.shape_cast %542 : vector<4x8xf32> to vector<4x8x1xf32>
    %544 = vector.broadcast %543 : vector<4x8x1xf32> to vector<4x8x8xf32>
    %545 = arith.subf %541, %544 : vector<4x8x8xf32>
    %546 = math.exp %545 : vector<4x8x8xf32>
    %cst_187 = arith.constant dense<0.000000e+00> : vector<4x8xf32>
    %547 = vector.multi_reduction <add>, %546, %cst_187 [2] : vector<4x8x8xf32> to vector<4x8xf32>
    %548 = vector.shape_cast %547 : vector<4x8xf32> to vector<4x8x1xf32>
    %549 = vector.broadcast %548 : vector<4x8x1xf32> to vector<4x8x8xf32>
    %550 = arith.divf %546, %549 : vector<4x8x8xf32>
    %551 = arith.truncf %519 : vector<4x8x8xf32> to vector<4x8x8xbf16>
    %552 = arith.truncf %539 : vector<4x8x8xf32> to vector<4x8x8xbf16>
    "tpu.trace_start"() <{level = 10 : i32, message = "hqf,hkf->hqk"}> : () -> ()
    %cst_188 = arith.constant dense<0.000000e+00> : vector<4x8x8xf32>
    %553 = tpu.matmul %551, %552, %cst_188 {dimension_numbers = #tpu.dot_dimension_numbers<[2], [2], [1], [1], [0, 0, 0, 1, 1, 1], [0], [0]>} : vector<4x8x8xbf16>, vector<4x8x8xbf16>, vector<4x8x8xf32> -> vector<4x8x8xf32>
    "tpu.trace_stop"() : () -> ()
    %554 = arith.truncf %530 : vector<4x8x8xf32> to vector<4x8x8xbf16>
    %555 = arith.truncf %550 : vector<4x8x8xf32> to vector<4x8x8xbf16>
    "tpu.trace_start"() <{level = 10 : i32, message = "hqf,hkf->hqk"}> : () -> ()
    %cst_189 = arith.constant dense<0.000000e+00> : vector<4x8x8xf32>
    %556 = tpu.matmul %554, %555, %cst_189 {dimension_numbers = #tpu.dot_dimension_numbers<[2], [2], [1], [1], [0, 0, 0, 1, 1, 1], [0], [0]>} : vector<4x8x8xbf16>, vector<4x8x8xbf16>, vector<4x8x8xf32> -> vector<4x8x8xf32>
    "tpu.trace_stop"() : () -> ()
    %557 = arith.addf %553, %556 : vector<4x8x8xf32>
    %cst_190 = arith.constant 0.000000e+00 : f32
    %558 = vector.shape_cast %6 : vector<8x8xi1> to vector<1x8x8xi1>
    %559 = vector.broadcast %558 : vector<1x8x8xi1> to vector<4x8x8xi1>
    %560 = vector.broadcast %cst_190 : f32 to vector<4x8x8xf32>
    %561 = arith.select %559, %557, %560 : vector<4x8x8xi1>, vector<4x8x8xf32>
    %cst_191 = arith.constant dense<0.000000e+00> : vector<4x8xf32>
    %562 = vector.multi_reduction <add>, %561, %cst_191 [2] : vector<4x8x8xf32> to vector<4x8xf32>
    %563 = vector.shape_cast %562 : vector<4x8xf32> to vector<4x8x1xf32>
    %564 = vector.broadcast %563 : vector<4x8x1xf32> to vector<4x8x8xf32>
    %565 = arith.divf %561, %564 : vector<4x8x8xf32>
    %c0_192 = arith.constant 0 : index
    %c0_193 = arith.constant 0 : index
    %c0_194 = arith.constant 0 : index
    %c0_195 = arith.constant 0 : index
    %566 = vector.load %arg40[%c0_192, %c0_193, %c0_194, %c0_195] : memref<1x4x8x8xf32, #tpu.memory_space<vmem>>, vector<1x4x8x8xf32>
    %567 = vector.shape_cast %566 : vector<1x4x8x8xf32> to vector<4x8x8xf32>
    %568 = vector.shape_cast %565 : vector<4x8x8xf32> to vector<1x4x8x8xf32>
    tpu.vector_store %arg40[%c0_192, %c0_193, %c0_194, %c0_195], %568 {strides = array<i32>} : memref<1x4x8x8xf32, #tpu.memory_space<vmem>>, vector<1x4x8x8xf32>,
    %569 = arith.truncf %565 : vector<4x8x8xf32> to vector<4x8x8xbf16>
    %570 = arith.truncf %496 : vector<4x8x8xf32> to vector<4x8x8xbf16>
    "tpu.trace_start"() <{level = 10 : i32, message = "hqk,hkd->hqd"}> : () -> ()
    %cst_196 = arith.constant dense<0.000000e+00> : vector<4x8x8xf32>
    %571 = tpu.matmul %569, %570, %cst_196 {dimension_numbers = #tpu.dot_dimension_numbers<[2], [1], [1], [2], [0, 0, 0, 1, 1, 2], [0], [0]>} : vector<4x8x8xbf16>, vector<4x8x8xbf16>, vector<4x8x8xf32> -> vector<4x8x8xf32>
    "tpu.trace_stop"() : () -> ()
    %572 = vector.extract_strided_slice %571 {offsets = [0, 0, 0], sizes = [1, 8, 8], strides = [1, 1, 1]} : vector<4x8x8xf32> to vector<1x8x8xf32>
    %573 = vector.shape_cast %572 : vector<1x8x8xf32> to vector<8x8xf32>
    %c0_197 = arith.constant 0 : index
    %c0_198 = arith.constant 0 : index
    %574 = vector.load %arg41[%c0_197, %c0_198] : memref<8x32xf32, #tpu.memory_space<vmem>>, vector<8x8xf32>
    tpu.vector_store %arg41[%c0_197, %c0_198], %573 {strides = array<i32>} : memref<8x32xf32, #tpu.memory_space<vmem>>, vector<8x8xf32>,
    %575 = vector.extract_strided_slice %571 {offsets = [1, 0, 0], sizes = [1, 8, 8], strides = [1, 1, 1]} : vector<4x8x8xf32> to vector<1x8x8xf32>
    %576 = vector.shape_cast %575 : vector<1x8x8xf32> to vector<8x8xf32>
    %c0_199 = arith.constant 0 : index
    %c8_200 = arith.constant 8 : index
    %577 = vector.load %arg41[%c0_199, %c8_200] : memref<8x32xf32, #tpu.memory_space<vmem>>, vector<8x8xf32>
    tpu.vector_store %arg41[%c0_199, %c8_200], %576 {strides = array<i32>} : memref<8x32xf32, #tpu.memory_space<vmem>>, vector<8x8xf32>,
    %578 = vector.extract_strided_slice %571 {offsets = [2, 0, 0], sizes = [1, 8, 8], strides = [1, 1, 1]} : vector<4x8x8xf32> to vector<1x8x8xf32>
    %579 = vector.shape_cast %578 : vector<1x8x8xf32> to vector<8x8xf32>
    %c0_201 = arith.constant 0 : index
    %c16_202 = arith.constant 16 : index
    %580 = vector.load %arg41[%c0_201, %c16_202] : memref<8x32xf32, #tpu.memory_space<vmem>>, vector<8x8xf32>
    tpu.vector_store %arg41[%c0_201, %c16_202], %579 {strides = array<i32>} : memref<8x32xf32, #tpu.memory_space<vmem>>, vector<8x8xf32>,
    %581 = vector.extract_strided_slice %571 {offsets = [3, 0, 0], sizes = [1, 8, 8], strides = [1, 1, 1]} : vector<4x8x8xf32> to vector<1x8x8xf32>
    %582 = vector.shape_cast %581 : vector<1x8x8xf32> to vector<8x8xf32>
    %c0_203 = arith.constant 0 : index
    %c24_204 = arith.constant 24 : index
    %583 = vector.load %arg41[%c0_203, %c24_204] : memref<8x32xf32, #tpu.memory_space<vmem>>, vector<8x8xf32>
    tpu.vector_store %arg41[%c0_203, %c24_204], %582 {strides = array<i32>} : memref<8x32xf32, #tpu.memory_space<vmem>>, vector<8x8xf32>,
    %c0_205 = arith.constant 0 : index
    %c0_206 = arith.constant 0 : index
    %584 = vector.load %arg41[%c0_205, %c0_206] : memref<8x32xf32, #tpu.memory_space<vmem>>, vector<8x32xf32>
    %585 = arith.truncf %584 : vector<8x32xf32> to vector<8x32xbf16>
    %c0_207 = arith.constant 0 : index
    %c0_208 = arith.constant 0 : index
    %586 = vector.load %arg25[%c0_207, %c0_208] : memref<32x32xbf16, #tpu.memory_space<vmem>>, vector<32x32xbf16>
    %cst_209 = arith.constant dense<0.000000e+00> : vector<8x32xf32>
    %587 = tpu.matmul %585, %586, %cst_209 {dimension_numbers = #tpu.dot_dimension_numbers<[1], [0], [0], [1], [0, 0, 1, 1], [], []>} : vector<8x32xbf16>, vector<32x32xbf16>, vector<8x32xf32> -> vector<8x32xf32>
    %c0_210 = arith.constant 0 : index
    %c0_211 = arith.constant 0 : index
    %588 = vector.load %arg31[%c0_210, %c0_211] : memref<1x32xf32, #tpu.memory_space<vmem>>, vector<1x32xf32>
    %589 = arith.mulf %587, %587 : vector<8x32xf32>
    %cst_212 = arith.constant dense<0.000000e+00> : vector<8xf32>
    %590 = vector.multi_reduction <add>, %589, %cst_212 [1] : vector<8x32xf32> to vector<8xf32>
    %591 = vector.shape_cast %590 : vector<8xf32> to vector<8x1xf32>
    %cst_213 = arith.constant 3.200000e+01 : f32
    %592 = vector.broadcast %cst_213 : f32 to vector<8x1xf32>
    %593 = arith.divf %591, %592 : vector<8x1xf32>
    %cst_214 = arith.constant 9.99999997E-7 : f32
    %594 = vector.broadcast %cst_214 : f32 to vector<8x1xf32>
    %595 = arith.addf %593, %594 : vector<8x1xf32>
    %596 = math.rsqrt %595 : vector<8x1xf32>
    %597 = vector.broadcast %596 : vector<8x1xf32> to vector<8x32xf32>
    %598 = arith.mulf %587, %597 : vector<8x32xf32>
    %cst_215 = arith.constant 1.000000e+00 : f32
    %599 = vector.broadcast %cst_215 : f32 to vector<1x32xf32>
    %600 = arith.addf %599, %588 : vector<1x32xf32>
    %601 = vector.broadcast %600 : vector<1x32xf32> to vector<8x32xf32>
    %602 = arith.mulf %598, %601 : vector<8x32xf32>
    %603 = arith.addf %422, %602 : vector<8x32xf32>
    %c0_216 = arith.constant 0 : index
    %c0_217 = arith.constant 0 : index
    %604 = vector.load %arg32[%c0_216, %c0_217] : memref<1x32xf32, #tpu.memory_space<vmem>>, vector<1x32xf32>
    %605 = arith.mulf %603, %603 : vector<8x32xf32>
    %cst_218 = arith.constant dense<0.000000e+00> : vector<8xf32>
    %606 = vector.multi_reduction <add>, %605, %cst_218 [1] : vector<8x32xf32> to vector<8xf32>
    %607 = vector.shape_cast %606 : vector<8xf32> to vector<8x1xf32>
    %cst_219 = arith.constant 3.200000e+01 : f32
    %608 = vector.broadcast %cst_219 : f32 to vector<8x1xf32>
    %609 = arith.divf %607, %608 : vector<8x1xf32>
    %cst_220 = arith.constant 9.99999997E-7 : f32
    %610 = vector.broadcast %cst_220 : f32 to vector<8x1xf32>
    %611 = arith.addf %609, %610 : vector<8x1xf32>
    %612 = math.rsqrt %611 : vector<8x1xf32>
    %613 = vector.broadcast %612 : vector<8x1xf32> to vector<8x32xf32>
    %614 = arith.mulf %603, %613 : vector<8x32xf32>
    %cst_221 = arith.constant 1.000000e+00 : f32
    %615 = vector.broadcast %cst_221 : f32 to vector<1x32xf32>
    %616 = arith.addf %615, %604 : vector<1x32xf32>
    %617 = vector.broadcast %616 : vector<1x32xf32> to vector<8x32xf32>
    %618 = arith.mulf %614, %617 : vector<8x32xf32>
    %619 = arith.truncf %618 : vector<8x32xf32> to vector<8x32xbf16>
    %c0_222 = arith.constant 0 : index
    %c0_223 = arith.constant 0 : index
    %620 = vector.load %arg34[%c0_222, %c0_223] : memref<32x128xbf16, #tpu.memory_space<vmem>>, vector<32x128xbf16>
    %cst_224 = arith.constant dense<0.000000e+00> : vector<8x128xf32>
    %621 = tpu.matmul %619, %620, %cst_224 {dimension_numbers = #tpu.dot_dimension_numbers<[1], [0], [0], [1], [0, 0, 1, 1], [], []>} : vector<8x32xbf16>, vector<32x128xbf16>, vector<8x128xf32> -> vector<8x128xf32>
    %622 = vector.extract_strided_slice %621 {offsets = [0, 0], sizes = [8, 64], strides = [1, 1]} : vector<8x128xf32> to vector<8x64xf32>
    %623 = arith.mulf %622, %622 : vector<8x64xf32>
    %624 = arith.mulf %622, %623 : vector<8x64xf32>
    %cst_225 = arith.constant 4.471500e-02 : f32
    %625 = vector.broadcast %cst_225 : f32 to vector<8x64xf32>
    %626 = arith.mulf %625, %624 : vector<8x64xf32>
    %627 = arith.addf %622, %626 : vector<8x64xf32>
    %cst_226 = arith.constant 0.797884583 : f32
    %628 = vector.broadcast %cst_226 : f32 to vector<8x64xf32>
    %629 = arith.mulf %628, %627 : vector<8x64xf32>
    %630 = math.tanh %629 : vector<8x64xf32>
    %cst_227 = arith.constant 1.000000e+00 : f32
    %631 = vector.broadcast %cst_227 : f32 to vector<8x64xf32>
    %632 = arith.addf %631, %630 : vector<8x64xf32>
    %cst_228 = arith.constant 5.000000e-01 : f32
    %633 = vector.broadcast %cst_228 : f32 to vector<8x64xf32>
    %634 = arith.mulf %633, %632 : vector<8x64xf32>
    %635 = arith.mulf %622, %634 : vector<8x64xf32>
    %636 = vector.extract_strided_slice %621 {offsets = [0, 64], sizes = [8, 64], strides = [1, 1]} : vector<8x128xf32> to vector<8x64xf32>
    %637 = arith.mulf %635, %636 : vector<8x64xf32>
    %638 = arith.truncf %637 : vector<8x64xf32> to vector<8x64xbf16>
    %c0_229 = arith.constant 0 : index
    %c0_230 = arith.constant 0 : index
    %639 = vector.load %arg35[%c0_229, %c0_230] : memref<64x32xbf16, #tpu.memory_space<vmem>>, vector<64x32xbf16>
    %cst_231 = arith.constant dense<0.000000e+00> : vector<8x32xf32>
    %640 = tpu.matmul %638, %639, %cst_231 {dimension_numbers = #tpu.dot_dimension_numbers<[1], [0], [0], [1], [0, 0, 1, 1], [], []>} : vector<8x64xbf16>, vector<64x32xbf16>, vector<8x32xf32> -> vector<8x32xf32>
    %c0_232 = arith.constant 0 : index
    %c0_233 = arith.constant 0 : index
    %641 = vector.load %arg33[%c0_232, %c0_233] : memref<1x32xf32, #tpu.memory_space<vmem>>, vector<1x32xf32>
    %642 = arith.mulf %640, %640 : vector<8x32xf32>
    %cst_234 = arith.constant dense<0.000000e+00> : vector<8xf32>
    %643 = vector.multi_reduction <add>, %642, %cst_234 [1] : vector<8x32xf32> to vector<8xf32>
    %644 = vector.shape_cast %643 : vector<8xf32> to vector<8x1xf32>
    %cst_235 = arith.constant 3.200000e+01 : f32
    %645 = vector.broadcast %cst_235 : f32 to vector<8x1xf32>
    %646 = arith.divf %644, %645 : vector<8x1xf32>
    %cst_236 = arith.constant 9.99999997E-7 : f32
    %647 = vector.broadcast %cst_236 : f32 to vector<8x1xf32>
    %648 = arith.addf %646, %647 : vector<8x1xf32>
    %649 = math.rsqrt %648 : vector<8x1xf32>
    %650 = vector.broadcast %649 : vector<8x1xf32> to vector<8x32xf32>
    %651 = arith.mulf %640, %650 : vector<8x32xf32>
    %cst_237 = arith.constant 1.000000e+00 : f32
    %652 = vector.broadcast %cst_237 : f32 to vector<1x32xf32>
    %653 = arith.addf %652, %641 : vector<1x32xf32>
    %654 = vector.broadcast %653 : vector<1x32xf32> to vector<8x32xf32>
    %655 = arith.mulf %651, %654 : vector<8x32xf32>
    %656 = arith.addf %603, %655 : vector<8x32xf32>
    %c0_238 = arith.constant 0 : index
    %c0_239 = arith.constant 0 : index
    %c0_240 = arith.constant 0 : index
    %657 = vector.load %arg38[%c0_238, %c0_239, %c0_240] : memref<1x8x32xf32, #tpu.memory_space<vmem>>, vector<1x8x32xf32>
    %658 = vector.shape_cast %657 : vector<1x8x32xf32> to vector<8x32xf32>
    %659 = vector.shape_cast %656 : vector<8x32xf32> to vector<1x8x32xf32>
    tpu.vector_store %arg38[%c0_238, %c0_239, %c0_240], %659 {strides = array<i32>} : memref<1x8x32xf32, #tpu.memory_space<vmem>>, vector<1x8x32xf32>,
    return
  }
  func.func @transform_0(%arg0: i32) -> (i32, i32, i32) {
    %c0_i32 = arith.constant 0 : i32
    %c0_i32_0 = arith.constant 0 : i32
    %c0_i32_1 = arith.constant 0 : i32
    return %arg0, %c0_i32, %c0_i32_0 : i32, i32, i32
  }
  func.func @transform_1(%arg0: i32) -> (i32, i32) {
    %c0_i32 = arith.constant 0 : i32
    %c0_i32_0 = arith.constant 0 : i32
    %c0_i32_1 = arith.constant 0 : i32
    return %c0_i32, %c0_i32_0 : i32, i32
  }
  func.func @transform_2(%arg0: i32) -> (i32, i32) {
    %c0_i32 = arith.constant 0 : i32
    %c0_i32_0 = arith.constant 0 : i32
    %c0_i32_1 = arith.constant 0 : i32
    return %c0_i32, %c0_i32_0 : i32, i32
  }
  func.func @transform_3(%arg0: i32) -> (i32, i32, i32) {
    %c0_i32 = arith.constant 0 : i32
    %c0_i32_0 = arith.constant 0 : i32
    %c0_i32_1 = arith.constant 0 : i32
    %c0_i32_2 = arith.constant 0 : i32
    return %c0_i32, %c0_i32_0, %c0_i32_1 : i32, i32, i32
  }
  func.func @transform_4(%arg0: i32) -> (i32, i32) {
    %c0_i32 = arith.constant 0 : i32
    %c0_i32_0 = arith.constant 0 : i32
    %c0_i32_1 = arith.constant 0 : i32
    return %c0_i32, %c0_i32_0 : i32, i32
  }
  func.func @transform_5(%arg0: i32) -> (i32, i32, i32) {
    %c0_i32 = arith.constant 0 : i32
    %c0_i32_0 = arith.constant 0 : i32
    %c0_i32_1 = arith.constant 0 : i32
    %c0_i32_2 = arith.constant 0 : i32
    return %c0_i32, %c0_i32_0, %c0_i32_1 : i32, i32, i32
  }
  func.func @transform_6(%arg0: i32) -> (i32, i32, i32) {
    %c0_i32 = arith.constant 0 : i32
    %c0_i32_0 = arith.constant 0 : i32
    %c0_i32_1 = arith.constant 0 : i32
    %c0_i32_2 = arith.constant 0 : i32
    return %c0_i32, %c0_i32_0, %c0_i32_1 : i32, i32, i32
  }
  func.func @transform_7(%arg0: i32) -> (i32, i32, i32) {
    %c0_i32 = arith.constant 0 : i32
    %c0_i32_0 = arith.constant 0 : i32
    %c0_i32_1 = arith.constant 0 : i32
    %c0_i32_2 = arith.constant 0 : i32
    return %c0_i32, %c0_i32_0, %c0_i32_1 : i32, i32, i32
  }
  func.func @transform_8(%arg0: i32) -> (i32, i32, i32) {
    %c0_i32 = arith.constant 0 : i32
    %c0_i32_0 = arith.constant 0 : i32
    %c0_i32_1 = arith.constant 0 : i32
    %c0_i32_2 = arith.constant 0 : i32
    return %c0_i32, %c0_i32_0, %c0_i32_1 : i32, i32, i32
  }
  func.func @transform_9(%arg0: i32) -> (i32, i32) {
    %c0_i32 = arith.constant 0 : i32
    %c0_i32_0 = arith.constant 0 : i32
    %c0_i32_1 = arith.constant 0 : i32
    return %c0_i32, %c0_i32_0 : i32, i32
  }
  func.func @transform_10(%arg0: i32) -> (i32, i32) {
    %c0_i32 = arith.constant 0 : i32
    %c0_i32_0 = arith.constant 0 : i32
    %c0_i32_1 = arith.constant 0 : i32
    return %c0_i32, %c0_i32_0 : i32, i32
  }
  func.func @transform_11(%arg0: i32) -> (i32, i32) {
    %c0_i32 = arith.constant 0 : i32
    %c0_i32_0 = arith.constant 0 : i32
    %c0_i32_1 = arith.constant 0 : i32
    return %c0_i32, %c0_i32_0 : i32, i32
  }
  func.func @transform_12(%arg0: i32) -> (i32, i32) {
    %c0_i32 = arith.constant 0 : i32
    %c0_i32_0 = arith.constant 0 : i32
    %c0_i32_1 = arith.constant 0 : i32
    return %c0_i32, %c0_i32_0 : i32, i32
  }
  func.func @transform_13(%arg0: i32) -> (i32, i32) {
    %c0_i32 = arith.constant 0 : i32
    %c0_i32_0 = arith.constant 0 : i32
    %c0_i32_1 = arith.constant 0 : i32
    return %c0_i32, %c0_i32_0 : i32, i32
  }
  func.func @transform_14(%arg0: i32) -> (i32, i32) {
    %c0_i32 = arith.constant 0 : i32
    %c0_i32_0 = arith.constant 0 : i32
    %c0_i32_1 = arith.constant 0 : i32
    return %c0_i32, %c0_i32_0 : i32, i32
  }
  func.func @transform_15(%arg0: i32) -> (i32, i32, i32) {
    %c0_i32 = arith.constant 0 : i32
    %c0_i32_0 = arith.constant 0 : i32
    %c0_i32_1 = arith.constant 0 : i32
    %c0_i32_2 = arith.constant 0 : i32
    return %c0_i32, %c0_i32_0, %c0_i32_1 : i32, i32, i32
  }
  func.func @transform_16(%arg0: i32) -> (i32, i32) {
    %c0_i32 = arith.constant 0 : i32
    %c0_i32_0 = arith.constant 0 : i32
    %c0_i32_1 = arith.constant 0 : i32
    return %c0_i32, %c0_i32_0 : i32, i32
  }
  func.func @transform_17(%arg0: i32) -> (i32, i32) {
    %c0_i32 = arith.constant 0 : i32
    %c0_i32_0 = arith.constant 0 : i32
    %c0_i32_1 = arith.constant 0 : i32
    return %c0_i32, %c0_i32_0 : i32, i32
  }
  func.func @transform_18(%arg0: i32) -> (i32, i32) {
    %c0_i32 = arith.constant 0 : i32
    %c0_i32_0 = arith.constant 0 : i32
    %c0_i32_1 = arith.constant 0 : i32
    return %c0_i32, %c0_i32_0 : i32, i32
  }
  func.func @transform_19(%arg0: i32) -> (i32, i32) {
    %c0_i32 = arith.constant 0 : i32
    %c0_i32_0 = arith.constant 0 : i32
    %c0_i32_1 = arith.constant 0 : i32
    return %c0_i32, %c0_i32_0 : i32, i32
  }
  func.func @transform_20(%arg0: i32) -> (i32, i32) {
    %c0_i32 = arith.constant 0 : i32
    %c0_i32_0 = arith.constant 0 : i32
    %c0_i32_1 = arith.constant 0 : i32
    return %c0_i32, %c0_i32_0 : i32, i32
  }
  func.func @transform_21(%arg0: i32) -> (i32, i32) {
    %c0_i32 = arith.constant 0 : i32
    %c0_i32_0 = arith.constant 0 : i32
    %c0_i32_1 = arith.constant 0 : i32
    return %c0_i32, %c0_i32_0 : i32, i32
  }
  func.func @transform_22(%arg0: i32) -> (i32, i32) {
    %c0_i32 = arith.constant 0 : i32
    %c0_i32_0 = arith.constant 0 : i32
    %c0_i32_1 = arith.constant 0 : i32
    return %c0_i32, %c0_i32_0 : i32, i32
  }
  func.func @transform_23(%arg0: i32) -> (i32, i32, i32) {
    %c0_i32 = arith.constant 0 : i32
    %c0_i32_0 = arith.constant 0 : i32
    %c0_i32_1 = arith.constant 0 : i32
    %c0_i32_2 = arith.constant 0 : i32
    return %c0_i32, %c0_i32_0, %c0_i32_1 : i32, i32, i32
  }
  func.func @transform_24(%arg0: i32) -> (i32, i32) {
    %c0_i32 = arith.constant 0 : i32
    %c0_i32_0 = arith.constant 0 : i32
    %c0_i32_1 = arith.constant 0 : i32
    return %c0_i32, %c0_i32_0 : i32, i32
  }
  func.func @transform_25(%arg0: i32) -> (i32, i32, i32) {
    %c0_i32 = arith.constant 0 : i32
    %c0_i32_0 = arith.constant 0 : i32
    %c0_i32_1 = arith.constant 0 : i32
    %c0_i32_2 = arith.constant 0 : i32
    return %c0_i32, %c0_i32_0, %c0_i32_1 : i32, i32, i32
  }
  func.func @transform_26(%arg0: i32) -> (i32, i32, i32) {
    %c0_i32 = arith.constant 0 : i32
    %c0_i32_0 = arith.constant 0 : i32
    %c0_i32_1 = arith.constant 0 : i32
    %c0_i32_2 = arith.constant 0 : i32
    return %c0_i32, %c0_i32_0, %c0_i32_1 : i32, i32, i32
  }
  func.func @transform_27(%arg0: i32) -> (i32, i32, i32) {
    %c0_i32 = arith.constant 0 : i32
    %c0_i32_0 = arith.constant 0 : i32
    %c0_i32_1 = arith.constant 0 : i32
    %c0_i32_2 = arith.constant 0 : i32
    return %c0_i32, %c0_i32_0, %c0_i32_1 : i32, i32, i32
  }
  func.func @transform_28(%arg0: i32) -> (i32, i32, i32) {
    %c0_i32 = arith.constant 0 : i32
    %c0_i32_0 = arith.constant 0 : i32
    %c0_i32_1 = arith.constant 0 : i32
    %c0_i32_2 = arith.constant 0 : i32
    return %c0_i32, %c0_i32_0, %c0_i32_1 : i32, i32, i32
  }
  func.func @transform_29(%arg0: i32) -> (i32, i32) {
    %c0_i32 = arith.constant 0 : i32
    %c0_i32_0 = arith.constant 0 : i32
    %c0_i32_1 = arith.constant 0 : i32
    return %c0_i32, %c0_i32_0 : i32, i32
  }
  func.func @transform_30(%arg0: i32) -> (i32, i32) {
    %c0_i32 = arith.constant 0 : i32
    %c0_i32_0 = arith.constant 0 : i32
    %c0_i32_1 = arith.constant 0 : i32
    return %c0_i32, %c0_i32_0 : i32, i32
  }
  func.func @transform_31(%arg0: i32) -> (i32, i32) {
    %c0_i32 = arith.constant 0 : i32
    %c0_i32_0 = arith.constant 0 : i32
    %c0_i32_1 = arith.constant 0 : i32
    return %c0_i32, %c0_i32_0 : i32, i32
  }
  func.func @transform_32(%arg0: i32) -> (i32, i32) {
    %c0_i32 = arith.constant 0 : i32
    %c0_i32_0 = arith.constant 0 : i32
    %c0_i32_1 = arith.constant 0 : i32
    return %c0_i32, %c0_i32_0 : i32, i32
  }
  func.func @transform_33(%arg0: i32) -> (i32, i32) {
    %c0_i32 = arith.constant 0 : i32
    %c0_i32_0 = arith.constant 0 : i32
    %c0_i32_1 = arith.constant 0 : i32
    return %c0_i32, %c0_i32_0 : i32, i32
  }
  func.func @transform_34(%arg0: i32) -> (i32, i32) {
    %c0_i32 = arith.constant 0 : i32
    %c0_i32_0 = arith.constant 0 : i32
    %c0_i32_1 = arith.constant 0 : i32
    return %c0_i32, %c0_i32_0 : i32, i32
  }
  func.func @transform_35(%arg0: i32) -> (i32, i32, i32) {
    %c0_i32 = arith.constant 0 : i32
    %c0_i32_0 = arith.constant 0 : i32
    %c0_i32_1 = arith.constant 0 : i32
    return %arg0, %c0_i32, %c0_i32_0 : i32, i32, i32
  }
  func.func @transform_36(%arg0: i32) -> (i32, i32, i32) {
    %c0_i32 = arith.constant 0 : i32
    %c0_i32_0 = arith.constant 0 : i32
    %c0_i32_1 = arith.constant 0 : i32
    return %arg0, %c0_i32, %c0_i32_0 : i32, i32, i32
  }
  func.func @transform_37(%arg0: i32) -> (i32, i32, i32) {
    %c0_i32 = arith.constant 0 : i32
    %c0_i32_0 = arith.constant 0 : i32
    %c0_i32_1 = arith.constant 0 : i32
    return %arg0, %c0_i32, %c0_i32_0 : i32, i32, i32
  }
  func.func @transform_38(%arg0: i32) -> (i32, i32, i32, i32) {
    %c0_i32 = arith.constant 0 : i32
    %c0_i32_0 = arith.constant 0 : i32
    %c0_i32_1 = arith.constant 0 : i32
    %c0_i32_2 = arith.constant 0 : i32
    return %arg0, %c0_i32, %c0_i32_0, %c0_i32_1 : i32, i32, i32, i32
  }
  func.func @transform_39(%arg0: i32) -> (i32, i32, i32, i32) {
    %c0_i32 = arith.constant 0 : i32
    %c0_i32_0 = arith.constant 0 : i32
    %c0_i32_1 = arith.constant 0 : i32
    %c0_i32_2 = arith.constant 0 : i32
    return %arg0, %c0_i32, %c0_i32_0, %c0_i32_1 : i32, i32, i32, i32
  }
}

</mosaic_0001>

<bundles_post_ra>
// kernel: tpu_custom_call.1
= control target key start
LH: loop header
LB: loop body
LE: loop exit
PB: predicated region body
PF: predicated region fallthrough
CT: control target
= control target key end

     0   :  { %s9571_s6 = smov 1   ;;  %s9572_s10 = smov 2   ;;  %s11379_s0 = inlined_call_operand.smem [shape: u32[40], index: -1, kind: input, shape index: {}] }
   0x1   :  { %s9632_s5 = sld [smem:[%s11379_s0]]   ;;  %s9573_s14 = smov 3  }
   0x2   :  { %s9637_s9 = sld [smem:[%s11379_s0 + %s9571_s6]]   ;;  %s9574_s18 = smov 4  }
   0x3   :  { %s9642_s13 = sld [smem:[%s11379_s0 + %s9572_s10]]   ;;  %s9575_s22 = smov 5  }
   0x4   :  { %s9647_s17 = sld [smem:[%s11379_s0 + %s9573_s14]]   ;;  %s9576_s26 = smov 6  }
   0x5   :  { %s9652_s21 = sld [smem:[%s11379_s0 + %s9574_s18]]   ;;  %s9577_s30 = smov 7  }
   0x6   :  { %s9657_s25 = sld [smem:[%s11379_s0 + %s9575_s22]]   ;;  %s9578_s4 = smov 8  }
   0x7   :  { %11433 = sst [smem:[#allocation14_spill]] %s9632_s5  ;;  %s9579_s10 = smov 9  }
   0x8   :  { %11434 = sst [smem:[#allocation15_spill]] %s9637_s9  ;;  %s9580_s15 = smov 10  }
   0x9   :  { %11435 = sst [smem:[#allocation16_spill]] %s9642_s13  ;;  %s9581_s20 = smov 11  }
   0xa   :  { %11436 = sst [smem:[#allocation17_spill]] %s9647_s17  ;;  %s9583_s1 = smov 13  }
   0xb   :  { %11437 = sst [smem:[#allocation18_spill]] %s9652_s21  ;;  %s9584_s7 = smov 14  }
   0xc   :  { %11438 = sst [smem:[#allocation19_spill]] %s9657_s25  ;;  %s9586_s22 = smov 16  }
   0xd   :  { %s9662_s29 = sld [smem:[%s11379_s0 + %s9576_s26]]   ;;  %s9582_s26 = smov 12  }
   0xe   :  { %s9667_s3 = sld [smem:[%s11379_s0 + %s9577_s30]]   ;;  %s9587_s28 = smov 17  }
   0xf   :  { %s9672_s8 = sld [smem:[%s11379_s0 + %s9578_s4]]  }
  0x10   :  { %s9677_s14 = sld [smem:[%s11379_s0 + %s9579_s10]]  }
  0x11   :  { %s9682_s19 = sld [smem:[%s11379_s0 + %s9580_s15]]   ;;  %s9585_s15 = smov 15  }
  0x12   :  { %s9687_s24 = sld [smem:[%s11379_s0 + %s9581_s20]]  }
  0x13   :  { %11439 = sst [smem:[#allocation20_spill]] %s9662_s29 }
  0x14   :  { %11440 = sst [smem:[#allocation21_spill]] %s9667_s3 }
  0x15   :  { %11441 = sst [smem:[#allocation22_spill]] %s9672_s8 }
  0x16   :  { %11442 = sst [smem:[#allocation23_spill]] %s9677_s14 }
  0x17   :  { %11443 = sst [smem:[#allocation24_spill]] %s9682_s19 }
  0x18   :  { %11444 = sst [smem:[#allocation25_spill]] %s9687_s24 }
  0x19   :  { %s9692_s30 = sld [smem:[%s11379_s0 + %s9582_s26]]  }
  0x1a   :  { %s9697_s6 = sld [smem:[%s11379_s0 + %s9583_s1]]  }
  0x1b   :  { %s9702_s12 = sld [smem:[%s11379_s0 + %s9584_s7]]   ;;  %s9588_s7 = smov 18  }
  0x1c   :  { %s9707_s20 = sld [smem:[%s11379_s0 + %s9585_s15]]   ;;  %s9589_s15 = smov 19  }
  0x1d   :  { %s9712_s27 = sld [smem:[%s11379_s0 + %s9586_s22]]   ;;  %s9590_s22 = smov 20  }
  0x1e   :  { %s9717_s4 = sld [smem:[%s11379_s0 + %s9587_s28]]   ;;  %s9591_s28 = smov 21  }
  0x1f   :  { %11445 = sst [smem:[#allocation26_spill]] %s9692_s30 }
  0x20   :  { %11446 = sst [smem:[#allocation27_spill]] %s9697_s6 }
  0x21   :  { %11447 = sst [smem:[#allocation28_spill]] %s9702_s12 }
  0x22   :  { %11448 = sst [smem:[#allocation29_spill]] %s9707_s20 }
  0x23   :  { %11449 = sst [smem:[#allocation30_spill]] %s9712_s27 }
  0x24   :  { %11450 = sst [smem:[#allocation31_spill]] %s9717_s4 }
  0x25   :  { %s9722_s30 = sld [smem:[%s11379_s0 + %s9588_s7]]   ;;  %s9592_s7 = smov 22  }
  0x26   :  { %s9727_s20 = sld [smem:[%s11379_s0 + %s9589_s15]]   ;;  %s9593_s15 = smov 23  }
  0x27   :  { %s9732_s27 = sld [smem:[%s11379_s0 + %s9590_s22]]   ;;  %s9594_s22 = smov 24  }
  0x28   :  { %s9737_s4 = sld [smem:[%s11379_s0 + %s9591_s28]]   ;;  %s9595_s28 = smov 25  }
  0x2b   :  { %11451 = sst [smem:[#allocation32_spill]] %s9722_s30 }
  0x2c   :  { %11452 = sst [smem:[#allocation33_spill]] %s9727_s20 }
  0x2d   :  { %11453 = sst [smem:[#allocation34_spill]] %s9732_s27 }
  0x2e   :  { %11454 = sst [smem:[#allocation35_spill]] %s9737_s4 }
  0x2f   :  { %s9742_s30 = sld [smem:[%s11379_s0 + %s9592_s7]]   ;;  %s9596_s7 = smov 26  }
  0x30   :  { %s9747_s20 = sld [smem:[%s11379_s0 + %s9593_s15]]   ;;  %s9597_s15 = smov 27  }
  0x31   :  { %s9752_s27 = sld [smem:[%s11379_s0 + %s9594_s22]]   ;;  %s9598_s22 = smov 28  }
  0x32   :  { %s9757_s4 = sld [smem:[%s11379_s0 + %s9595_s28]]   ;;  %s9599_s28 = smov 29  }
  0x35   :  { %11455 = sst [smem:[#allocation36_spill]] %s9742_s30 }
  0x36   :  { %11456 = sst [smem:[#allocation37_spill]] %s9747_s20 }
  0x37   :  { %11457 = sst [smem:[#allocation38_spill]] %s9752_s27 }
  0x38   :  { %11458 = sst [smem:[#allocation39_spill]] %s9757_s4 }
  0x39   :  { %s9762_s30 = sld [smem:[%s11379_s0 + %s9596_s7]]   ;;  %s9600_s7 = smov 30  }
  0x3a   :  { %s9767_s20 = sld [smem:[%s11379_s0 + %s9597_s15]]   ;;  %s9601_s15 = smov 31  }
  0x3b   :  { %s9772_s27 = sld [smem:[%s11379_s0 + %s9598_s22]]   ;;  %s9602_s22 = smov 32  }
  0x3c   :  { %s9777_s4 = sld [smem:[%s11379_s0 + %s9599_s28]]   ;;  %s9603_s28 = smov 33  }
  0x3f   :  { %11459 = sst [smem:[#allocation40_spill]] %s9762_s30 }
  0x40   :  { %11460 = sst [smem:[#allocation41_spill]] %s9767_s20 }
  0x41   :  { %11461 = sst [smem:[#allocation42_spill]] %s9772_s27 }
  0x42   :  { %11462 = sst [smem:[#allocation43_spill]] %s9777_s4 }
  0x43   :  { %s9782_s30 = sld [smem:[%s11379_s0 + %s9600_s7]]   ;;  %s9604_s7 = smov 34  }
  0x44   :  { %s9787_s20 = sld [smem:[%s11379_s0 + %s9601_s15]]   ;;  %s9605_s15 = smov 35  }
  0x45   :  { %s9792_s27 = sld [smem:[%s11379_s0 + %s9602_s22]]   ;;  %s9606_s22 = smov 36  }
  0x46   :  { %s9797_s4 = sld [smem:[%s11379_s0 + %s9603_s28]]   ;;  %s9607_s28 = smov 37  }
  0x49   :  { %11463 = sst [smem:[#allocation44_spill]] %s9782_s30 }
  0x4a   :  { %11464 = sst [smem:[#allocation45_spill]] %s9787_s20 }
  0x4b   :  { %11465 = sst [smem:[#allocation46_spill]] %s9792_s27 }
  0x4c   :  { %11466 = sst [smem:[#allocation47_spill]] %s9797_s4 }
  0x4d   :  { %s9802_s30 = sld [smem:[%s11379_s0 + %s9604_s7]]   ;;  %s9608_s7 = smov 38  }
  0x4e   :  { %s9807_s20 = sld [smem:[%s11379_s0 + %s9605_s15]]   ;;  %s9609_s15 = smov 39  }
  0x4f   :  { %s9812_s27 = sld [smem:[%s11379_s0 + %s9606_s22]]  }
  0x50   :  { %s9817_s4 = sld [smem:[%s11379_s0 + %s9607_s28]]  }
  0x53   :  { %11467 = sst [smem:[#allocation48_spill]] %s9802_s30 }
  0x54   :  { %11468 = sst [smem:[#allocation49_spill]] %s9807_s20 }
  0x55   :  { %11469 = sst [smem:[#allocation50_spill]] %s9812_s27 }
  0x56   :  { %s9822_s30 = sld [smem:[%s11379_s0 + %s9608_s7]]  }
  0x57   :  { %s9827_s20 = sld [smem:[%s11379_s0 + %s9609_s15]]  }
  0x5c   :  { %11470 = sst [smem:[#allocation51_spill]] %s9822_s30 }
  0x5d   :  { %85 = vsyncpa [#allocation4], 0 }
  0x5e   :  { %87 = vsyncpa [#allocation4 + $0x1], 0 }
  0x5f   :  { %88 = vsyncpa [#allocation6], 0 }
  0x60   :  { %90 = vsyncpa [#allocation6 + $0x1], 0 }
  0x61   :  { %91 = vsyncpa [#allocation9], 0 }
  0x62   :  { %93 = vsyncpa [#allocation9 + $0x1], 0  ;;  %s9829_s22 = smov 0   ;;  %s9831_s23 = smov 0  }
  0x63   :  { %s9833_s26 = smov 0   ;;  %s9835_s28 = smov 0  }
  0x64 LB: > { %s11471_s30 = sld [smem:[#allocation51_spill]]  ;;  %s11472_s29 = sld [smem:[#allocation20_spill]]  ;;  %s9569_s28 = sphi %s9835_s28, %s11528_s28   ;;  %s9565_s26 = sphi %s9833_s26, %s11527_s26   ;;  %s9561_s23 = sphi %s9831_s23, %s11526_s23   ;;  %s9557_s22 = sphi %s9829_s22, %s11525_s22  }
  0x65   : > { %s11473_s27 = sld [smem:[#allocation50_spill]]  ;;  %s11474_s25 = sld [smem:[#allocation19_spill]] }
  0x66   : > { %s11475_s21 = sld [smem:[#allocation18_spill]]  ;;  %s11476_s9 = sld [smem:[#allocation15_spill]] }
  0x67   : > { %s11477_s17 = sld [smem:[#allocation17_spill]]  ;;  %s11478_s13 = sld [smem:[#allocation16_spill]] }
  0x68   : > { %s11479_s12 = sld [smem:[#allocation28_spill]]  ;;  %s11480_s8 = sld [smem:[#allocation22_spill]] }
  0x69   : > { %s11481_s6 = sld [smem:[#allocation27_spill]]  ;;  %s11482_s3 = sld [smem:[#allocation21_spill]] }
  0x6a   : > { %s9850_s0 = sadd.s32 4294967295, %s9569_s28   ;;  %s11393_s1 = sadd.s32 4294967294, %s9569_s28  }
  0x6b   : > { %s9854_s2 = sadd.s32 1, %s9569_s28   ;;  %s846_s7 = sadd.s32 1, %s9565_s26 }
  0x6c   : > { %s843_s10 = ssub.s32 %s9569_s28, %s9854_s2  ;;  %p856_p0 = scmp.ne.s32.totalorder %s9565_s26, %s9561_s23 }
  0x6d   : > { %p844_p1 = scmp.eq.s32.totalorder %s843_s10, 0  ;;  %p857_p2 = scmp.eq.s32.totalorder %s9850_s0, 1 }
  0x6e   : > { %p862_p3 = scmp.ne.s32.totalorder %s9561_s23, %s9557_s22  ;;  %p863_p4 = scmp.eq.s32.totalorder %s11393_s1, 1 }
  0x6f   : > { %s9867_s11 = scalar_select %p844_p1, %s9565_s26, %s846_s7  }
  0x70   : > { %p9869_p5 = por %p857_p2, %p856_p0  ;;  %p9873_p6 = por %p863_p4, %p862_p3 }
  0x71   : > { %11483 = sst [smem:[#allocation52_spill]] %s9867_s11  ;;  %p7781_p7 = scmp.ge.s32.totalorder %s9569_s28, 1 }
  0x72   : > { %p1094_p8 = scmp.lt.s32.totalorder %s9569_s28, 3 }
  0x74   : > { %p1095_p9 = pnand %p7781_p7, %p1094_p8 }
  0x75   : > { %s11486_s5 = sld [smem:[#allocation14_spill]] (!%p1095_p9)  ;;  %p1209_p10 = scmp.lt.s32.totalorder (!%p1095_p9), %s9850_s0, 1  ;;  %vm1224_vm0 = vcmask (!%p1095_p9), 261120   ;;  %v9121_v3 = vld [vmem:[%s11477_s17] sm:$0xff] (!%p1095_p9)   ;;  %v9610_v5 = vmov (!%p1095_p9), 0.0   ;;  %v9123_v6 = vld [vmem:[%s11477_s17 + $0x8] sm:$0xff] (!%p1095_p9)   ;;  %v1217_v11 = vlaneseq (!%p1095_p9) }
  0x76   : > { %1098 = sbr.rel (%p1095_p9) target bundleno = 9322 (0x246a), region = 160  ;;  %v9122_v4 = vld [vmem:[%s11477_s17 + $0x20] sm:$0xff] (!%p1095_p9)   ;;  %8218 = vmatprep.subr.bf16.mxu1 (!%p1095_p9), %v9610_v5  ;;  %8234 = vmatprep.subr.bf16.mxu0 (!%p1095_p9), %v9610_v5  ;;  %v9124_v7 = vld [vmem:[%s11477_s17 + $0x28] sm:$0xff] (!%p1095_p9)   ;;  %s11487_s14 = sld [smem:[#allocation23_spill]] (!%p1095_p9)  ;;  %vm9611_vm1 = vmmov (!%p1095_p9), 0   ;;  %v9125_v21 = vld [vmem:[%s11477_s17 + $0x10] sm:$0xff] (!%p1095_p9)  }
  0x77   : > { %8219 = vmatpush3.bf16.msra.mxu1 (!%p1095_p9), %v9121_v3  ;;  %8235 = vmatpush3.bf16.msra.mxu0 (!%p1095_p9), %v9122_v4  ;;  %v9901_v8 = vld [vmem:[%s11476_s9] sm:$0xff] (!%p1095_p9)  ;;  %v9906_v13 = vshrl.u32 (!%p1095_p9), %v1217_v11, 7  ;;  %v9127_v24 = vld [vmem:[%s11477_s17 + $0x18] sm:$0xff] (!%p1095_p9)   ;;  %v9128_v25 = vld [vmem:[%s11477_s17 + $0x48] sm:$0xff] (!%p1095_p9)   ;;  %vm1808_vm2 = vcmask (!%p1095_p9), 1041408   ;;  %vm1804_vm3 = vcmask (!%p1095_p9), 31744  }
  0x78   : > { %8220 = vmatprep.subr.bf16.mxu1 (!%p1095_p9), %v9610_v5  ;;  %8236 = vmatprep.subr.bf16.mxu0 (!%p1095_p9), %v9610_v5  ;;  %v9126_v22 = vld [vmem:[%s11477_s17 + $0x40] sm:$0xff] (!%p1095_p9)   ;;  %v9129_v26 = vld [vmem:[%s11477_s17 + $0x30] sm:$0xff] (!%p1095_p9)   ;;  %v9131_v28 = vld [vmem:[%s11477_s17 + $0x38] sm:$0xff] (!%p1095_p9)   ;;  %vm2557_vm4 = vcmask (!%p1095_p9), 64512   ;;  %vm3165_vm5 = vcmask (!%p1095_p9), 1043456   ;;  %s10339_s1 = sand.u32 (!%p1095_p9), 1, %s9561_s23  }
  0x79   : > { %8222 = vmatprep.mubr.msk.bf16.mxu1 (!%p1095_p9), %vm9611_vm1, %v9610_v5  ;;  %8238 = vmatprep.mubr.msk.bf16.mxu0 (!%p1095_p9), %vm9611_vm1, %v9610_v5  ;;  %v9910_v16 = vsub.s32 (!%p1095_p9), 0, %v9906_v13  ;;  %v9130_v27 = vld [vmem:[%s11477_s17 + $0x60] sm:$0xff] (!%p1095_p9)   ;;  %v9132_v29 = vld [vmem:[%s11477_s17 + $0x68] sm:$0xff] (!%p1095_p9)   ;;  %v9133_v30 = vld [vmem:[%s11477_s17 + $0x50] sm:$0xff] (!%p1095_p9)   ;;  %vm3346_vm7 = vcmask (!%p1095_p9), 130112   ;;  %vm3352_vm8 = vcmask (!%p1095_p9), 195712  }
  0x7a   : > { %v9134_v31 = vld [vmem:[%s11477_s17 + $0x58] sm:$0xff] (!%p1095_p9)   ;;  %v9135_v32 = vld [vmem:[%s11477_s17 + $0x70] sm:$0xff] (!%p1095_p9)   ;;  %v1216_v34 = vld [vmem:[%s11478_s13] sm:$0xff] (!%p1095_p9)  ;;  %vm3358_vm9 = vcmask (!%p1095_p9), 261312   ;;  %s11490_s19 = sld [smem:[#allocation24_spill]] (!%p1095_p9)  ;;  %s11491_s24 = sld [smem:[#allocation25_spill]] (!%p1095_p9) }
  0x7b   : > { %8221 = vmatpush3.bf16.msra.mxu1 (!%p1095_p9), %v9123_v6  ;;  %8237 = vmatpush3.bf16.msra.mxu0 (!%p1095_p9), %v9124_v7  ;;  %v9136_v33 = vld [vmem:[%s11477_s17 + $0x78] sm:$0xff] (!%p1095_p9)   ;;  %v1797_v3 = vld [vmem:[%s11472_s29] sm:$0x3] (!%p1095_p9)  ;;  %vm3563_vm10 = vcmask (!%p1095_p9), 523264  }
  0x7c   : > { %8226 = vmatprep.subr.bf16.mxu1 (!%p1095_p9), %v9610_v5  ;;  %8250 = vmatprep.subr.bf16.mxu0 (!%p1095_p9), %v9610_v5  ;;  %v1222_v14 = vld [vmem:[%s11487_s14] sm:$0x1] (!%p1095_p9)  ;;  %v1810_v6 = vsel (!%p1095_p9), %vm1808_vm2, %v1797_v3, 0  ;;  %s11503_s14 = sld [smem:[#allocation33_spill]] (!%p1095_p9) }
  0x7d   : > { %s1210_s18 = scalar_select %p1209_p10, %s9850_s0, 1  ;;  %v1233_v15 = vadd.f32 1.0, %v1222_v14 }
  0x7f   : > { %s7787_s7 = sshll.u32 %s1210_s18, 3  ;;  %s11396_s18 = smov 4   ;;  %v1238_v17 = vrot.slane %v1233_v15, %v9910_v16  ;;  %v1798_v15 = vld [vmem:[%s11472_s29 + $0x2] sm:$0x3] }
  0x80   : > { %s9882_s10 = scalar_lea.vmem %s11486_s5, %s7787_s7  ;;  %s11394_s7 = smov 124  }
  0x81   : > { %v1214_v0 = vld [vmem:[%s9882_s10] sm:$0xff]  ;;  %s11400_s5 = smov 24  }
  0x82   : > { %v1223_v1 = vmul.f32 %v1214_v0, %v1214_v0 }
  0x84   : > { %v1225_v2 = vsel %vm1224_vm0, %v1223_v1, 0.0 }
  0x85   : > { %1226 = vadd.xlane.f32.xlu0 %v1225_v2 }
  0x9b   : > { %1726 = vrot.lane.b32.xlu0 %v9901_v8, %s11396_s18 }
 0x112   : > { %v1227_v9 = vpop.xlane.xlu0 %1226 }
 0x113   : > { %v1229_v10 = vmul.f32 0.03125, %v1227_v9 }
 0x115   : > { %v1230_v12 = vadd.f32 1e-06, %v1229_v10 }
 0x117   : > { %9193 = vrsqrt.f32 %v1230_v12 }
 0x121   : > { %v9194_v18 = vpop.eup %9193 }
 0x122   : > { %v1232_v19 = vmul.f32 %v9194_v18, %v1214_v0  ;;  %v9997_v18 = vpop.permute.xlu0 %1726 }
 0x124   : > { %v1240_v20 = vmul.f32 %v1238_v17, %v1232_v19  ;;  %v1859_v17 = vsel %vm1808_vm2, %v1798_v15, 0 }
 0x126   : > { %v1241_v23 = vpack.c.bf16 %v1240_v20, %v1240_v20 }
 0x128   : > { %8223 = vmatmul.mubr.msk.bf16.vlgmr.msra.gmra.mrb[0].mxu1 %vm1224_vm0, %v1241_v23  ;;  %8239 = vmatmul.mubr.msk.bf16.vlgmr.msra.gmra.mrb[0].mxu0 %vm1224_vm0, %v1241_v23 }
 0x129   : > { %8227 = vmatpush3.bf16.msra.mxu1 %v9125_v21  ;;  %8251 = vmatpush3.bf16.msra.mxu0 %v9126_v22 }
 0x12a   : > { %8228 = vmatprep.subr.bf16.mxu1 %v9610_v5  ;;  %8252 = vmatprep.subr.bf16.mxu0 %v9610_v5 }
 0x12b   : > { %8230 = vmatprep.mubr.msk.bf16.mxu1 %vm9611_vm1, %v9610_v5  ;;  %8254 = vmatprep.mubr.msk.bf16.mxu0 %vm9611_vm1, %v9610_v5 }
 0x12d   : > { %8229 = vmatpush3.bf16.msra.mxu1 %v9127_v24  ;;  %8253 = vmatpush3.bf16.msra.mxu0 %v9128_v25 }
 0x12e   : > { %8242 = vmatprep.subr.bf16.mxu1 %v9610_v5  ;;  %8266 = vmatprep.subr.bf16.mxu0 %v9610_v5 }
 0x130   : > { %8231 = vmatmul.mubr.msk.bf16.vlgmr.msra.gmra.mrb[4].mxu1 %vm1224_vm0, %v1241_v23  ;;  %8255 = vmatmul.mubr.msk.bf16.vlgmr.msra.gmra.mrb[4].mxu0 %vm1224_vm0, %v1241_v23 }
 0x131   : > { %8243 = vmatpush3.bf16.msra.mxu1 %v9129_v26  ;;  %8267 = vmatpush3.bf16.msra.mxu0 %v9130_v27 }
 0x132   : > { %8244 = vmatprep.subr.bf16.mxu1 %v9610_v5  ;;  %8268 = vmatprep.subr.bf16.mxu0 %v9610_v5 }
 0x133   : > { %8246 = vmatprep.mubr.msk.bf16.mxu1 %vm9611_vm1, %v9610_v5  ;;  %8270 = vmatprep.mubr.msk.bf16.mxu0 %vm9611_vm1, %v9610_v5 }
 0x135   : > { %8245 = vmatpush3.bf16.msra.mxu1 %v9131_v28  ;;  %8269 = vmatpush3.bf16.msra.mxu0 %v9132_v29 }
 0x136   : > { %8258 = vmatprep.subr.bf16.mxu1 %v9610_v5  ;;  %8282 = vmatprep.subr.bf16.mxu0 %v9610_v5 }
 0x138   : > { %8247 = vmatmul.mubr.msk.bf16.vlgmr.msra.gmra.mrb[8].mxu1 %vm1224_vm0, %v1241_v23  ;;  %8271 = vmatmul.mubr.msk.bf16.vlgmr.msra.gmra.mrb[8].mxu0 %vm1224_vm0, %v1241_v23 }
 0x139   : > { %8259 = vmatpush3.bf16.msra.mxu1 %v9133_v30  ;;  %8262 = vmatprep.mubr.msk.bf16.mxu1 %vm9611_vm1, %v9610_v5 }
 0x13a   : > { %8260 = vmatprep.subr.bf16.mxu1 %v9610_v5  ;;  %8284 = vmatprep.mubr.msk.bf16.mxu0 %vm9611_vm1, %v9610_v5 }
 0x13b   : > { %8283 = vmatpush3.bf16.msra.mxu0 %v1810_v6 }
 0x13c   : > { %8294 = vmatprep.subr.bf16.mxu0 %v9610_v5 }
 0x13d   : > { %8261 = vmatpush3.bf16.msra.mxu1 %v9134_v31 }
 0x13e   : > { %8274 = vmatprep.subr.bf16.mxu1 %v9610_v5 }
 0x140   : > { %8263 = vmatmul.mubr.msk.bf16.vlgmr.msra.gmra.mrb[12].mxu1 %vm1224_vm0, %v1241_v23 }
 0x141   : > { %8275 = vmatpush3.bf16.msra.mxu1 %v9135_v32  ;;  %8278 = vmatprep.mubr.msk.bf16.mxu1 %vm9611_vm1, %v9610_v5 }
 0x142   : > { %8276 = vmatprep.subr.bf16.mxu1 %v9610_v5 }
 0x145   : > { %8277 = vmatpush3.bf16.msra.mxu1 %v9136_v33 }
 0x146   : > { %8288 = vmatprep.subr.bf16.mxu1 %v9610_v5 }
 0x148   : > { %8279 = vmatmul.mubr.msk.bf16.vlgmr.msra.gmra.mrb[16].mxu1 %vm1224_vm0, %v1241_v23 }
 0x149   : > { %8290 = vmatprep.mubr.msk.bf16.mxu1 %vm9611_vm1, %v9610_v5  ;;  %8289 = vmatpush3.bf16.msra.mxu1 %v1859_v17  ;;  %v1792_v17 = vld [vmem:[%s11474_s25 + $0x6] sm:$0x3] }
 0x14a   : > { %8300 = vmatprep.subr.bf16.mxu1 %v9610_v5 }
 0x1fb   : > { %v9962_v35 = vpop.f32.mrb[0].mxu1  ;;  %v9964_v36 = vpop.f32.mrb[0].mxu0 }
 0x1fc   : > { %v8224_v37 = vpop.f32.mrb[1].mxu1  ;;  %v8240_v38 = vpop.f32.mrb[1].mxu0  ;;  %v1733_v39 = vmul.f32 %v9962_v35, %v1216_v34  ;;  %v1735_v53 = vmul.f32 %v9964_v36, %v1216_v34  ;;  %v1729_v19 = vmul.f32 %v9997_v18, %v9962_v35  ;;  %v1731_v27 = vmul.f32 %v9997_v18, %v9964_v36 }
 0x1fd   : > { %v1326_v40 = vpop.f32.mrb[2].mxu1  ;;  %v1430_v41 = vpop.f32.mrb[2].mxu0  ;;  %v1693_v6 = vmul.f32 %v9962_v35, %v9901_v8 }
 0x1fe   : > { %v8241_v42 = vpop.f32.mrb[3].mxu0  ;;  %1741 = vrot.lane.b32.xlu1 %v1733_v39, %s11396_s18  ;;  %v8225_v43 = vpop.f32.mrb[3].mxu1 }
 0x203   : > { %v9968_v44 = vpop.f32.mrb[4].mxu1  ;;  %v9970_v45 = vpop.f32.mrb[4].mxu0 }
 0x204   : > { %v8232_v46 = vpop.f32.mrb[5].mxu1  ;;  %v8256_v47 = vpop.f32.mrb[5].mxu0  ;;  %v1734_v48 = vmul.f32 %v9968_v44, %v1216_v34  ;;  %v1773_v1 = vmul.f32 %v9970_v45, %v1216_v34  ;;  %v1730_v23 = vmul.f32 %v9997_v18, %v9968_v44  ;;  %v1771_v39 = vmul.f32 %v9997_v18, %v9970_v45 }
 0x205   : > { %v1378_v49 = vpop.f32.mrb[6].mxu1  ;;  %v1534_v50 = vpop.f32.mrb[6].mxu0 }
 0x206   : > { %v8257_v51 = vpop.f32.mrb[7].mxu0  ;;  %1743 = vrot.lane.b32.xlu1 %v1734_v48, %s11396_s18  ;;  %v8233_v52 = vpop.f32.mrb[7].mxu1 }
 0x20a   : > { %1745 = vrot.lane.b32.xlu1 %v1735_v53, %s11396_s18 }
 0x20b   : > { %v9976_v54 = vpop.f32.mrb[8].mxu1  ;;  %v9978_v55 = vpop.f32.mrb[8].mxu0 }
 0x20c   : > { %v8248_v56 = vpop.f32.mrb[9].mxu1  ;;  %v8272_v57 = vpop.f32.mrb[9].mxu0  ;;  %v1736_v58 = vmul.f32 %v9976_v54, %v1216_v34  ;;  %v1732_v31 = vmul.f32 %v9997_v18, %v9976_v54 }
 0x20d   : > { %v1482_v59 = vpop.f32.mrb[10].mxu1  ;;  %v1638_v60 = vpop.f32.mrb[10].mxu0  ;;  %v1799_v56 = vld [vmem:[%s11472_s29 + $0x4] sm:$0x3] }
 0x20e   : > { %v8273_v61 = vpop.f32.mrb[11].mxu0  ;;  %1747 = vrot.lane.b32.xlu1 %v1736_v58, %s11396_s18  ;;  %v8249_v62 = vpop.f32.mrb[11].mxu1  ;;  %v1908_v57 = vsel %vm1808_vm2, %v1799_v56, 0  ;;  %v1800_v59 = vld [vmem:[%s11472_s29 + $0x6] sm:$0x3] }
 0x20f   : > { %v1957_v60 = vsel %vm1808_vm2, %v1800_v59, 0  ;;  %v1789_v62 = vld [vmem:[%s11474_s25] sm:$0x3] }
 0x212   : > { %1698 = vrot.lane.b32.xlu1 %v1216_v34, %s11396_s18 }
 0x213   : > { %v9983_v63 = vpop.f32.mrb[12].mxu1 }
 0x214   : > { %v8264_v0 = vpop.f32.mrb[13].mxu1  ;;  %v1774_v7 = vmul.f32 %v9983_v63, %v1216_v34  ;;  %v1772_v46 = vmul.f32 %v9997_v18, %v9983_v63  ;;  %v1758_v56 = vmul.f32 %v9983_v63, %v9901_v8 }
 0x215   : > { %v1586_v2 = vpop.f32.mrb[14].mxu1  ;;  %v2003_v0 = vsel %vm1808_vm2, %v1789_v62, 0 }
 0x216   : > { %1777 = vrot.lane.b32.xlu1 %v1773_v1, %s11396_s18  ;;  %v8265_v4 = vpop.f32.mrb[15].mxu1  ;;  %v1790_v2 = vld [vmem:[%s11474_s25 + $0x2] sm:$0x3] }
 0x217   : > { %v2049_v3 = vsel %vm1808_vm2, %v1790_v2, 0 }
 0x21a   : > { %1779 = vrot.lane.b32.xlu1 %v1774_v7, %s11396_s18 }
 0x21b   : > { %v9992_v9 = vpop.f32.mrb[16].mxu1 }
 0x21c   : > { %v8280_v10 = vpop.f32.mrb[17].mxu1 }
 0x21d   : > { %v1690_v12 = vpop.f32.mrb[18].mxu1  ;;  %v1791_v10 = vld [vmem:[%s11474_s25 + $0x4] sm:$0x3] }
 0x21e   : > { %v8281_v14 = vpop.f32.mrb[19].mxu1 }
 0x21f   : > { %v1694_v14 = vmul.f32 %v9968_v44, %v9901_v8 }
 0x270   : > { %v1742_v20 = vpop.permute.xlu1 %1741 }
 0x271   : > { %v1753_v21 = vadd.f32 %v1742_v20, %v1729_v19 }
 0x273   : > { %v1793_v22 = vpack.c.bf16 %v1753_v21, %v1753_v21  ;;  %v2095_v21 = vsel %vm1808_vm2, %v1791_v10, 0 }
 0x275   : > { %1802 = vrot.lane.b32.xlu0 %v1793_v22, %s11394_s7 }
 0x278   : > { %v1744_v24 = vpop.permute.xlu1 %1743 }
 0x279   : > { %v1754_v25 = vadd.f32 %v1744_v24, %v1730_v23  ;;  %v1695_v23 = vmul.f32 %v9964_v36, %v9901_v8  ;;  %v2141_v24 = vsel %vm1808_vm2, %v1792_v17, 0 }
 0x27b   : > { %v1794_v26 = vpack.c.bf16 %v1754_v25, %v1754_v25 }
 0x27c   : > { %v1746_v28 = vpop.permute.xlu1 %1745 }
 0x27d   : > { %v1755_v29 = vadd.f32 %v1746_v28, %v1731_v27  ;;  %1853 = vrot.lane.b32.xlu1 %v1794_v26, %s11394_s7  ;;  %v1696_v26 = vmul.f32 %v9976_v54, %v9901_v8  ;;  %v2192_v28 = vld [vmem:[%s11480_s8 + $0x2] sm:$0x3] }
 0x27f   : > { %v1795_v30 = vpack.c.bf16 %v1755_v29, %v1755_v29 }
 0x280   : > { %v1748_v32 = vpop.permute.xlu1 %1747 }
 0x281   : > { %v1756_v33 = vadd.f32 %v1748_v32, %v1732_v31  ;;  %1902 = vrot.lane.b32.xlu0 %v1795_v30, %s11394_s7  ;;  %v2193_v32 = vld [vmem:[%s11480_s8 + $0x4] sm:$0x3] }
 0x283   : > { %v1796_v34 = vpack.c.bf16 %v1756_v33, %v1756_v33  ;;  %v2194_v33 = vld [vmem:[%s11480_s8 + $0x6] sm:$0x3] }
 0x284   : > { %v10010_v37 = vpop.permute.xlu1 %1698 }
 0x285   : > { %1951 = vrot.lane.b32.xlu1 %v1796_v34, %s11394_s7  ;;  %v1701_v38 = vmul.f32 %v10010_v37, %v9962_v35  ;;  %v1702_v40 = vmul.f32 %v10010_v37, %v9968_v44  ;;  %v1703_v43 = vmul.f32 %v10010_v37, %v9964_v36  ;;  %v1704_v47 = vmul.f32 %v10010_v37, %v9976_v54  ;;  %v2191_v36 = vld [vmem:[%s11480_s8] sm:$0x3]  ;;  %s11498_s8 = smov 8  }
 0x286   : > { %v1759_v52 = vmul.f32 %v10010_v37, %v9970_v45  ;;  %v1760_v53 = vmul.f32 %v10010_v37, %v9983_v63  ;;  %v2202_v30 = vsel %vm1808_vm2, %v2191_v36, 0  ;;  %v2245_v54 = vsel %vm1808_vm2, %v2192_v28, 0 }
 0x287   : > { %1709 = vrot.lane.b32.xlu0 %v1701_v38, %s11394_s7  ;;  %v2294_v34 = vsel %vm1808_vm2, %v2193_v32, 0 }
 0x288   : > { %v1778_v41 = vpop.permute.xlu1 %1777 }
 0x289   : > { %v1783_v42 = vadd.f32 %v1778_v41, %v1771_v39  ;;  %1711 = vrot.lane.b32.xlu1 %v1702_v40, %s11394_s7  ;;  %v2337_v39 = vsel %vm1808_vm2, %v2194_v33, 0  ;;  %v2185_v40 = vld [vmem:[%s11482_s3] sm:$0x3]  ;;  %v2186_v41 = vld [vmem:[%s11482_s3 + $0x2] sm:$0x3] }
 0x28b   : > { %1713 = vrot.lane.b32.xlu0 %v1703_v43, %s11394_s7  ;;  %v2189_v49 = vpack.c.bf16 %v1783_v42, %v1783_v42  ;;  %v2383_v42 = vsel %vm1808_vm2, %v2185_v40, 0 }
 0x28c   : > { %v1780_v48 = vpop.permute.xlu1 %1779 }
 0x28d   : > { %v1784_v50 = vadd.f32 %v1780_v48, %v1772_v46  ;;  %1715 = vrot.lane.b32.xlu1 %v1704_v47, %s11394_s7  ;;  %v1757_v47 = vmul.f32 %v9970_v45, %v9901_v8  ;;  %v2426_v48 = vsel %vm1808_vm2, %v2186_v41, 0  ;;  %v2188_v45 = vld [vmem:[%s11482_s3 + $0x6] sm:$0x3] }
 0x28f   : > { %v2190_v51 = vpack.c.bf16 %v1784_v50, %v1784_v50  ;;  %2196 = vrot.lane.b32.xlu0 %v2189_v49, %s11394_s7  ;;  %v2187_v50 = vld [vmem:[%s11482_s3 + $0x4] sm:$0x3]  ;;  %s11404_s3 = smov 16  }
 0x291   : > { %2288 = vrot.lane.b32.xlu1 %v2190_v51, %s11394_s7 }
 0x293   : > { %1763 = vrot.lane.b32.xlu0 %v1759_v52, %s11394_s7  ;;  %v2472_v52 = vsel %vm1808_vm2, %v2187_v50, 0 }
 0x295   : > { %1765 = vrot.lane.b32.xlu1 %v1760_v53, %s11394_s7  ;;  %s11398_s7 = sshll.u32 %s10339_s1, 5 }
 0x296   : > { %s10346_s18 = scalar_lea.vmem [#allocation8], %s11398_s7  ;;  %s11406_s7 = smov 8  }
 0x2e7   : > { %v1803_v58 = vpop.permute.xlu0 %1802 }
 0x2e8   : > { %8285 = vmatmul.mubr.msk.bf16.vlgmr.msra.gmra.mrb[12].mxu0 %vm1804_vm3, %v1803_v58 }
 0x2e9   : > { %8295 = vmatpush3.bf16.msra.mxu0 %v1908_v57  ;;  %8296 = vmatprep.mubr.msk.bf16.mxu0 %vm9611_vm1, %v9610_v5  ;;  %v2515_v57 = vsel %vm1808_vm2, %v2188_v45, 0 }
 0x2ea   : > { %8306 = vmatprep.subr.bf16.mxu0 %v9610_v5 }
 0x2ef   : > { %v1854_v61 = vpop.permute.xlu1 %1853 }
 0x2f0   : > { %8291 = vmatmul.mubr.msk.bf16.vlgmr.msra.gmra.mrb[20].mxu1 %vm1804_vm3, %v1854_v61 }
 0x2f1   : > { %8301 = vmatpush3.bf16.msra.mxu1 %v1957_v60  ;;  %8302 = vmatprep.mubr.msk.bf16.mxu1 %vm9611_vm1, %v9610_v5 }
 0x2f2   : > { %8312 = vmatprep.subr.bf16.mxu1 %v9610_v5 }
 0x2f3   : > { %v1903_v1 = vpop.permute.xlu0 %1902 }
 0x2f4   : > { %8297 = vmatmul.mubr.msk.bf16.vlgmr.msra.gmra.mrb[16].mxu0 %vm1804_vm3, %v1903_v1 }
 0x2f5   : > { %8307 = vmatpush3.bf16.msra.mxu0 %v2003_v0  ;;  %8308 = vmatprep.mubr.msk.bf16.mxu0 %vm9611_vm1, %v9610_v5 }
 0x2f6   : > { %8318 = vmatprep.subr.bf16.mxu0 %v9610_v5 }
 0x2f7   : > { %v1952_v4 = vpop.permute.xlu1 %1951 }
 0x2f8   : > { %8303 = vmatmul.mubr.msk.bf16.vlgmr.msra.gmra.mrb[24].mxu1 %vm1804_vm3, %v1952_v4 }
 0x2f9   : > { %v1710_v7 = vpop.permute.xlu0 %1709  ;;  %8313 = vmatpush3.bf16.msra.mxu1 %v2049_v3  ;;  %8314 = vmatprep.mubr.msk.bf16.mxu1 %vm9611_vm1, %v9610_v5 }
 0x2fa   : > { %v1721_v12 = vsub.f32 %v1693_v6, %v1710_v7  ;;  %8324 = vmatprep.subr.bf16.mxu1 %v9610_v5 }
 0x2fb   : > { %v1712_v15 = vpop.permute.xlu1 %1711 }
 0x2fc   : > { %v1785_v19 = vpack.c.bf16 %v1721_v12, %v1721_v12  ;;  %v1722_v20 = vsub.f32 %v1694_v14, %v1712_v15 }
 0x2fd   : > { %v1714_v35 = vpop.permute.xlu0 %1713 }
 0x2fe   : > { %v1786_v22 = vpack.c.bf16 %v1722_v20, %v1722_v20  ;;  %8309 = vmatmul.mubr.msk.bf16.vlgmr.msra.gmra.mrb[12].mxu0 %vm1804_vm3, %v1785_v19  ;;  %v1723_v25 = vsub.f32 %v1695_v23, %v1714_v35 }
 0x2ff   : > { %v1716_v44 = vpop.permute.xlu1 %1715  ;;  %8319 = vmatpush3.bf16.msra.mxu0 %v2095_v21  ;;  %8320 = vmatprep.mubr.msk.bf16.mxu0 %vm9611_vm1, %v9610_v5 }
 0x300   : > { %8315 = vmatmul.mubr.msk.bf16.vlgmr.msra.gmra.mrb[20].mxu1 %vm1804_vm3, %v1786_v22  ;;  %8330 = vmatprep.subr.bf16.mxu0 %v9610_v5  ;;  %v1724_v27 = vsub.f32 %v1696_v26, %v1716_v44  ;;  %v1787_v29 = vpack.c.bf16 %v1723_v25, %v1723_v25 }
 0x301   : > { %8325 = vmatpush3.bf16.msra.mxu1 %v2141_v24  ;;  %8326 = vmatprep.mubr.msk.bf16.mxu1 %vm9611_vm1, %v9610_v5  ;;  %v2197_v38 = vpop.permute.xlu0 %2196 }
 0x302   : > { %8336 = vmatprep.subr.bf16.mxu1 %v9610_v5  ;;  %v1788_v31 = vpack.c.bf16 %v1724_v27, %v1724_v27 }
 0x303   : > { %v2289_v43 = vpop.permute.xlu1 %2288 }
 0x305   : > { %v1764_v46 = vpop.permute.xlu0 %1763 }
 0x306   : > { %8321 = vmatmul.mubr.msk.bf16.vlgmr.msra.gmra.mrb[16].mxu0 %vm1804_vm3, %v1787_v29  ;;  %v1769_v49 = vsub.f32 %v1757_v47, %v1764_v46 }
 0x307   : > { %8331 = vmatpush3.bf16.msra.mxu0 %v2202_v30  ;;  %8332 = vmatprep.mubr.msk.bf16.mxu0 %vm9611_vm1, %v9610_v5  ;;  %v1766_v53 = vpop.permute.xlu1 %1765 }
 0x308   : > { %8327 = vmatmul.mubr.msk.bf16.vlgmr.msra.gmra.mrb[24].mxu1 %vm1804_vm3, %v1788_v31  ;;  %8342 = vmatprep.subr.bf16.mxu0 %v9610_v5  ;;  %v2183_v51 = vpack.c.bf16 %v1769_v49, %v1769_v49  ;;  %v1770_v58 = vsub.f32 %v1758_v56, %v1766_v53 }
 0x309   : > { %8337 = vmatpush3.bf16.msra.mxu1 %v2245_v54  ;;  %8338 = vmatprep.mubr.msk.bf16.mxu1 %vm9611_vm1, %v9610_v5 }
 0x30a   : > { %8348 = vmatprep.subr.bf16.mxu1 %v9610_v5  ;;  %v2184_v8 = vpack.c.bf16 %v1770_v58, %v1770_v58 }
 0x30e   : > { %8333 = vmatmul.mubr.msk.bf16.vlgmr.msra.gmra.mrb[20].mxu0 %vm1804_vm3, %v2197_v38 }
 0x30f   : > { %8343 = vmatpush3.bf16.msra.mxu0 %v2294_v34  ;;  %8344 = vmatprep.mubr.msk.bf16.mxu0 %vm9611_vm1, %v9610_v5 }
 0x310   : > { %8339 = vmatmul.mubr.msk.bf16.vlgmr.msra.gmra.mrb[28].mxu1 %vm1804_vm3, %v2197_v38  ;;  %8354 = vmatprep.subr.bf16.mxu0 %v9610_v5 }
 0x311   : > { %8349 = vmatpush3.bf16.msra.mxu1 %v2337_v39  ;;  %8350 = vmatprep.mubr.msk.bf16.mxu1 %vm9611_vm1, %v9610_v5 }
 0x312   : > { %8360 = vmatprep.subr.bf16.mxu1 %v9610_v5 }
 0x316   : > { %8345 = vmatmul.mubr.msk.bf16.vlgmr.msra.gmra.mrb[24].mxu0 %vm1804_vm3, %v2289_v43 }
 0x317   : > { %8355 = vmatpush3.bf16.msra.mxu0 %v2383_v42  ;;  %8356 = vmatprep.mubr.msk.bf16.mxu0 %vm9611_vm1, %v9610_v5 }
 0x318   : > { %8351 = vmatmul.mubr.msk.bf16.vlgmr.msra.gmra.mrb[32].mxu1 %vm1804_vm3, %v2289_v43  ;;  %8366 = vmatprep.subr.bf16.mxu0 %v9610_v5 }
 0x319   : > { %8361 = vmatpush3.bf16.msra.mxu1 %v2426_v48  ;;  %8362 = vmatprep.mubr.msk.bf16.mxu1 %vm9611_vm1, %v9610_v5 }
 0x31a   : > { %8372 = vmatprep.subr.bf16.mxu1 %v9610_v5 }
 0x31e   : > { %8357 = vmatmul.mubr.msk.bf16.vlgmr.msra.gmra.mrb[20].mxu0 %vm1804_vm3, %v2183_v51 }
 0x31f   : > { %8367 = vmatpush3.bf16.msra.mxu0 %v2472_v52  ;;  %8368 = vmatprep.mubr.msk.bf16.mxu0 %vm9611_vm1, %v9610_v5 }
 0x320   : > { %8363 = vmatmul.mubr.msk.bf16.vlgmr.msra.gmra.mrb[28].mxu1 %vm1804_vm3, %v2183_v51  ;;  %8378 = vmatprep.subr.bf16.mxu0 %v9610_v5 }
 0x321   : > { %8373 = vmatpush3.bf16.msra.mxu1 %v2515_v57  ;;  %8374 = vmatprep.mubr.msk.bf16.mxu1 %vm9611_vm1, %v9610_v5 }
 0x322   : > { %8384 = vmatprep.subr.bf16.mxu1 %v9610_v5 }
 0x326   : > { %8369 = vmatmul.mubr.msk.bf16.vlgmr.msra.gmra.mrb[24].mxu0 %vm1804_vm3, %v2184_v8 }
 0x327   : > { %8380 = vmatprep.mubr.msk.bf16.mxu0 %vm9611_vm1, %v9610_v5 }
 0x328   : > { %8375 = vmatmul.mubr.msk.bf16.vlgmr.msra.gmra.mrb[32].mxu1 %vm1804_vm3, %v2184_v8 }
 0x329   : > { %8386 = vmatprep.mubr.msk.bf16.mxu1 %vm9611_vm1, %v9610_v5 }
 0x3d1   : > { %v10139_v63 = vpop.f32.mrb[12].mxu0 }
 0x3d2   : > { %v8310_v59 = vpop.f32.mrb[13].mxu0  ;;  %v2602_v25 = vsub.f32 0.0, %v10139_v63  ;;  %v2558_v51 = vsel %vm2557_vm4, %v10139_v63, -inf }
 0x3d3   : > { %v2042_v60 = vpop.f32.mrb[14].mxu0  ;;  %v10141_v61 = vpop.f32.mrb[20].mxu1 }
 0x3d4   : > { %v8311_v62 = vpop.f32.mrb[15].mxu0  ;;  %v8316_v0 = vpop.f32.mrb[21].mxu1  ;;  %v2603_v28 = vsub.f32 0.0, %v10141_v61  ;;  %v2606_v29 = vsel %vm2557_vm4, %v2602_v25, -inf  ;;  %v2561_v53 = vsel %vm2557_vm4, %v10141_v61, -inf }
 0x3d5   : > { %v2088_v1 = vpop.f32.mrb[22].mxu1 }
 0x3d6   : > { %v8317_v2 = vpop.f32.mrb[23].mxu1  ;;  %v2609_v54 = vsel %vm2557_vm4, %v2603_v28, -inf }
 0x3d9   : > { %v10143_v3 = vpop.f32.mrb[16].mxu0 }
 0x3da   : > { %v8322_v4 = vpop.f32.mrb[17].mxu0  ;;  %v2604_v33 = vsub.f32 0.0, %v10143_v3  ;;  %v2564_v57 = vsel %vm2557_vm4, %v10143_v3, -inf }
 0x3db   : > { %v2134_v6 = vpop.f32.mrb[18].mxu0  ;;  %v10145_v7 = vpop.f32.mrb[24].mxu1 }
 0x3dc   : > { %v8323_v10 = vpop.f32.mrb[19].mxu0  ;;  %v8328_v12 = vpop.f32.mrb[25].mxu1  ;;  %v2612_v47 = vsel %vm2557_vm4, %v2604_v33, -inf  ;;  %v2605_v48 = vsub.f32 0.0, %v10145_v7  ;;  %v2567_v8 = vsel %vm2557_vm4, %v10145_v7, -inf }
 0x3dd   : > { %v2180_v14 = vpop.f32.mrb[26].mxu1 }
 0x3de   : > { %v8329_v15 = vpop.f32.mrb[27].mxu1  ;;  %v2615_v50 = vsel %vm2557_vm4, %v2605_v48, -inf }
 0x3f1   : > { %v10147_v17 = vpop.f32.mrb[20].mxu0 }
 0x3f2   : > { %v8358_v19 = vpop.f32.mrb[21].mxu0  ;;  %v2694_v20 = vsub.f32 0.0, %v10147_v17  ;;  %v2650_v45 = vsel %vm2557_vm4, %v10147_v17, -inf }
 0x3f3   : > { %v2422_v21 = vpop.f32.mrb[22].mxu0  ;;  %v10150_v35 = vpop.f32.mrb[28].mxu1 }
 0x3f4   : > { %v8359_v22 = vpop.f32.mrb[23].mxu0  ;;  %v8364_v23 = vpop.f32.mrb[29].mxu1  ;;  %v2698_v24 = vsel %vm2557_vm4, %v2694_v20, -inf  ;;  %v2695_v44 = vsub.f32 0.0, %v10150_v35  ;;  %v2653_v52 = vsel %vm2557_vm4, %v10150_v35, -inf }
 0x3f5   : > { %v2465_v26 = vpop.f32.mrb[30].mxu1  ;;  %2699 = vmax.xlane.f32.xlu0 %v2698_v24 }
 0x3f6   : > { %v8365_v36 = vpop.f32.mrb[31].mxu1  ;;  %v2701_v27 = vsel %vm2557_vm4, %v2695_v44, -inf }
 0x3f7   : > { %2702 = vmax.xlane.f32.xlu1 %v2701_v27 }
 0x3f9   : > { %2607 = vmax.xlane.f32.xlu0 %v2606_v29  ;;  %v10158_v30 = vpop.f32.mrb[24].mxu0 }
 0x3fa   : > { %v8370_v31 = vpop.f32.mrb[25].mxu0  ;;  %v2696_v32 = vsub.f32 0.0, %v10158_v30  ;;  %v2656_v56 = vsel %vm2557_vm4, %v10158_v30, -inf }
 0x3fb   : > { %2610 = vmax.xlane.f32.xlu1 %v2609_v54  ;;  %v2511_v34 = vpop.f32.mrb[26].mxu0  ;;  %v10163_v38 = vpop.f32.mrb[32].mxu1 }
 0x3fc   : > { %v8371_v39 = vpop.f32.mrb[27].mxu0  ;;  %v8376_v40 = vpop.f32.mrb[33].mxu1  ;;  %v2704_v41 = vsel %vm2557_vm4, %v2696_v32, -inf  ;;  %v2697_v42 = vsub.f32 0.0, %v10163_v38  ;;  %v2659_v58 = vsel %vm2557_vm4, %v10163_v38, -inf }
 0x3fd   : > { %v2554_v43 = vpop.f32.mrb[34].mxu1  ;;  %2705 = vmax.xlane.f32.xlu0 %v2704_v41 }
 0x3fe   : > { %v8377_v46 = vpop.f32.mrb[35].mxu1  ;;  %v2707_v49 = vsel %vm2557_vm4, %v2697_v42, -inf }
 0x3ff   : > { %2613 = vmax.xlane.f32.xlu1 %v2612_v47 }
 0x401   : > { %2708 = vmax.xlane.f32.xlu0 %v2707_v49 }
 0x403   : > { %2616 = vmax.xlane.f32.xlu1 %v2615_v50 }
 0x405   : > { %2651 = vmax.xlane.f32.xlu0 %v2650_v45 }
 0x407   : > { %2559 = vmax.xlane.f32.xlu1 %v2558_v51 }
 0x409   : > { %2654 = vmax.xlane.f32.xlu0 %v2653_v52 }
 0x40b   : > { %2562 = vmax.xlane.f32.xlu1 %v2561_v53 }
 0x40d   : > { %2657 = vmax.xlane.f32.xlu0 %v2656_v56 }
 0x40f   : > { %2565 = vmax.xlane.f32.xlu1 %v2564_v57 }
 0x411   : > { %2660 = vmax.xlane.f32.xlu0 %v2659_v58 }
 0x415   : > { %2568 = vmax.xlane.f32.xlu0 %v2567_v8 }
 0x482   : > { %v2700_v59 = vpop.xlane.xlu0 %2699 }
 0x483   : > { %v2710_v60 = vsub.f32 %v2694_v20, %v2700_v59 }
 0x484   : > { %v2703_v62 = vpop.xlane.xlu1 %2702 }
 0x485   : > { %v2714_v0 = vmul.f32 1.442695, %v2710_v60  ;;  %v2711_v1 = vsub.f32 %v2695_v44, %v2703_v62 }
 0x486   : > { %v2608_v2 = vpop.xlane.xlu0 %2607 }
 0x487   : > { %9195 = vpow2.f32 %v2714_v0  ;;  %v2716_v4 = vmul.f32 1.442695, %v2711_v1  ;;  %v2618_v6 = vsub.f32 %v2602_v25, %v2608_v2 }
 0x488   : > { %v2611_v10 = vpop.xlane.xlu1 %2610 }
 0x489   : > { %9197 = vpow2.f32 %v2716_v4  ;;  %v2622_v12 = vmul.f32 1.442695, %v2618_v6  ;;  %v2619_v14 = vsub.f32 %v2603_v28, %v2611_v10 }
 0x48a   : > { %v2706_v15 = vpop.xlane.xlu0 %2705 }
 0x48b   : > { %9199 = vpow2.f32 %v2622_v12  ;;  %v2624_v19 = vmul.f32 1.442695, %v2619_v14  ;;  %v2712_v21 = vsub.f32 %v2696_v32, %v2706_v15 }
 0x48c   : > { %v2614_v22 = vpop.xlane.xlu1 %2613 }
 0x48d   : > { %9201 = vpow2.f32 %v2624_v19  ;;  %v2718_v23 = vmul.f32 1.442695, %v2712_v21  ;;  %v2620_v24 = vsub.f32 %v2604_v33, %v2614_v22 }
 0x48e   : > { %v2709_v20 = vpop.xlane.xlu0 %2708 }
 0x48f   : > { %9203 = vpow2.f32 %v2718_v23  ;;  %v2626_v26 = vmul.f32 1.442695, %v2620_v24  ;;  %v2713_v44 = vsub.f32 %v2697_v42, %v2709_v20 }
 0x490   : > { %v2617_v36 = vpop.xlane.xlu1 %2616 }
 0x491   : > { %v10187_v27 = vpop.eup %9195  ;;  %9205 = vpow2.f32 %v2626_v26  ;;  %v2720_v25 = vmul.f32 1.442695, %v2713_v44  ;;  %v2621_v29 = vsub.f32 %v2605_v48, %v2617_v36 }
 0x492   : > { %v2652_v31 = vpop.xlane.xlu0 %2651  ;;  %v2722_v28 = vsel %vm2557_vm4, %v10187_v27, 0.0 }
 0x493   : > { %v10191_v54 = vpop.eup %9197  ;;  %9207 = vpow2.f32 %v2720_v25  ;;  %v2628_v32 = vmul.f32 1.442695, %v2621_v29  ;;  %v2662_v33 = vsub.f32 %v10147_v17, %v2652_v31  ;;  %2723 = vadd.xlane.f32.xlu1 %v2722_v28 }
 0x494   : > { %v2560_v34 = vpop.xlane.xlu1 %2559  ;;  %v2725_v39 = vsel %vm2557_vm4, %v10191_v54, 0.0 }
 0x495   : > { %v10196_v40 = vpop.eup %9199  ;;  %9209 = vpow2.f32 %v2628_v32  ;;  %v2666_v41 = vmul.f32 1.442695, %v2662_v33  ;;  %v2570_v42 = vsub.f32 %v10139_v63, %v2560_v34  ;;  %2726 = vadd.xlane.f32.xlu0 %v2725_v39 }
 0x496   : > { %v2655_v43 = vpop.xlane.xlu0 %2654  ;;  %v2630_v46 = vsel %vm2557_vm4, %v10196_v40, 0.0 }
 0x497   : > { %v10201_v47 = vpop.eup %9201  ;;  %9211 = vpow2.f32 %v2666_v41  ;;  %v2574_v17 = vmul.f32 1.442695, %v2570_v42  ;;  %v2663_v48 = vsub.f32 %v10150_v35, %v2655_v43  ;;  %2631 = vadd.xlane.f32.xlu1 %v2630_v46 }
 0x498   : > { %v2563_v49 = vpop.xlane.xlu1 %2562  ;;  %v2633_v52 = vsel %vm2557_vm4, %v10201_v47, 0.0 }
 0x499   : > { %v10204_v50 = vpop.eup %9203  ;;  %9213 = vpow2.f32 %v2574_v17  ;;  %v2668_v45 = vmul.f32 1.442695, %v2663_v48  ;;  %v2571_v51 = vsub.f32 %v10141_v61, %v2563_v49 }
 0x49a   : > { %v2658_v63 = vpop.xlane.xlu0 %2657  ;;  %v2728_v53 = vsel %vm2557_vm4, %v10204_v50, 0.0 }
 0x49b   : > { %v10211_v56 = vpop.eup %9205  ;;  %9215 = vpow2.f32 %v2668_v45  ;;  %v2576_v57 = vmul.f32 1.442695, %v2571_v51  ;;  %v2664_v35 = vsub.f32 %v10158_v30, %v2658_v63  ;;  %2634 = vadd.xlane.f32.xlu1 %v2633_v52  ;;  %2729 = vadd.xlane.f32.xlu0 %v2728_v53 }
 0x49c   : > { %v2566_v58 = vpop.xlane.xlu1 %2565  ;;  %v2636_v62 = vsel %vm2557_vm4, %v10211_v56, 0.0 }
 0x49d   : > { %v10214_v8 = vpop.eup %9207  ;;  %9217 = vpow2.f32 %v2576_v57  ;;  %v2670_v61 = vmul.f32 1.442695, %v2664_v35  ;;  %v2572_v59 = vsub.f32 %v10143_v3, %v2566_v58 }
 0x49e   : > { %v2661_v60 = vpop.xlane.xlu0 %2660  ;;  %v2731_v0 = vsel %vm2557_vm4, %v10214_v8, 0.0 }
 0x49f   : > { %v10221_v1 = vpop.eup %9209  ;;  %9219 = vpow2.f32 %v2670_v61  ;;  %v2578_v30 = vmul.f32 1.442695, %v2572_v59  ;;  %v2665_v2 = vsub.f32 %v10163_v38, %v2661_v60  ;;  %2637 = vadd.xlane.f32.xlu1 %v2636_v62  ;;  %2732 = vadd.xlane.f32.xlu0 %v2731_v0 }
 0x4a0   : > { %v2639_v10 = vsel %vm2557_vm4, %v10221_v1, 0.0 }
 0x4a1   : > { %v10224_v4 = vpop.eup %9211  ;;  %9221 = vpow2.f32 %v2578_v30  ;;  %v2672_v6 = vmul.f32 1.442695, %v2665_v2 }
 0x4a2   : > { %v2569_v3 = vpop.xlane.xlu0 %2568  ;;  %v2674_v12 = vsel %vm2557_vm4, %v10224_v4, 0.0 }
 0x4a3   : > { %v10230_v14 = vpop.eup %9213  ;;  %9223 = vpow2.f32 %v2672_v6  ;;  %v2573_v15 = vsub.f32 %v10145_v7, %v2569_v3  ;;  %2640 = vadd.xlane.f32.xlu1 %v2639_v10  ;;  %2675 = vadd.xlane.f32.xlu0 %v2674_v12 }
 0x4a4   : > { %v2582_v21 = vsel %vm2557_vm4, %v10230_v14, 0.0 }
 0x4a5   : > { %v10233_v38 = vpop.eup %9215  ;;  %v2580_v19 = vmul.f32 1.442695, %v2573_v15 }
 0x4a6   : > { %v2677_v22 = vsel %vm2557_vm4, %v10233_v38, 0.0 }
 0x4a7   : > { %v10239_v23 = vpop.eup %9217  ;;  %9225 = vpow2.f32 %v2580_v19  ;;  %2583 = vadd.xlane.f32.xlu1 %v2582_v21  ;;  %2678 = vadd.xlane.f32.xlu0 %v2677_v22 }
 0x4a8   : > { %v2585_v7 = vsel %vm2557_vm4, %v10239_v23, 0.0 }
 0x4a9   : > { %v10241_v24 = vpop.eup %9219 }
 0x4aa   : > { %v2680_v20 = vsel %vm2557_vm4, %v10241_v24, 0.0 }
 0x4ab   : > { %v10247_v26 = vpop.eup %9221  ;;  %2586 = vadd.xlane.f32.xlu1 %v2585_v7  ;;  %2681 = vadd.xlane.f32.xlu0 %v2680_v20 }
 0x4ac   : > { %v2588_v36 = vsel %vm2557_vm4, %v10247_v26, 0.0 }
 0x4ad   : > { %v10249_v44 = vpop.eup %9223 }
 0x4ae   : > { %v2683_v25 = vsel %vm2557_vm4, %v10249_v44, 0.0 }
 0x4af   : > { %2589 = vadd.xlane.f32.xlu1 %v2588_v36  ;;  %2684 = vadd.xlane.f32.xlu0 %v2683_v25 }
 0x4b1   : > { %v10255_v29 = vpop.eup %9225 }
 0x4b2   : > { %v2591_v31 = vsel %vm2557_vm4, %v10255_v29, 0.0 }
 0x4b3   : > { %2592 = vadd.xlane.f32.xlu0 %v2591_v31 }
 0x520   : > { %v2724_v28 = vpop.xlane.xlu1 %2723 }
 0x521   : > { %9227 = vrcp.f32 %v2724_v28 }
 0x522   : > { %v2727_v32 = vpop.xlane.xlu0 %2726 }
 0x523   : > { %9229 = vrcp.f32 %v2727_v32 }
 0x524   : > { %v2632_v33 = vpop.xlane.xlu1 %2631 }
 0x525   : > { %9231 = vrcp.f32 %v2632_v33 }
 0x528   : > { %v2635_v34 = vpop.xlane.xlu1 %2634  ;;  %v2730_v39 = vpop.xlane.xlu0 %2729 }
 0x529   : > { %9233 = vrcp.f32 %v2635_v34 }
 0x52a   : > { %9235 = vrcp.f32 %v2730_v39 }
 0x52b   : > { %v9228_v41 = vpop.eup %9227 }
 0x52c   : > { %v2638_v42 = vpop.xlane.xlu1 %2637  ;;  %v2733_v43 = vpop.xlane.xlu0 %2732  ;;  %v2735_v46 = vmul.f32 %v9228_v41, %v10187_v27 }
 0x52d   : > { %v9230_v17 = vpop.eup %9229  ;;  %9237 = vrcp.f32 %v2638_v42 }
 0x52e   : > { %9239 = vrcp.f32 %v2733_v43  ;;  %v2754_v48 = vpack.c.bf16 %v2735_v46, %v2735_v46  ;;  %v2737_v49 = vmul.f32 %v9230_v17, %v10191_v54 }
 0x52f   : > { %v9232_v45 = vpop.eup %9231 }
 0x530   : > { %v2641_v51 = vpop.xlane.xlu1 %2640  ;;  %v2676_v63 = vpop.xlane.xlu0 %2675  ;;  %v2762_v52 = vsel %vm2557_vm4, %v2754_v48, 0  ;;  %v2755_v53 = vpack.c.bf16 %v2737_v49, %v2737_v49  ;;  %v2643_v35 = vmul.f32 %v9232_v45, %v10196_v40 }
 0x531   : > { %9241 = vrcp.f32 %v2641_v51  ;;  %8379 = vmatpush3.bf16.xpose.msra.mxu0 %v2762_v52  ;;  %v3160_v52 = vpack.c.bf16 %v9978_v55, %v9978_v55 }
 0x532   : > { %9243 = vrcp.f32 %v2676_v63  ;;  %v2808_v57 = vsel %vm2557_vm4, %v2755_v53, 0  ;;  %8390 = vmatprep.subr.bf16.mxu0 %v9610_v5  ;;  %v2750_v62 = vpack.c.bf16 %v2643_v35, %v2643_v35 }
 0x533   : > { %v9234_v27 = vpop.eup %9233  ;;  %8385 = vmatpush3.bf16.xpose.msra.mxu1 %v2808_v57 }
 0x534   : > { %v9236_v58 = vpop.eup %9235  ;;  %v2584_v61 = vpop.xlane.xlu1 %2583  ;;  %v2645_v59 = vmul.f32 %v9234_v27, %v10201_v47  ;;  %8396 = vmatprep.subr.bf16.mxu1 %v9610_v5 }
 0x535   : > { %v2679_v54 = vpop.xlane.xlu0 %2678  ;;  %9245 = vrcp.f32 %v2584_v61  ;;  %v2739_v60 = vmul.f32 %v9236_v58, %v10204_v50 }
 0x536   : > { %9247 = vrcp.f32 %v2679_v54  ;;  %v2751_v3 = vpack.c.bf16 %v2645_v59, %v2645_v59 }
 0x537   : > { %v9238_v0 = vpop.eup %9237  ;;  %v2756_v30 = vpack.c.bf16 %v2739_v60, %v2739_v60 }
 0x538   : > { %v9240_v2 = vpop.eup %9239  ;;  %8381 = vmatmul.mubr.msk.bf16.vlgmr.msra.gmra.mrb[28].mxu0 %vm2557_vm4, %v2750_v62  ;;  %v2587_v40 = vpop.xlane.xlu1 %2586  ;;  %v2647_v15 = vmul.f32 %v9238_v0, %v10211_v56 }
 0x539   : > { %v2682_v6 = vpop.xlane.xlu0 %2681  ;;  %9249 = vrcp.f32 %v2587_v40  ;;  %v2854_v10 = vsel %vm2557_vm4, %v2756_v30, 0  ;;  %v2741_v47 = vmul.f32 %v9240_v2, %v10214_v8  ;;  %8392 = vmatprep.mubr.msk.bf16.mxu0 %vm9611_vm1, %v9610_v5 }
 0x53a   : > { %9251 = vrcp.f32 %v2682_v6  ;;  %8391 = vmatpush3.bf16.xpose.msra.mxu0 %v2854_v10  ;;  %8387 = vmatmul.mubr.msk.bf16.vlgmr.msra.gmra.mrb[36].mxu1 %vm2557_vm4, %v2751_v3  ;;  %v2752_v36 = vpack.c.bf16 %v2647_v15, %v2647_v15 }
 0x53b   : > { %v9242_v50 = vpop.eup %9241  ;;  %v2757_v12 = vpack.c.bf16 %v2741_v47, %v2741_v47  ;;  %8402 = vmatprep.subr.bf16.mxu0 %v9610_v5  ;;  %8398 = vmatprep.mubr.msk.bf16.mxu1 %vm9611_vm1, %v9610_v5 }
 0x53c   : > { %v9244_v19 = vpop.eup %9243  ;;  %v2590_v21 = vpop.xlane.xlu1 %2589  ;;  %v2649_v56 = vmul.f32 %v9242_v50, %v10221_v1 }
 0x53d   : > { %v2685_v22 = vpop.xlane.xlu0 %2684  ;;  %9253 = vrcp.f32 %v2590_v21  ;;  %v2900_v8 = vsel %vm2557_vm4, %v2757_v12, 0  ;;  %v2687_v7 = vmul.f32 %v9244_v19, %v10224_v4 }
 0x53e   : > { %9255 = vrcp.f32 %v2685_v22  ;;  %8397 = vmatpush3.bf16.xpose.msra.mxu1 %v2900_v8  ;;  %v2753_v34 = vpack.c.bf16 %v2649_v56, %v2649_v56  ;;  %v3161_v56 = vpack.c.bf16 %v9992_v9, %v9992_v9 }
 0x53f   : > { %v9246_v20 = vpop.eup %9245  ;;  %v2746_v25 = vpack.c.bf16 %v2687_v7, %v2687_v7  ;;  %8408 = vmatprep.subr.bf16.mxu1 %v9610_v5 }
 0x540   : > { %v9248_v31 = vpop.eup %9247  ;;  %v2595_v1 = vmul.f32 %v9246_v20, %v10230_v14 }
 0x541   : > { %v2593_v28 = vpop.xlane.xlu0 %2592  ;;  %8393 = vmatmul.mubr.msk.bf16.vlgmr.msra.gmra.mrb[32].mxu0 %vm2557_vm4, %v2752_v36  ;;  %v2946_v32 = vsel %vm2557_vm4, %v2746_v25, 0  ;;  %v2689_v33 = vmul.f32 %v9248_v31, %v10233_v38 }
 0x542   : > { %9257 = vrcp.f32 %v2593_v28  ;;  %8403 = vmatpush3.bf16.xpose.msra.mxu0 %v2946_v32  ;;  %8404 = vmatprep.mubr.msk.bf16.mxu0 %vm9611_vm1, %v9610_v5  ;;  %v2742_v46 = vpack.c.bf16 %v2595_v1, %v2595_v1 }
 0x543   : > { %v9250_v4 = vpop.eup %9249  ;;  %v2747_v39 = vpack.c.bf16 %v2689_v33, %v2689_v33  ;;  %8414 = vmatprep.subr.bf16.mxu0 %v9610_v5 }
 0x544   : > { %v9252_v41 = vpop.eup %9251  ;;  %v2597_v48 = vmul.f32 %v9250_v4, %v10239_v23  ;;  %v3256_v4 = vsel %vm3165_vm5, %v3161_v56, 0 }
 0x545   : > { %8399 = vmatmul.mubr.msk.bf16.vlgmr.msra.gmra.mrb[40].mxu1 %vm2557_vm4, %v2753_v34  ;;  %v2992_v42 = vsel %vm2557_vm4, %v2747_v39, 0  ;;  %v2691_v43 = vmul.f32 %v9252_v41, %v10241_v24 }
 0x546   : > { %8409 = vmatpush3.bf16.xpose.msra.mxu1 %v2992_v42  ;;  %8410 = vmatprep.mubr.msk.bf16.mxu1 %vm9611_vm1, %v9610_v5  ;;  %v2743_v24 = vpack.c.bf16 %v2597_v48, %v2597_v48 }
 0x547   : > { %v9254_v38 = vpop.eup %9253  ;;  %v2748_v17 = vpack.c.bf16 %v2691_v43, %v2691_v43  ;;  %8420 = vmatprep.subr.bf16.mxu1 %v9610_v5 }
 0x548   : > { %v9256_v14 = vpop.eup %9255  ;;  %v2599_v63 = vmul.f32 %v9254_v38, %v10247_v26  ;;  %v3167_v26 = vsel %vm3165_vm5, %v3160_v52, 0 }
 0x549   : > { %8405 = vmatmul.mubr.msk.bf16.vlgmr.msra.gmra.mrb[28].mxu0 %vm2557_vm4, %v2742_v46  ;;  %v3038_v49 = vsel %vm2557_vm4, %v2748_v17, 0  ;;  %v2693_v45 = vmul.f32 %v9256_v14, %v10249_v44  ;;  %v9137_v17 = vld [vmem:[%s11475_s21] sm:$0xff]  }
 0x54a   : > { %8415 = vmatpush3.bf16.xpose.msra.mxu0 %v3038_v49  ;;  %8416 = vmatprep.mubr.msk.bf16.mxu0 %vm9611_vm1, %v9610_v5  ;;  %v2744_v44 = vpack.c.bf16 %v2599_v63, %v2599_v63  ;;  %v9138_v49 = vld [vmem:[%s11475_s21 + $0x8] sm:$0xff]  }
 0x54b   : > { %v2749_v51 = vpack.c.bf16 %v2693_v45, %v2693_v45  ;;  %8426 = vmatprep.subr.bf16.mxu0 %v9610_v5 }
 0x54c   : > { %v9258_v23 = vpop.eup %9257 }
 0x54d   : > { %8411 = vmatmul.mubr.msk.bf16.vlgmr.msra.gmra.mrb[36].mxu1 %vm2557_vm4, %v2743_v24  ;;  %v3084_v53 = vsel %vm2557_vm4, %v2749_v51, 0  ;;  %v2601_v57 = vmul.f32 %v9258_v23, %v10255_v29  ;;  %v1220_v29 = vand.u32 127, %v1217_v11 }
 0x54e   : > { %8421 = vmatpush3.bf16.xpose.msra.mxu1 %v3084_v53  ;;  %8422 = vmatprep.mubr.msk.bf16.mxu1 %vm9611_vm1, %v9610_v5 }
 0x54f   : > { %8432 = vmatprep.subr.bf16.mxu1 %v9610_v5  ;;  %v2745_v55 = vpack.c.bf16 %v2601_v57, %v2601_v57  ;;  %vm10322_vm6 = vcmp.le.s32.totalorder %v1220_v29, %v9906_v13 }
 0x551   : > { %8417 = vmatmul.mubr.msk.bf16.vlgmr.msra.gmra.mrb[32].mxu0 %vm2557_vm4, %v2744_v44 }
 0x552   : > { %8427 = vmatpush3.bf16.msra.mxu0 %v3167_v26  ;;  %8428 = vmatprep.mubr.msk.bf16.mxu0 %vm9611_vm1, %v9610_v5 }
 0x553   : > { %8438 = vmatprep.subr.bf16.mxu0 %v9610_v5 }
 0x555   : > { %8423 = vmatmul.mubr.msk.bf16.vlgmr.msra.gmra.mrb[40].mxu1 %vm2557_vm4, %v2745_v55 }
 0x556   : > { %8433 = vmatpush3.bf16.msra.mxu1 %v3167_v26  ;;  %8434 = vmatprep.mubr.msk.bf16.mxu1 %vm9611_vm1, %v9610_v5 }
 0x557   : > { %8444 = vmatprep.subr.bf16.mxu1 %v9610_v5 }
 0x61c   : > { %v2982_v27 = vpop.f32.mrb[28].mxu0 }
 0x61d   : > { %v3128_v58 = vsel %vm10322_vm6, %v2982_v27, 0.0  ;;  %v8406_v61 = vpop.f32.mrb[29].mxu0 }
 0x61e   : > { %v2985_v54 = vpop.f32.mrb[30].mxu0  ;;  %v3132_v59 = vsel %vm2557_vm4, %v3128_v58, 0.0 }
 0x61f   : > { %3133 = vadd.xlane.f32.xlu1 %v3132_v59  ;;  %v8407_v60 = vpop.f32.mrb[31].mxu0 }
 0x620   : > { %v3028_v62 = vpop.f32.mrb[36].mxu1 }
 0x621   : > { %v3129_v0 = vsel %vm10322_vm6, %v3028_v62, 0.0  ;;  %v8412_v11 = vpop.f32.mrb[37].mxu1 }
 0x622   : > { %v3031_v30 = vpop.f32.mrb[38].mxu1  ;;  %v3135_v13 = vsel %vm2557_vm4, %v3129_v0, 0.0 }
 0x623   : > { %3136 = vadd.xlane.f32.xlu0 %v3135_v13  ;;  %v8413_v2 = vpop.f32.mrb[39].mxu1 }
 0x624   : > { %v3074_v40 = vpop.f32.mrb[32].mxu0 }
 0x625   : > { %v3130_v6 = vsel %vm10322_vm6, %v3074_v40, 0.0  ;;  %v8418_v3 = vpop.f32.mrb[33].mxu0 }
 0x626   : > { %v3077_v10 = vpop.f32.mrb[34].mxu0  ;;  %v3138_v47 = vsel %vm2557_vm4, %v3130_v6, 0.0 }
 0x627   : > { %3139 = vadd.xlane.f32.xlu1 %v3138_v47  ;;  %v8419_v50 = vpop.f32.mrb[35].mxu0  ;;  %v3421_v10 = vld [vmem:[%s11490_s19] sm:$0x1]  ;;  %s9618_s19 = smov [#allocation5]  }
 0x628   : > { %v3120_v12 = vpop.f32.mrb[40].mxu1  ;;  %v3430_v47 = vadd.f32 1.0, %v3421_v10  ;;  %s9391_s21 = sshll.u32 %s9618_s19, 4  ;;  %s9392_s21 = int_to_ptr.vmem [resolvable:$false] %s9391_s21 }
 0x629   : > { %v3131_v15 = vsel %vm10322_vm6, %v3120_v12, 0.0  ;;  %v8424_v19 = vpop.f32.mrb[41].mxu1 }
 0x62a   : > { %v3123_v21 = vpop.f32.mrb[42].mxu1  ;;  %v3141_v22 = vsel %vm2557_vm4, %v3131_v15, 0.0  ;;  %v3435_v50 = vrot.slane %v3430_v47, %v9910_v16 }
 0x62b   : > { %3142 = vadd.xlane.f32.xlu0 %v3141_v22  ;;  %v8425_v8 = vpop.f32.mrb[43].mxu1  ;;  %v9383_v21 = vld [vmem:[%s9882_s10] sm:$0xff]  ;;  %s11402_s10 = smov 64  }
 0x6ac   : > { %v3134_v7 = vpop.xlane.xlu1 %3133 }
 0x6ad   : > { %9259 = vrcp.f32 %v3134_v7 }
 0x6b0   : > { %v3137_v20 = vpop.xlane.xlu0 %3136 }
 0x6b1   : > { %9261 = vrcp.f32 %v3137_v20  ;;  %v9139_v20 = vld [vmem:[%s11481_s6] sm:$0xff]  }
 0x6b4   : > { %v3140_v36 = vpop.xlane.xlu1 %3139 }
 0x6b5   : > { %9263 = vrcp.f32 %v3140_v36  ;;  %v9140_v36 = vld [vmem:[%s11481_s6 + $0x8] sm:$0xff]   ;;  %s11497_s6 = sld [smem:[#allocation30_spill]] }
 0x6b7   : > { %v9260_v25 = vpop.eup %9259 }
 0x6b8   : > { %v3145_v31 = vmul.f32 %v9260_v25, %v3128_v58  ;;  %v3143_v28 = vpop.xlane.xlu0 %3142 }
 0x6b9   : > { %9265 = vrcp.f32 %v3143_v28  ;;  %v3439_v28 = vld [vmem:[%s11491_s24] sm:$0x1]  ;;  %s9393_s24 = scalar_lea.vmem %s9392_s21, 256 }
 0x6ba   : > { %v3156_v32 = vpack.c.bf16 %v3145_v31, %v3145_v31  ;;  %3152 = vst.msk [vmem:[%s10346_s18] sm:$0xff] %vm2557_vm4, %v3145_v31 }
 0x6bb   : > { %v9262_v33 = vpop.eup %9261 }
 0x6bc   : > { %v3147_v34 = vmul.f32 %v9262_v33, %v3129_v0  ;;  %8429 = vmatmul.mubr.msk.bf16.vlgmr.msra.gmra.mrb[36].mxu0 %vm2557_vm4, %v3156_v32  ;;  %v3448_v32 = vadd.f32 1.0, %v3439_v28 }
 0x6bd   : > { %8439 = vmatpush3.bf16.msra.mxu0 %v3256_v4  ;;  %8440 = vmatprep.mubr.msk.bf16.mxu0 %vm9611_vm1, %v9610_v5 }
 0x6be   : > { %v3157_v9 = vpack.c.bf16 %v3147_v34, %v3147_v34  ;;  %8450 = vmatprep.subr.bf16.mxu0 %v9610_v5  ;;  %3153 = vst.msk [vmem:[%s10346_s18 + $0x8] sm:$0xff] %vm2557_vm4, %v3147_v34  ;;  %v3453_v33 = vrot.slane %v3448_v32, %v9910_v16 }
 0x6bf   : > { %v9264_v39 = vpop.eup %9263 }
 0x6c0   : > { %v3149_v1 = vmul.f32 %v9264_v39, %v3130_v6  ;;  %8435 = vmatmul.mubr.msk.bf16.vlgmr.msra.gmra.mrb[44].mxu1 %vm2557_vm4, %v3157_v9 }
 0x6c1   : > { %8445 = vmatpush3.bf16.msra.mxu1 %v3256_v4  ;;  %8446 = vmatprep.mubr.msk.bf16.mxu1 %vm9611_vm1, %v9610_v5 }
 0x6c2   : > { %v3158_v41 = vpack.c.bf16 %v3149_v1, %v3149_v1  ;;  %8458 = vmatprep.subr.bf16.mxu1 %v9610_v5  ;;  %3154 = vst.msk [vmem:[%s10346_s18 + $0x10] sm:$0xff] %vm2557_vm4, %v3149_v1  ;;  %v9141_v1 = vld [vmem:[%s11479_s12] sm:$0xff]  }
 0x6c3   : > { %v9266_v42 = vpop.eup %9265 }
 0x6c4   : > { %v3151_v43 = vmul.f32 %v9266_v42, %v3131_v15  ;;  %8441 = vmatmul.mubr.msk.bf16.vlgmr.msra.gmra.mrb[40].mxu0 %vm2557_vm4, %v3158_v41  ;;  %v9142_v41 = vld [vmem:[%s11479_s12 + $0x8] sm:$0xff]   ;;  %v9143_v42 = vld [vmem:[%s11479_s12 + $0x10] sm:$0xff]  }
 0x6c5   : > { %8454 = vmatprep.mubr.msk.bf16.mxu0 %vm9611_vm1, %v9610_v5  ;;  %8451 = vmatpush3.bf16.msra.mxu0 %v9137_v17 }
 0x6c6   : > { %v3159_v38 = vpack.c.bf16 %v3151_v43, %v3151_v43  ;;  %3155 = vst.msk [vmem:[%s10346_s18 + $0x18] sm:$0xff] %vm2557_vm4, %v3151_v43  ;;  %8452 = vmatprep.subr.bf16.mxu0 %v9610_v5  ;;  %v9144_v43 = vld [vmem:[%s11479_s12 + $0x18] sm:$0xff]   ;;  %s11500_s12 = smov 24  }
 0x6c8   : > { %8447 = vmatmul.mubr.msk.bf16.vlgmr.msra.gmra.mrb[48].mxu1 %vm2557_vm4, %v3159_v38 }
 0x6c9   : > { %8462 = vmatprep.mubr.msk.bf16.mxu1 %vm9611_vm1, %v9610_v5  ;;  %8453 = vmatpush3.bf16.msra.mxu0 %v9138_v49 }
 0x6ca   : > { %8466 = vmatprep.subr.bf16.mxu0 %v9610_v5  ;;  %8459 = vmatpush3.bf16.msra.mxu1 %v9139_v20 }
 0x6cb   : > { %8460 = vmatprep.subr.bf16.mxu1 %v9610_v5 }
 0x6ce   : > { %8461 = vmatpush3.bf16.msra.mxu1 %v9140_v36 }
 0x6cf   : > { %8478 = vmatprep.subr.bf16.mxu1 %v9610_v5 }
 0x78f   : > { %v3203_v46 = vpop.f32.mrb[36].mxu0 }
 0x790   : > { %3341 = vst.msk [vmem:[#allocation2] sm:$0xff] %vm2557_vm4, %v3203_v46  ;;  %v8430_v48 = vpop.f32.mrb[37].mxu0 }
 0x791   : > { %v3206_v14 = vpop.f32.mrb[38].mxu0 }
 0x792   : > { %v8431_v45 = vpop.f32.mrb[39].mxu0 }
 0x793   : > { %v3246_v24 = vpop.f32.mrb[44].mxu1 }
 0x794   : > { %v8436_v51 = vpop.f32.mrb[45].mxu1  ;;  %3343 = vrot.lane.b32.xlu1 %v3246_v24, %s11406_s7 }
 0x795   : > { %v3249_v63 = vpop.f32.mrb[46].mxu1 }
 0x796   : > { %v8437_v23 = vpop.f32.mrb[47].mxu1 }
 0x797   : > { %v3292_v52 = vpop.f32.mrb[40].mxu0 }
 0x798   : > { %3349 = vrot.lane.b32.xlu0 %v3292_v52, %s11404_s3  ;;  %v8442_v53 = vpop.f32.mrb[41].mxu0  ;;  %s10420_s3 = sshll.u32 %s10339_s1, 3 }
 0x799   : > { %v3295_v44 = vpop.f32.mrb[42].mxu0  ;;  %s11408_s7 = scalar_lea.vmem [#allocation3], %s10420_s3  ;;  %s11418_s17 = scalar_lea.vmem [#allocation5], %s10420_s3 }
 0x79a   : > { %v8443_v57 = vpop.f32.mrb[43].mxu0 }
 0x79b   : > { %v3335_v26 = vpop.f32.mrb[48].mxu1 }
 0x79c   : > { %v8448_v55 = vpop.f32.mrb[49].mxu1  ;;  %3355 = vrot.lane.b32.xlu1 %v3335_v26, %s11400_s5  ;;  %s11492_s5 = sld [smem:[#allocation26_spill]] }
 0x79d   : > { %v3338_v29 = vpop.f32.mrb[50].mxu1 }
 0x79e   : > { %v8449_v27 = vpop.f32.mrb[51].mxu1 }
 0x806   : > { %v3344_v58 = vpop.permute.xlu1 %3343 }
 0x807   : > { %3347 = vst.msk [vmem:[#allocation2] sm:$0xff] %vm3346_vm7, %v3344_v58 }
 0x80a   : > { %v3350_v61 = vpop.permute.xlu0 %3349 }
 0x80b   : > { %3353 = vst.msk [vmem:[#allocation2] sm:$0xff] %vm3352_vm8, %v3350_v61 }
 0x80e   : > { %v3356_v54 = vpop.permute.xlu1 %3355 }
 0x80f   : > { %3359 = vst.msk [vmem:[#allocation2] sm:$0xff] %vm3358_vm9, %v3356_v54 }
 0x816   : > { %v3360_v59 = vld [vmem:[#allocation2] sm:$0xff] }
 0x817   : > { %v3361_v60 = vpack.c.bf16 %v3360_v59, %v3360_v59 }
 0x819   : > { %8455 = vmatmul.mubr.msk.bf16.vlgmr.msra.gmra.mrb[44].mxu0 %vm1224_vm0, %v3361_v60 }
 0x81a   : > { %8474 = vmatprep.mubr.msk.bf16.mxu0 %vm9611_vm1, %v9610_v5  ;;  %8467 = vmatpush3.bf16.msra.mxu0 %v9141_v1 }
 0x81b   : > { %8468 = vmatprep.subr.bf16.mxu0 %v9610_v5 }
 0x81e   : > { %8469 = vmatpush3.bf16.msra.mxu0 %v9142_v41 }
 0x81f   : > { %8470 = vmatprep.subr.bf16.mxu0 %v9610_v5 }
 0x822   : > { %8471 = vmatpush3.bf16.msra.mxu0 %v9143_v42 }
 0x823   : > { %8472 = vmatprep.subr.bf16.mxu0 %v9610_v5 }
 0x826   : > { %8473 = vmatpush3.bf16.msra.mxu0 %v9144_v43 }
 0x827   : > { %8494 = vmatprep.subr.bf16.mxu0 %v9610_v5 }
 0x8ec   : > { %v3415_v62 = vpop.f32.mrb[44].mxu0 }
 0x8ed   : > { %v3422_v0 = vmul.f32 %v3415_v62, %v3415_v62  ;;  %v8456_v11 = vpop.f32.mrb[45].mxu0 }
 0x8ee   : > { %v3418_v30 = vpop.f32.mrb[46].mxu0 }
 0x8ef   : > { %v8457_v13 = vpop.f32.mrb[47].mxu0  ;;  %v3423_v2 = vsel %vm1224_vm0, %v3422_v0, 0.0  ;;  %v3607_v0 = vld [vmem:[%s11492_s5] sm:$0x1]  ;;  %s11494_s5 = sld [smem:[#allocation31_spill]] }
 0x8f0   : > { %3424 = vadd.xlane.f32.xlu1 %v3423_v2  ;;  %v3616_v11 = vadd.f32 1.0, %v3607_v0 }
 0x8f2   : > { %v3621_v30 = vrot.slane %v3616_v11, %v9910_v16 }
 0x97d   : > { %v3425_v40 = vpop.xlane.xlu1 %3424 }
 0x97e   : > { %v3426_v6 = vmul.f32 0.03125, %v3425_v40 }
 0x980   : > { %v3427_v3 = vadd.f32 1e-06, %v3426_v6 }
 0x982   : > { %9267 = vrsqrt.f32 %v3427_v3 }
 0x98c   : > { %v9268_v12 = vpop.eup %9267 }
 0x98d   : > { %v3429_v15 = vmul.f32 %v9268_v12, %v3415_v62 }
 0x98f   : > { %v3437_v19 = vmul.f32 %v3435_v50, %v3429_v15 }
 0x991   : > { %v10389_v22 = vadd.f32 %v9383_v21, %v3437_v19 }
 0x993   : > { %v3440_v8 = vmul.f32 %v10389_v22, %v10389_v22 }
 0x995   : > { %v3441_v7 = vsel %vm1224_vm0, %v3440_v8, 0.0  ;;  %v3626_v8 = vld [vmem:[%s11494_s5] sm:$0x1]  ;;  %s11495_s5 = smov 4  }
 0x996   : > { %3442 = vadd.xlane.f32.xlu0 %v3441_v7  ;;  %v3635_v7 = vadd.f32 1.0, %v3626_v8 }
 0x998   : > { %v3640_v20 = vrot.slane %v3635_v7, %v9910_v16 }
 0xa23   : > { %v3443_v25 = vpop.xlane.xlu0 %3442 }
 0xa24   : > { %v3444_v56 = vmul.f32 0.03125, %v3443_v25 }
 0xa26   : > { %v3445_v31 = vadd.f32 1e-06, %v3444_v56 }
 0xa28   : > { %9269 = vrsqrt.f32 %v3445_v31 }
 0xa32   : > { %v9270_v4 = vpop.eup %9269 }
 0xa33   : > { %v3447_v34 = vmul.f32 %v9270_v4, %v10389_v22 }
 0xa35   : > { %v3455_v9 = vmul.f32 %v3453_v33, %v3447_v34 }
 0xa37   : > { %v3456_v39 = vpack.c.bf16 %v3455_v9, %v3455_v9 }
 0xa39   : > { %8463 = vmatmul.mubr.msk.bf16.vlgmr.msra.gmra.mrb[52].mxu1 %vm1224_vm0, %v3456_v39 }
 0xa3a   : > { %8482 = vmatprep.mubr.msk.bf16.mxu1 %vm9611_vm1, %v9610_v5 }
 0xb0c   : > { %v3510_v38 = vpop.f32.mrb[52].mxu1 }
 0xb0d   : > { %3526 = vrot.lane.b32.xlu0 %v3510_v38, %s11402_s10  ;;  %v8464_v46 = vpop.f32.mrb[53].mxu1  ;;  %v3516_v14 = vmul.f32 %v3510_v38, %v3510_v38  ;;  %s11493_s10 = sld [smem:[#allocation29_spill]] }
 0xb0e   : > { %v3513_v17 = vpop.f32.mrb[54].mxu1 }
 0xb0f   : > { %v8465_v48 = vpop.f32.mrb[55].mxu1  ;;  %v3517_v49 = vmul.f32 %v3516_v14, %v3510_v38 }
 0xb11   : > { %v3518_v45 = vmul.f32 0.044715, %v3517_v49  ;;  %v10497_v49 = vld [vmem:[%s11478_s13] sm:$0xff]  ;;  %s11502_s13 = sld [smem:[#allocation35_spill]] }
 0xb13   : > { %v3519_v24 = vadd.f32 %v3518_v45, %v3510_v38  ;;  %v9145_v47 = vld [vmem:[%s11493_s10] sm:$0xff]   ;;  %v9147_v12 = vld [vmem:[%s11493_s10 + $0x8] sm:$0xff]   ;;  %v9149_v31 = vld [vmem:[%s11493_s10 + $0x10] sm:$0xff]  }
 0xb14   : > { %v9146_v50 = vld [vmem:[%s11493_s10 + $0x20] sm:$0xff]   ;;  %8479 = vmatpush3.bf16.msra.mxu1 %v9145_v47  ;;  %v9148_v15 = vld [vmem:[%s11493_s10 + $0x28] sm:$0xff]   ;;  %v9151_v33 = vld [vmem:[%s11493_s10 + $0x18] sm:$0xff]  }
 0xb15   : > { %v3520_v51 = vmul.f32 0.7978846, %v3519_v24  ;;  %8480 = vmatprep.subr.bf16.mxu1 %v9610_v5  ;;  %v9150_v28 = vld [vmem:[%s11493_s10 + $0x40] sm:$0xff]   ;;  %v9152_v4 = vld [vmem:[%s11493_s10 + $0x48] sm:$0xff]   ;;  %v9153_v34 = vld [vmem:[%s11493_s10 + $0x30] sm:$0xff]  }
 0xb16   : > { %v9154_v9 = vld [vmem:[%s11493_s10 + $0x60] sm:$0xff]   ;;  %v9155_v39 = vld [vmem:[%s11493_s10 + $0x38] sm:$0xff]   ;;  %v9156_v1 = vld [vmem:[%s11493_s10 + $0x68] sm:$0xff]  }
 0xb17   : > { %9271 = vtanh.f32 %v3520_v51  ;;  %v9157_v41 = vld [vmem:[%s11493_s10 + $0x50] sm:$0xff]   ;;  %v9158_v42 = vld [vmem:[%s11493_s10 + $0x58] sm:$0xff]  }
 0xb18   : > { %8481 = vmatpush3.bf16.msra.mxu1 %v9147_v12  ;;  %v9159_v43 = vld [vmem:[%s11493_s10 + $0x70] sm:$0xff]  }
 0xb19   : > { %8486 = vmatprep.subr.bf16.mxu1 %v9610_v5 }
 0xb21   : > { %v9272_v63 = vpop.eup %9271 }
 0xb22   : > { %v3522_v23 = vadd.f32 1.0, %v9272_v63 }
 0xb24   : > { %v3523_v52 = vmul.f32 0.5, %v3522_v23 }
 0xb26   : > { %v3524_v53 = vmul.f32 %v3523_v52, %v3510_v38  ;;  %v9160_v38 = vld [vmem:[%s11493_s10 + $0x78] sm:$0xff]   ;;  %s11499_s10 = smov 16  }
 0xb7f   : > { %v3527_v44 = vpop.permute.xlu0 %3526 }
 0xb80   : > { %v3529_v57 = vmul.f32 %v3527_v44, %v3524_v53 }
 0xb82   : > { %v3530_v26 = vpack.c.bf16 %v3529_v57, %v3529_v57 }
 0xb84   : > { %8475 = vmatmul.mubr.msk.bf16.vlgmr.msra.gmra.mrb[48].mxu0 %vm3563_vm10, %v3530_v26 }
 0xb85   : > { %8498 = vmatprep.mubr.msk.bf16.mxu0 %vm9611_vm1, %v9610_v5  ;;  %8495 = vmatpush3.bf16.msra.mxu0 %v9146_v50 }
 0xb86   : > { %8496 = vmatprep.subr.bf16.mxu0 %v9610_v5 }
 0xb89   : > { %8497 = vmatpush3.bf16.msra.mxu0 %v9148_v15 }
 0xb8a   : > { %8510 = vmatprep.subr.bf16.mxu0 %v9610_v5 }
 0xc57   : > { %v3601_v55 = vpop.f32.mrb[48].mxu0 }
 0xc58   : > { %v3608_v29 = vmul.f32 %v3601_v55, %v3601_v55  ;;  %v8476_v27 = vpop.f32.mrb[49].mxu0 }
 0xc59   : > { %v3604_v58 = vpop.f32.mrb[50].mxu0 }
 0xc5a   : > { %v8477_v61 = vpop.f32.mrb[51].mxu0  ;;  %v3609_v54 = vsel %vm1224_vm0, %v3608_v29, 0.0 }
 0xc5b   : > { %3610 = vadd.xlane.f32.xlu1 %v3609_v54 }
 0xce8   : > { %v3611_v59 = vpop.xlane.xlu1 %3610 }
 0xce9   : > { %v3612_v60 = vmul.f32 0.03125, %v3611_v59 }
 0xceb   : > { %v3613_v62 = vadd.f32 1e-06, %v3612_v60 }
 0xced   : > { %9273 = vrsqrt.f32 %v3613_v62 }
 0xcf7   : > { %v9274_v13 = vpop.eup %9273 }
 0xcf8   : > { %v3615_v2 = vmul.f32 %v9274_v13, %v3601_v55 }
 0xcfa   : > { %v3623_v40 = vmul.f32 %v3621_v30, %v3615_v2 }
 0xcfc   : > { %v10423_v6 = vadd.f32 %v3623_v40, %v10389_v22 }
 0xcfe   : > { %v3627_v3 = vmul.f32 %v10423_v6, %v10423_v6  ;;  %3625 = vst.msk [vmem:[%s11408_s7] sm:$0xff] %vm1224_vm0, %v10423_v6  ;;  %s11496_s7 = smov 124  }
 0xd00   : > { %v3628_v10 = vsel %vm1224_vm0, %v3627_v3, 0.0 }
 0xd01   : > { %3629 = vadd.xlane.f32.xlu1 %v3628_v10 }
 0xd8e   : > { %v3630_v19 = vpop.xlane.xlu1 %3629 }
 0xd8f   : > { %v3631_v21 = vmul.f32 0.03125, %v3630_v19 }
 0xd91   : > { %v3632_v22 = vadd.f32 1e-06, %v3631_v21 }
 0xd93   : > { %9275 = vrsqrt.f32 %v3632_v22 }
 0xd9d   : > { %v9276_v36 = vpop.eup %9275 }
 0xd9e   : > { %v3634_v25 = vmul.f32 %v9276_v36, %v10423_v6 }
 0xda0   : > { %v3642_v56 = vmul.f32 %v3640_v20, %v3634_v25 }
 0xda2   : > { %v3643_v32 = vpack.c.bf16 %v3642_v56, %v3642_v56 }
 0xda4   : > { %8483 = vmatmul.mubr.msk.bf16.vlgmr.msra.gmra.mrb[56].mxu1 %vm1224_vm0, %v3643_v32  ;;  %8499 = vmatmul.mubr.msk.bf16.vlgmr.msra.gmra.mrb[52].mxu0 %vm1224_vm0, %v3643_v32 }
 0xda5   : > { %8487 = vmatpush3.bf16.msra.mxu1 %v9149_v31  ;;  %8511 = vmatpush3.bf16.msra.mxu0 %v9150_v28 }
 0xda6   : > { %8488 = vmatprep.subr.bf16.mxu1 %v9610_v5  ;;  %8512 = vmatprep.subr.bf16.mxu0 %v9610_v5 }
 0xda7   : > { %8490 = vmatprep.mubr.msk.bf16.mxu1 %vm9611_vm1, %v9610_v5  ;;  %8514 = vmatprep.mubr.msk.bf16.mxu0 %vm9611_vm1, %v9610_v5 }
 0xda9   : > { %8489 = vmatpush3.bf16.msra.mxu1 %v9151_v33  ;;  %8513 = vmatpush3.bf16.msra.mxu0 %v9152_v4 }
 0xdaa   : > { %8502 = vmatprep.subr.bf16.mxu1 %v9610_v5  ;;  %8526 = vmatprep.subr.bf16.mxu0 %v9610_v5 }
 0xdac   : > { %8491 = vmatmul.mubr.msk.bf16.vlgmr.msra.gmra.mrb[60].mxu1 %vm1224_vm0, %v3643_v32  ;;  %8515 = vmatmul.mubr.msk.bf16.vlgmr.msra.gmra.mrb[56].mxu0 %vm1224_vm0, %v3643_v32 }
 0xdad   : > { %8503 = vmatpush3.bf16.msra.mxu1 %v9153_v34  ;;  %8527 = vmatpush3.bf16.msra.mxu0 %v9154_v9 }
 0xdae   : > { %8504 = vmatprep.subr.bf16.mxu1 %v9610_v5  ;;  %8528 = vmatprep.subr.bf16.mxu0 %v9610_v5 }
 0xdaf   : > { %8506 = vmatprep.mubr.msk.bf16.mxu1 %vm9611_vm1, %v9610_v5  ;;  %8530 = vmatprep.mubr.msk.bf16.mxu0 %vm9611_vm1, %v9610_v5 }
 0xdb1   : > { %8505 = vmatpush3.bf16.msra.mxu1 %v9155_v39  ;;  %8529 = vmatpush3.bf16.msra.mxu0 %v9156_v1 }
 0xdb2   : > { %8518 = vmatprep.subr.bf16.mxu1 %v9610_v5  ;;  %8542 = vmatprep.subr.bf16.mxu0 %v9610_v5 }
 0xdb4   : > { %8507 = vmatmul.mubr.msk.bf16.vlgmr.msra.gmra.mrb[64].mxu1 %vm1224_vm0, %v3643_v32  ;;  %8531 = vmatmul.mubr.msk.bf16.vlgmr.msra.gmra.mrb[60].mxu0 %vm1224_vm0, %v3643_v32 }
 0xdb5   : > { %8519 = vmatpush3.bf16.msra.mxu1 %v9157_v41  ;;  %8522 = vmatprep.mubr.msk.bf16.mxu1 %vm9611_vm1, %v9610_v5 }
 0xdb6   : > { %8520 = vmatprep.subr.bf16.mxu1 %v9610_v5  ;;  %8544 = vmatprep.mubr.msk.bf16.mxu0 %vm9611_vm1, %v9610_v5 }
 0xdb9   : > { %8521 = vmatpush3.bf16.msra.mxu1 %v9158_v42 }
 0xdba   : > { %8534 = vmatprep.subr.bf16.mxu1 %v9610_v5 }
 0xdbc   : > { %8523 = vmatmul.mubr.msk.bf16.vlgmr.msra.gmra.mrb[68].mxu1 %vm1224_vm0, %v3643_v32 }
 0xdbd   : > { %8535 = vmatpush3.bf16.msra.mxu1 %v9159_v43  ;;  %8538 = vmatprep.mubr.msk.bf16.mxu1 %vm9611_vm1, %v9610_v5 }
 0xdbe   : > { %8536 = vmatprep.subr.bf16.mxu1 %v9610_v5 }
 0xdc1   : > { %8537 = vmatpush3.bf16.msra.mxu1 %v9160_v38 }
 0xdc2   : > { %8548 = vmatprep.subr.bf16.mxu1 %v9610_v5 }
 0xdc4   : > { %8539 = vmatmul.mubr.msk.bf16.vlgmr.msra.gmra.mrb[72].mxu1 %vm1224_vm0, %v3643_v32 }
 0xdc5   : > { %8550 = vmatprep.mubr.msk.bf16.mxu1 %vm9611_vm1, %v9610_v5 }
 0xe77   : > { %v10492_v46 = vpop.f32.mrb[56].mxu1  ;;  %v10494_v17 = vpop.f32.mrb[52].mxu0 }
 0xe78   : > { %v8484_v48 = vpop.f32.mrb[57].mxu1  ;;  %v8500_v14 = vpop.f32.mrb[53].mxu0  ;;  %v4127_v45 = vmul.f32 %v10497_v49, %v10492_v46  ;;  %v4129_v12 = vmul.f32 %v10497_v49, %v10494_v17  ;;  %v4123_v8 = vmul.f32 %v10492_v46, %v9997_v18  ;;  %v4125_v42 = vmul.f32 %v10494_v17, %v9997_v18 }
 0xe79   : > { %v3728_v24 = vpop.f32.mrb[58].mxu1  ;;  %v3832_v51 = vpop.f32.mrb[54].mxu0 }
 0xe7a   : > { %4135 = vrot.lane.b32.xlu0 %v4127_v45, %s11495_s5  ;;  %v8485_v63 = vpop.f32.mrb[59].mxu1  ;;  %v8501_v23 = vpop.f32.mrb[55].mxu0 }
 0xe7b   : > { %v4099_v23 = vmul.f32 %v10492_v46, %v10010_v37 }
 0xe7f   : > { %v10502_v52 = vpop.f32.mrb[60].mxu1  ;;  %v10504_v53 = vpop.f32.mrb[56].mxu0 }
 0xe80   : > { %v8492_v44 = vpop.f32.mrb[61].mxu1  ;;  %v8516_v57 = vpop.f32.mrb[57].mxu0  ;;  %v4167_v26 = vmul.f32 %v10497_v49, %v10504_v53  ;;  %v4128_v61 = vmul.f32 %v10497_v49, %v10502_v52  ;;  %v4165_v25 = vmul.f32 %v10504_v53, %v9997_v18  ;;  %v4124_v32 = vmul.f32 %v10502_v52, %v9997_v18 }
 0xe81   : > { %v3780_v55 = vpop.f32.mrb[62].mxu1  ;;  %v3936_v29 = vpop.f32.mrb[58].mxu0  ;;  %v4153_v51 = vmul.f32 %v10504_v53, %v10010_v37  ;;  %v4100_v44 = vmul.f32 %v10502_v52, %v10010_v37 }
 0xe82   : > { %v8493_v27 = vpop.f32.mrb[63].mxu1  ;;  %4171 = vrot.lane.b32.xlu1 %v4167_v26, %s11495_s5  ;;  %v8517_v58 = vpop.f32.mrb[59].mxu0  ;;  %v4101_v55 = vmul.f32 %v10494_v17, %v10010_v37 }
 0xe86   : > { %4137 = vrot.lane.b32.xlu1 %v4128_v61, %s11495_s5 }
 0xe87   : > { %v10512_v54 = vpop.f32.mrb[64].mxu1  ;;  %v10514_v59 = vpop.f32.mrb[60].mxu0 }
 0xe88   : > { %v8508_v60 = vpop.f32.mrb[65].mxu1  ;;  %v8532_v62 = vpop.f32.mrb[61].mxu0  ;;  %v4130_v0 = vmul.f32 %v10497_v49, %v10512_v54  ;;  %v4126_v48 = vmul.f32 %v10512_v54, %v9997_v18  ;;  %v4102_v26 = vmul.f32 %v10512_v54, %v10010_v37 }
 0xe89   : > { %v3884_v11 = vpop.f32.mrb[66].mxu1  ;;  %v4040_v30 = vpop.f32.mrb[62].mxu0 }
 0xe8a   : > { %v8509_v13 = vpop.f32.mrb[67].mxu1  ;;  %4141 = vrot.lane.b32.xlu1 %v4130_v0, %s11495_s5  ;;  %v8533_v2 = vpop.f32.mrb[63].mxu0  ;;  %v10576_v0 = vld [vmem:[%s11476_s9] sm:$0xff] }
 0xe8b   : > { %v4151_v11 = vmul.f32 %v10576_v0, %v10504_v53 }
 0xe8f   : > { %v10519_v40 = vpop.f32.mrb[68].mxu1 }
 0xe90   : > { %v8524_v3 = vpop.f32.mrb[69].mxu1  ;;  %v4168_v10 = vmul.f32 %v10497_v49, %v10519_v40  ;;  %v4166_v9 = vmul.f32 %v10519_v40, %v9997_v18  ;;  %v4154_v57 = vmul.f32 %v10519_v40, %v10010_v37 }
 0xe91   : > { %v3988_v47 = vpop.f32.mrb[70].mxu1 }
 0xe92   : > { %4173 = vrot.lane.b32.xlu0 %v4168_v10, %s11495_s5  ;;  %v8525_v50 = vpop.f32.mrb[71].mxu1 }
 0xe96   : > { %4139 = vrot.lane.b32.xlu0 %v4129_v12, %s11495_s5  ;;  %v4095_v12 = vmul.f32 %v10576_v0, %v10492_v46 }
 0xe97   : > { %v10527_v15 = vpop.f32.mrb[72].mxu1 }
 0xe98   : > { %v8540_v19 = vpop.f32.mrb[73].mxu1 }
 0xe99   : > { %v4092_v21 = vpop.f32.mrb[74].mxu1  ;;  %v4096_v19 = vmul.f32 %v10576_v0, %v10502_v52 }
 0xe9a   : > { %v8541_v22 = vpop.f32.mrb[75].mxu1  ;;  %v4152_v21 = vmul.f32 %v10576_v0, %v10519_v40 }
 0xeec   : > { %v4136_v7 = vpop.permute.xlu0 %4135 }
 0xeed   : > { %v4147_v20 = vadd.f32 %v4136_v7, %v4123_v8 }
 0xeef   : > { %v4185_v36 = vpack.c.bf16 %v4147_v20, %v4147_v20 }
 0xef1   : > { %4192 = vrot.lane.b32.xlu1 %v4185_v36, %s11496_s7 }
 0xef4   : > { %v4172_v56 = vpop.permute.xlu1 %4171 }
 0xef5   : > { %v4177_v31 = vadd.f32 %v4172_v56, %v4165_v25 }
 0xef7   : > { %v4189_v28 = vpack.c.bf16 %v4177_v31, %v4177_v31  ;;  %v4098_v31 = vmul.f32 %v10576_v0, %v10512_v54 }
 0xef8   : > { %v4138_v33 = vpop.permute.xlu1 %4137 }
 0xef9   : > { %v4148_v4 = vadd.f32 %v4138_v33, %v4124_v32  ;;  %4195 = vrot.lane.b32.xlu0 %v4189_v28, %s11496_s7  ;;  %v4097_v28 = vmul.f32 %v10576_v0, %v10494_v17  ;;  %v4621_v17 = vpack.c.bf16 %v10514_v59, %v10514_v59 }
 0xefb   : > { %v4186_v34 = vpack.c.bf16 %v4148_v4, %v4148_v4 }
 0xefc   : > { %v4142_v43 = vpop.permute.xlu1 %4141 }
 0xefd   : > { %4244 = vrot.lane.b32.xlu1 %v4186_v34, %s11496_s7  ;;  %v4150_v45 = vadd.f32 %v4142_v43, %v4126_v48  ;;  %v4627_v34 = vsel %vm3165_vm5, %v4621_v17, 0 }
 0xeff   : > { %v4188_v63 = vpack.c.bf16 %v4150_v45, %v4150_v45 }
 0xf04   : > { %v4174_v39 = vpop.permute.xlu0 %4173 }
 0xf05   : > { %v4178_v1 = vadd.f32 %v4174_v39, %v4166_v9 }
 0xf07   : > { %v4190_v41 = vpack.c.bf16 %v4178_v1, %v4178_v1 }
 0xf08   : > { %v4140_v38 = vpop.permute.xlu0 %4139 }
 0xf09   : > { %v4149_v14 = vadd.f32 %v4140_v38, %v4125_v42  ;;  %4293 = vrot.lane.b32.xlu0 %v4190_v41, %s11496_s7 }
 0xf0b   : > { %v4187_v24 = vpack.c.bf16 %v4149_v14, %v4149_v14 }
 0xf0d   : > { %4290 = vrot.lane.b32.xlu1 %v4187_v24, %s11496_s7  ;;  %4157 = vrot.lane.b32.xlu0 %v4153_v51, %s11496_s7 }
 0xf11   : > { %4107 = vrot.lane.b32.xlu1 %v4099_v23, %s11496_s7  ;;  %4342 = vrot.lane.b32.xlu0 %v4188_v63, %s11496_s7 }
 0xf15   : > { %4109 = vrot.lane.b32.xlu1 %v4100_v44, %s11496_s7  ;;  %4159 = vrot.lane.b32.xlu0 %v4154_v57, %s11496_s7 }
 0xf19   : > { %4113 = vrot.lane.b32.xlu1 %v4102_v26, %s11496_s7  ;;  %4111 = vrot.lane.b32.xlu0 %v4101_v55, %s11496_s7 }
 0xf63   : > { %v4193_v58 = vpop.permute.xlu1 %4192 }
 0xf6b   : > { %v4196_v29 = vpop.permute.xlu0 %4195 }
 0xf6c   : > { %v4201_v27 = vsel %vm1804_vm3, %v4196_v29, 0 }
 0xf6d   : > { %8543 = vmatpush3.bf16.xpose.msra.mxu0 %v4201_v27  ;;  %8549 = vmatpush3.bf16.xpose.msra.mxu1 %v4201_v27 }
 0xf6e   : > { %8554 = vmatprep.subr.bf16.mxu0 %v9610_v5  ;;  %8560 = vmatprep.subr.bf16.mxu1 %v9610_v5 }
 0xf6f   : > { %v4245_v61 = vpop.permute.xlu1 %4244 }
 0xf74   : > { %8545 = vmatmul.mubr.msk.bf16.vlgmr.msra.gmra.mrb[64].mxu0 %vm1804_vm3, %v4193_v58  ;;  %8551 = vmatmul.mubr.msk.bf16.vlgmr.msra.gmra.mrb[76].mxu1 %vm1804_vm3, %v4245_v61 }
 0xf75   : > { %8556 = vmatprep.mubr.msk.bf16.mxu0 %vm9611_vm1, %v9610_v5  ;;  %8562 = vmatprep.mubr.msk.bf16.mxu1 %vm9611_vm1, %v9610_v5 }
 0xf7b   : > { %v4294_v60 = vpop.permute.xlu0 %4293 }
 0xf7c   : > { %v4299_v62 = vsel %vm1804_vm3, %v4294_v60, 0 }
 0xf7d   : > { %8555 = vmatpush3.bf16.xpose.msra.mxu0 %v4299_v62  ;;  %8561 = vmatpush3.bf16.xpose.msra.mxu1 %v4299_v62 }
 0xf7e   : > { %8566 = vmatprep.subr.bf16.mxu0 %v9610_v5  ;;  %8572 = vmatprep.subr.bf16.mxu1 %v9610_v5 }
 0xf7f   : > { %v4291_v30 = vpop.permute.xlu1 %4290  ;;  %v4158_v13 = vpop.permute.xlu0 %4157 }
 0xf80   : > { %v4163_v2 = vsub.f32 %v4151_v11, %v4158_v13 }
 0xf82   : > { %v4183_v3 = vpack.c.bf16 %v4163_v2, %v4163_v2 }
 0xf83   : > { %v4108_v10 = vpop.permute.xlu1 %4107  ;;  %v4343_v47 = vpop.permute.xlu0 %4342 }
 0xf84   : > { %v4391_v50 = vsel %vm1804_vm3, %v4183_v3, 0  ;;  %8557 = vmatmul.mubr.msk.bf16.vlgmr.msra.gmra.mrb[68].mxu0 %vm1804_vm3, %v4291_v30  ;;  %8563 = vmatmul.mubr.msk.bf16.vlgmr.msra.gmra.mrb[80].mxu1 %vm1804_vm3, %v4343_v47  ;;  %v4119_v53 = vsub.f32 %v4095_v12, %v4108_v10 }
 0xf85   : > { %8567 = vmatpush3.bf16.xpose.msra.mxu0 %v4391_v50  ;;  %8573 = vmatpush3.bf16.xpose.msra.mxu1 %v4391_v50 }
 0xf86   : > { %8568 = vmatprep.mubr.msk.bf16.mxu0 %vm9611_vm1, %v9610_v5  ;;  %8574 = vmatprep.mubr.msk.bf16.mxu1 %vm9611_vm1, %v9610_v5  ;;  %v4179_v20 = vpack.c.bf16 %v4119_v53, %v4119_v53 }
 0xf87   : > { %v4110_v46 = vpop.permute.xlu1 %4109  ;;  %v4160_v22 = vpop.permute.xlu0 %4159  ;;  %8578 = vmatprep.subr.bf16.mxu0 %v9610_v5  ;;  %8584 = vmatprep.subr.bf16.mxu1 %v9610_v5 }
 0xf88   : > { %v4120_v8 = vsub.f32 %v4096_v19, %v4110_v46  ;;  %v4164_v7 = vsub.f32 %v4152_v21, %v4160_v22 }
 0xf8a   : > { %v4180_v36 = vpack.c.bf16 %v4120_v8, %v4120_v8  ;;  %v4184_v52 = vpack.c.bf16 %v4164_v7, %v4164_v7 }
 0xf8b   : > { %v4114_v25 = vpop.permute.xlu1 %4113  ;;  %v4112_v56 = vpop.permute.xlu0 %4111 }
 0xf8c   : > { %v4480_v40 = vsel %vm1804_vm3, %v4184_v52, 0  ;;  %8569 = vmatmul.mubr.msk.bf16.vlgmr.msra.gmra.mrb[64].mxu0 %vm1804_vm3, %v4179_v20  ;;  %8575 = vmatmul.mubr.msk.bf16.vlgmr.msra.gmra.mrb[76].mxu1 %vm1804_vm3, %v4180_v36  ;;  %v4122_v32 = vsub.f32 %v4098_v31, %v4114_v25  ;;  %v4121_v33 = vsub.f32 %v4097_v28, %v4112_v56 }
 0xf8d   : > { %8579 = vmatpush3.bf16.xpose.msra.mxu0 %v4480_v40  ;;  %8585 = vmatpush3.bf16.xpose.msra.mxu1 %v4480_v40 }
 0xf8e   : > { %8580 = vmatprep.mubr.msk.bf16.mxu0 %vm9611_vm1, %v9610_v5  ;;  %8586 = vmatprep.mubr.msk.bf16.mxu1 %vm9611_vm1, %v9610_v5  ;;  %v4182_v54 = vpack.c.bf16 %v4122_v32, %v4122_v32  ;;  %v4181_v4 = vpack.c.bf16 %v4121_v33, %v4121_v33 }
 0xf8f   : > { %8590 = vmatprep.subr.bf16.mxu0 %v9610_v5  ;;  %8596 = vmatprep.subr.bf16.mxu1 %v9610_v5 }
 0xf94   : > { %8581 = vmatmul.mubr.msk.bf16.vlgmr.msra.gmra.mrb[68].mxu0 %vm1804_vm3, %v4181_v4  ;;  %8587 = vmatmul.mubr.msk.bf16.vlgmr.msra.gmra.mrb[80].mxu1 %vm1804_vm3, %v4182_v54  ;;  %v4622_v4 = vpack.c.bf16 %v10527_v15, %v10527_v15 }
 0xf95   : > { %8591 = vmatpush3.bf16.msra.mxu0 %v4627_v34  ;;  %8597 = vmatpush3.bf16.msra.mxu1 %v4627_v34 }
 0xf96   : > { %8592 = vmatprep.mubr.msk.bf16.mxu0 %vm9611_vm1, %v9610_v5  ;;  %8598 = vmatprep.mubr.msk.bf16.mxu1 %vm9611_vm1, %v9610_v5 }
 0xf97   : > { %8602 = vmatprep.subr.bf16.mxu0 %v9610_v5  ;;  %8608 = vmatprep.subr.bf16.mxu1 %v9610_v5 }
0x105f   : > { %v4427_v59 = vpop.f32.mrb[64].mxu0  ;;  %v4470_v9 = vpop.f32.mrb[76].mxu1 }
0x1060   : > { %v4565_v39 = vmul.f32 0.35355338, %v4427_v59  ;;  %v4566_v1 = vmul.f32 0.35355338, %v4470_v9  ;;  %v8570_v41 = vpop.f32.mrb[65].mxu0  ;;  %v8576_v42 = vpop.f32.mrb[77].mxu1 }
0x1061   : > { %v4430_v43 = vpop.f32.mrb[66].mxu0  ;;  %v4473_v38 = vpop.f32.mrb[78].mxu1  ;;  %v4716_v41 = vsel %vm3165_vm5, %v4622_v4, 0 }
0x1062   : > { %v8571_v48 = vpop.f32.mrb[67].mxu0  ;;  %v8577_v14 = vpop.f32.mrb[79].mxu1  ;;  %v4570_v45 = vsel %vm10322_vm6, %v4566_v1, -2.3819763e+38  ;;  %v4569_v24 = vsel %vm10322_vm6, %v4565_v39, -2.3819763e+38 }
0x1063   : > { %v4576_v51 = vsel %vm2557_vm4, %v4570_v45, -inf  ;;  %v4573_v63 = vsel %vm2557_vm4, %v4569_v24, -inf }
0x1064   : > { %4577 = vmax.xlane.f32.xlu1 %v4576_v51  ;;  %4574 = vmax.xlane.f32.xlu0 %v4573_v63 }
0x1067   : > { %v4516_v23 = vpop.f32.mrb[68].mxu0  ;;  %v4559_v44 = vpop.f32.mrb[80].mxu1 }
0x1068   : > { %v4567_v57 = vmul.f32 0.35355338, %v4516_v23  ;;  %v4568_v26 = vmul.f32 0.35355338, %v4559_v44  ;;  %v8582_v55 = vpop.f32.mrb[69].mxu0  ;;  %v8588_v29 = vpop.f32.mrb[81].mxu1 }
0x1069   : > { %v4519_v27 = vpop.f32.mrb[70].mxu0  ;;  %v4562_v58 = vpop.f32.mrb[82].mxu1 }
0x106a   : > { %v8583_v61 = vpop.f32.mrb[71].mxu0  ;;  %v8589_v60 = vpop.f32.mrb[83].mxu1  ;;  %v4571_v62 = vsel %vm10322_vm6, %v4567_v57, -2.3819763e+38  ;;  %v4572_v30 = vsel %vm10322_vm6, %v4568_v26, -2.3819763e+38 }
0x106b   : > { %v4579_v11 = vsel %vm2557_vm4, %v4571_v62, -inf  ;;  %v4582_v13 = vsel %vm2557_vm4, %v4572_v30, -inf  ;;  %v9162_v57 = vld [vmem:[%s11497_s6 + $0x8] sm:$0xff]  }
0x106c   : > { %4580 = vmax.xlane.f32.xlu0 %v4579_v11 }
0x1070   : > { %4583 = vmax.xlane.f32.xlu0 %v4582_v13 }
0x10f1   : > { %v4578_v2 = vpop.xlane.xlu1 %4577  ;;  %v4575_v3 = vpop.xlane.xlu0 %4574 }
0x10f2   : > { %v4586_v10 = vsub.f32 %v4570_v45, %v4578_v2  ;;  %v4585_v47 = vsub.f32 %v4569_v24, %v4575_v3  ;;  %v9161_v24 = vld [vmem:[%s11497_s6] sm:$0xff]   ;;  %s11501_s6 = sld [smem:[#allocation32_spill]] }
0x10f4   : > { %v4591_v50 = vmul.f32 1.442695, %v4586_v10  ;;  %v4589_v12 = vmul.f32 1.442695, %v4585_v47 }
0x10f6   : > { %9277 = vpow2.f32 %v4591_v50 }
0x10f7   : > { %9279 = vpow2.f32 %v4589_v12 }
0x10f9   : > { %v4581_v53 = vpop.xlane.xlu0 %4580 }
0x10fa   : > { %v4587_v19 = vsub.f32 %v4571_v62, %v4581_v53 }
0x10fc   : > { %v4593_v21 = vmul.f32 1.442695, %v4587_v19 }
0x10fd   : > { %v4584_v46 = vpop.xlane.xlu0 %4583 }
0x10fe   : > { %9281 = vpow2.f32 %v4593_v21  ;;  %v4588_v22 = vsub.f32 %v4572_v30, %v4584_v46 }
0x1100   : > { %v9278_v8 = vpop.eup %9277  ;;  %v4595_v7 = vmul.f32 1.442695, %v4588_v22 }
0x1101   : > { %v9280_v20 = vpop.eup %9279  ;;  %v4600_v36 = vsel %vm2557_vm4, %v9278_v8, 0.0 }
0x1102   : > { %9283 = vpow2.f32 %v4595_v7  ;;  %v4597_v52 = vsel %vm2557_vm4, %v9280_v20, 0.0  ;;  %4601 = vadd.xlane.f32.xlu0 %v4600_v36  ;;  %v4878_v36 = vld [vmem:[%s11501_s6] sm:$0x1]  ;;  %s11504_s6 = sld [smem:[#allocation36_spill]] }
0x1103   : > { %4598 = vadd.xlane.f32.xlu1 %v4597_v52  ;;  %v4887_v52 = vadd.f32 1.0, %v4878_v36 }
0x1108   : > { %v9282_v25 = vpop.eup %9281 }
0x1109   : > { %v4603_v56 = vsel %vm2557_vm4, %v9282_v25, 0.0 }
0x110a   : > { %4604 = vadd.xlane.f32.xlu1 %v4603_v56 }
0x110c   : > { %v9284_v40 = vpop.eup %9283 }
0x110d   : > { %v4606_v31 = vsel %vm2557_vm4, %v9284_v40, 0.0 }
0x110e   : > { %4607 = vadd.xlane.f32.xlu0 %v4606_v31 }
0x118f   : > { %v4602_v28 = vpop.xlane.xlu0 %4601 }
0x1190   : > { %v4599_v32 = vpop.xlane.xlu1 %4598  ;;  %9285 = vrcp.f32 %v4602_v28 }
0x1191   : > { %9287 = vrcp.f32 %v4599_v32 }
0x1197   : > { %v4605_v33 = vpop.xlane.xlu1 %4604 }
0x1198   : > { %9289 = vrcp.f32 %v4605_v33 }
0x119a   : > { %v9286_v17 = vpop.eup %9285 }
0x119b   : > { %v9288_v54 = vpop.eup %9287  ;;  %v4614_v34 = vmul.f32 %v9286_v17, %v9278_v8  ;;  %v4608_v59 = vpop.xlane.xlu0 %4607  ;;  %v9163_v17 = vld [vmem:[%s11502_s13] sm:$0xff]  }
0x119c   : > { %v4613_v9 = vmul.f32 %v9288_v54, %v9280_v20  ;;  %9291 = vrcp.f32 %v4608_v59  ;;  %v9164_v54 = vld [vmem:[%s11502_s13 + $0x8] sm:$0xff]   ;;  %v4896_v59 = vld [vmem:[%s11503_s14] sm:$0x1]  ;;  %s11505_s14 = smov 64   ;;  %s11507_s13 = sld [smem:[#allocation37_spill]] }
0x119d   : > { %v4618_v39 = vpack.c.bf16 %v4614_v34, %v4614_v34 }
0x119e   : > { %v4617_v1 = vpack.c.bf16 %v4613_v9, %v4613_v9  ;;  %v4905_v9 = vadd.f32 1.0, %v4896_v59 }
0x119f   : > { %8599 = vmatmul.mubr.msk.bf16.vlgmr.msra.gmra.mrb[84].mxu1 %vm2557_vm4, %v4618_v39 }
0x11a0   : > { %8593 = vmatmul.mubr.msk.bf16.vlgmr.msra.gmra.mrb[72].mxu0 %vm2557_vm4, %v4617_v1  ;;  %8609 = vmatpush3.bf16.msra.mxu1 %v4716_v41  ;;  %v4910_v39 = vrot.slane %v4905_v9, %v9910_v16 }
0x11a1   : > { %8603 = vmatpush3.bf16.msra.mxu0 %v4716_v41  ;;  %8604 = vmatprep.mubr.msk.bf16.mxu0 %vm9611_vm1, %v9610_v5 }
0x11a2   : > { %v9290_v42 = vpop.eup %9289  ;;  %8610 = vmatprep.mubr.msk.bf16.mxu1 %vm9611_vm1, %v9610_v5  ;;  %8614 = vmatprep.subr.bf16.mxu0 %v9610_v5  ;;  %v9173_v9 = vld [vmem:[%s11507_s13 + $0x10] sm:$0xff]  }
0x11a3   : > { %v4615_v15 = vmul.f32 %v9290_v42, %v9282_v25  ;;  %8622 = vmatprep.subr.bf16.mxu1 %v9610_v5  ;;  %v4892_v25 = vrot.slane %v4887_v52, %v9910_v16 }
0x11a5   : > { %v4619_v43 = vpack.c.bf16 %v4615_v15, %v4615_v15 }
0x11a6   : > { %v9292_v38 = vpop.eup %9291 }
0x11a7   : > { %v4616_v48 = vmul.f32 %v9292_v38, %v9284_v40  ;;  %v9166_v38 = vld [vmem:[%s11504_s6 + $0x8] sm:$0xff]  }
0x11a8   : > { %8605 = vmatmul.mubr.msk.bf16.vlgmr.msra.gmra.mrb[76].mxu0 %vm2557_vm4, %v4619_v43  ;;  %v9165_v43 = vld [vmem:[%s11504_s6] sm:$0xff]  }
0x11a9   : > { %v4620_v14 = vpack.c.bf16 %v4616_v48, %v4616_v48  ;;  %8618 = vmatprep.mubr.msk.bf16.mxu0 %vm9611_vm1, %v9610_v5  ;;  %8615 = vmatpush3.bf16.msra.mxu0 %v9161_v24  ;;  %v9167_v48 = vld [vmem:[%s11504_s6 + $0x10] sm:$0xff]  }
0x11aa   : > { %8616 = vmatprep.subr.bf16.mxu0 %v9610_v5 }
0x11ab   : > { %8611 = vmatmul.mubr.msk.bf16.vlgmr.msra.gmra.mrb[88].mxu1 %vm2557_vm4, %v4620_v14  ;;  %v9168_v14 = vld [vmem:[%s11504_s6 + $0x18] sm:$0xff]   ;;  %s11506_s6 = sld [smem:[#allocation34_spill]] }
0x11ac   : > { %8626 = vmatprep.mubr.msk.bf16.mxu1 %vm9611_vm1, %v9610_v5  ;;  %8623 = vmatpush3.bf16.msra.mxu1 %v9163_v17 }
0x11ad   : > { %8617 = vmatpush3.bf16.msra.mxu0 %v9162_v57  ;;  %8624 = vmatprep.subr.bf16.mxu1 %v9610_v5 }
0x11ae   : > { %8630 = vmatprep.subr.bf16.mxu0 %v9610_v5 }
0x11b0   : > { %8625 = vmatpush3.bf16.msra.mxu1 %v9164_v54 }
0x11b1   : > { %8642 = vmatprep.subr.bf16.mxu1 %v9610_v5 }
0x1272   : > { %v4706_v45 = vpop.f32.mrb[84].mxu1 }
0x1273   : > { %v4663_v51 = vpop.f32.mrb[72].mxu0  ;;  %4803 = vrot.lane.b32.xlu1 %v4706_v45, %s11498_s8  ;;  %v8600_v63 = vpop.f32.mrb[85].mxu1 }
0x1274   : > { %4801 = vst.msk [vmem:[#allocation2] sm:$0xff] %vm2557_vm4, %v4663_v51  ;;  %v8594_v23 = vpop.f32.mrb[73].mxu0  ;;  %v4709_v44 = vpop.f32.mrb[86].mxu1 }
0x1275   : > { %v4666_v26 = vpop.f32.mrb[74].mxu0  ;;  %v8601_v55 = vpop.f32.mrb[87].mxu1 }
0x1276   : > { %v8595_v29 = vpop.f32.mrb[75].mxu0 }
0x127b   : > { %v4752_v27 = vpop.f32.mrb[76].mxu0 }
0x127c   : > { %4808 = vrot.lane.b32.xlu0 %v4752_v27, %s11499_s10  ;;  %v8606_v58 = vpop.f32.mrb[77].mxu0 }
0x127d   : > { %v4755_v61 = vpop.f32.mrb[78].mxu0 }
0x127e   : > { %v8607_v60 = vpop.f32.mrb[79].mxu0  ;;  %v4795_v62 = vpop.f32.mrb[88].mxu1 }
0x127f   : > { %4813 = vrot.lane.b32.xlu1 %v4795_v62, %s11500_s12  ;;  %v8612_v11 = vpop.f32.mrb[89].mxu1 }
0x1280   : > { %v4798_v30 = vpop.f32.mrb[90].mxu1 }
0x1281   : > { %v8613_v13 = vpop.f32.mrb[91].mxu1 }
0x12e5   : > { %v4804_v2 = vpop.permute.xlu1 %4803 }
0x12e6   : > { %4806 = vst.msk [vmem:[#allocation2] sm:$0xff] %vm3346_vm7, %v4804_v2 }
0x12ee   : > { %v4809_v3 = vpop.permute.xlu0 %4808 }
0x12ef   : > { %4811 = vst.msk [vmem:[#allocation2] sm:$0xff] %vm3352_vm8, %v4809_v3 }
0x12f1   : > { %v4814_v10 = vpop.permute.xlu1 %4813 }
0x12f2   : > { %4816 = vst.msk [vmem:[#allocation2] sm:$0xff] %vm3358_vm9, %v4814_v10 }
0x12f9   : > { %v4817_v47 = vld [vmem:[#allocation2] sm:$0xff] }
0x12fa   : > { %v4818_v50 = vpack.c.bf16 %v4817_v47, %v4817_v47 }
0x12fc   : > { %8619 = vmatmul.mubr.msk.bf16.vlgmr.msra.gmra.mrb[80].mxu0 %vm1224_vm0, %v4818_v50 }
0x12fd   : > { %8638 = vmatprep.mubr.msk.bf16.mxu0 %vm9611_vm1, %v9610_v5  ;;  %8631 = vmatpush3.bf16.msra.mxu0 %v9165_v43  ;;  %v9178_v43 = vld [vmem:[%s11507_s13 + $0x60] sm:$0xff]  }
0x12fe   : > { %8632 = vmatprep.subr.bf16.mxu0 %v9610_v5 }
0x1301   : > { %8633 = vmatpush3.bf16.msra.mxu0 %v9166_v38  ;;  %v9179_v38 = vld [vmem:[%s11507_s13 + $0x38] sm:$0xff]  }
0x1302   : > { %8634 = vmatprep.subr.bf16.mxu0 %v9610_v5 }
0x1305   : > { %8635 = vmatpush3.bf16.msra.mxu0 %v9167_v48  ;;  %v9180_v48 = vld [vmem:[%s11507_s13 + $0x68] sm:$0xff]  }
0x1306   : > { %8636 = vmatprep.subr.bf16.mxu0 %v9610_v5 }
0x1309   : > { %8637 = vmatpush3.bf16.msra.mxu0 %v9168_v14  ;;  %v9181_v14 = vld [vmem:[%s11507_s13 + $0x50] sm:$0xff]  }
0x130a   : > { %8658 = vmatprep.subr.bf16.mxu0 %v9610_v5 }
0x13cf   : > { %v4872_v12 = vpop.f32.mrb[80].mxu0 }
0x13d0   : > { %v4879_v53 = vmul.f32 %v4872_v12, %v4872_v12  ;;  %v8620_v19 = vpop.f32.mrb[81].mxu0 }
0x13d1   : > { %v4875_v21 = vpop.f32.mrb[82].mxu0  ;;  %v5063_v19 = vld [vmem:[%s11506_s6] sm:$0x1]  ;;  %s11508_s6 = sld [smem:[#allocation43_spill]] }
0x13d2   : > { %v8621_v46 = vpop.f32.mrb[83].mxu0  ;;  %v4880_v22 = vsel %vm1224_vm0, %v4879_v53, 0.0  ;;  %v5072_v21 = vadd.f32 1.0, %v5063_v19 }
0x13d3   : > { %4881 = vadd.xlane.f32.xlu1 %v4880_v22 }
0x13d4   : > { %v5077_v46 = vrot.slane %v5072_v21, %v9910_v16 }
0x13d7   : > { %v5082_v17 = vld [vmem:[%s11508_s6] sm:$0x1]  ;;  %s11509_s6 = sld [smem:[#allocation40_spill]] }
0x13d8   : > { %v5091_v54 = vadd.f32 1.0, %v5082_v17 }
0x1460   : > { %v4882_v8 = vpop.xlane.xlu1 %4881 }
0x1461   : > { %v4883_v7 = vmul.f32 0.03125, %v4882_v8 }
0x1463   : > { %v4884_v20 = vadd.f32 1e-06, %v4883_v7 }
0x1465   : > { %9293 = vrsqrt.f32 %v4884_v20 }
0x146f   : > { %v9294_v56 = vpop.eup %9293 }
0x1470   : > { %v4886_v40 = vmul.f32 %v9294_v56, %v4872_v12  ;;  %v9170_v56 = vld [vmem:[%s11507_s13 + $0x20] sm:$0xff]  }
0x1472   : > { %v4894_v31 = vmul.f32 %v4892_v25, %v4886_v40  ;;  %v9169_v25 = vld [vmem:[%s11507_s13] sm:$0xff]   ;;  %v9171_v40 = vld [vmem:[%s11507_s13 + $0x8] sm:$0xff]  }
0x1474   : > { %v10672_v28 = vadd.f32 %v4894_v31, %v10423_v6  ;;  %v9172_v31 = vld [vmem:[%s11507_s13 + $0x28] sm:$0xff]  }
0x1476   : > { %v4897_v32 = vmul.f32 %v10672_v28, %v10672_v28 }
0x1478   : > { %v4898_v33 = vsel %vm1224_vm0, %v4897_v32, 0.0 }
0x1479   : > { %4899 = vadd.xlane.f32.xlu0 %v4898_v33 }
0x1506   : > { %v4900_v4 = vpop.xlane.xlu0 %4899 }
0x1507   : > { %v4901_v34 = vmul.f32 0.03125, %v4900_v4  ;;  %v5096_v4 = vrot.slane %v5091_v54, %v9910_v16 }
0x1509   : > { %v4902_v6 = vadd.f32 1e-06, %v4901_v34 }
0x150b   : > { %9295 = vrsqrt.f32 %v4902_v6 }
0x1515   : > { %v9296_v1 = vpop.eup %9295 }
0x1516   : > { %v4904_v41 = vmul.f32 %v9296_v1, %v10672_v28 }
0x1518   : > { %v4912_v42 = vmul.f32 %v4910_v39, %v4904_v41  ;;  %v9174_v39 = vld [vmem:[%s11507_s13 + $0x40] sm:$0xff]   ;;  %v9175_v41 = vld [vmem:[%s11507_s13 + $0x18] sm:$0xff]  }
0x151a   : > { %v4913_v15 = vpack.c.bf16 %v4912_v42, %v4912_v42  ;;  %v9176_v42 = vld [vmem:[%s11507_s13 + $0x48] sm:$0xff]  }
0x151c   : > { %8627 = vmatmul.mubr.msk.bf16.vlgmr.msra.gmra.mrb[92].mxu1 %vm1224_vm0, %v4913_v15  ;;  %v9177_v15 = vld [vmem:[%s11507_s13 + $0x30] sm:$0xff]  }
0x151d   : > { %8646 = vmatprep.mubr.msk.bf16.mxu1 %vm9611_vm1, %v9610_v5  ;;  %8643 = vmatpush3.bf16.msra.mxu1 %v9169_v25 }
0x151e   : > { %8644 = vmatprep.subr.bf16.mxu1 %v9610_v5 }
0x1521   : > { %8645 = vmatpush3.bf16.msra.mxu1 %v9171_v40 }
0x1522   : > { %8650 = vmatprep.subr.bf16.mxu1 %v9610_v5 }
0x15ef   : > { %v4967_v45 = vpop.f32.mrb[92].mxu1 }
0x15f0   : > { %4983 = vrot.lane.b32.xlu0 %v4967_v45, %s11505_s14  ;;  %v8628_v24 = vpop.f32.mrb[93].mxu1  ;;  %v4973_v23 = vmul.f32 %v4967_v45, %v4967_v45 }
0x15f1   : > { %v4970_v51 = vpop.f32.mrb[94].mxu1  ;;  %v9183_v24 = vld [vmem:[%s11507_s13 + $0x70] sm:$0xff]  }
0x15f2   : > { %v8629_v63 = vpop.f32.mrb[95].mxu1  ;;  %v4974_v44 = vmul.f32 %v4973_v23, %v4967_v45  ;;  %v9184_v51 = vld [vmem:[%s11507_s13 + $0x78] sm:$0xff]  }
0x15f4   : > { %v4975_v57 = vmul.f32 0.044715, %v4974_v44 }
0x15f6   : > { %v4976_v26 = vadd.f32 %v4975_v57, %v4967_v45 }
0x15f8   : > { %v4977_v55 = vmul.f32 0.7978846, %v4976_v26 }
0x15fa   : > { %9297 = vtanh.f32 %v4977_v55 }
0x1604   : > { %v9298_v29 = vpop.eup %9297 }
0x1605   : > { %v4979_v27 = vadd.f32 1.0, %v9298_v29 }
0x1607   : > { %v4980_v58 = vmul.f32 0.5, %v4979_v27 }
0x1609   : > { %v4981_v61 = vmul.f32 %v4980_v58, %v4967_v45  ;;  %v9182_v45 = vld [vmem:[%s11507_s13 + $0x58] sm:$0xff]  }
0x1662   : > { %v4984_v60 = vpop.permute.xlu0 %4983 }
0x1663   : > { %v4986_v62 = vmul.f32 %v4984_v60, %v4981_v61 }
0x1665   : > { %v4987_v11 = vpack.c.bf16 %v4986_v62, %v4986_v62 }
0x1667   : > { %8639 = vmatmul.mubr.msk.bf16.vlgmr.msra.gmra.mrb[84].mxu0 %vm3563_vm10, %v4987_v11 }
0x1668   : > { %8662 = vmatprep.mubr.msk.bf16.mxu0 %vm9611_vm1, %v9610_v5  ;;  %8659 = vmatpush3.bf16.msra.mxu0 %v9170_v56 }
0x1669   : > { %8660 = vmatprep.subr.bf16.mxu0 %v9610_v5 }
0x166c   : > { %8661 = vmatpush3.bf16.msra.mxu0 %v9172_v31  ;;  %v5647_v31 = vld [vmem:[%s11509_s6] sm:$0x3] }
0x166d   : > { %8674 = vmatprep.subr.bf16.mxu0 %v9610_v5 }
0x173a   : > { %v5057_v30 = vpop.f32.mrb[84].mxu0 }
0x173b   : > { %v5064_v13 = vmul.f32 %v5057_v30, %v5057_v30  ;;  %v8640_v2 = vpop.f32.mrb[85].mxu0 }
0x173c   : > { %v5060_v3 = vpop.f32.mrb[86].mxu0 }
0x173d   : > { %v8641_v10 = vpop.f32.mrb[87].mxu0  ;;  %v5065_v47 = vsel %vm1224_vm0, %v5064_v13, 0.0 }
0x173e   : > { %5066 = vadd.xlane.f32.xlu1 %v5065_v47 }
0x17cb   : > { %v5067_v50 = vpop.xlane.xlu1 %5066 }
0x17cc   : > { %v5068_v12 = vmul.f32 0.03125, %v5067_v50 }
0x17ce   : > { %v5069_v53 = vadd.f32 1e-06, %v5068_v12 }
0x17d0   : > { %9299 = vrsqrt.f32 %v5069_v53 }
0x17da   : > { %v9300_v22 = vpop.eup %9299 }
0x17db   : > { %v5071_v8 = vmul.f32 %v9300_v22, %v5057_v30 }
0x17dd   : > { %v5079_v7 = vmul.f32 %v5077_v46, %v5071_v8 }
0x17df   : > { %v10703_v20 = vadd.f32 %v5079_v7, %v10672_v28 }
0x17e1   : > { %v5083_v36 = vmul.f32 %v10703_v20, %v10703_v20  ;;  %5081 = vst.msk [vmem:[%s11418_s17] sm:$0xff] %vm1224_vm0, %v10703_v20  ;;  %s11512_s17 = sld [smem:[#allocation41_spill]] }
0x17e3   : > { %v5084_v52 = vsel %vm1224_vm0, %v5083_v36, 0.0 }
0x17e4   : > { %5085 = vadd.xlane.f32.xlu1 %v5084_v52 }
0x1871   : > { %v5086_v28 = vpop.xlane.xlu1 %5085 }
0x1872   : > { %v5087_v32 = vmul.f32 0.03125, %v5086_v28 }
0x1874   : > { %v5088_v33 = vadd.f32 1e-06, %v5087_v32  ;;  %v5658_v32 = vsel %vm1808_vm2, %v5647_v31, 0 }
0x1876   : > { %9301 = vrsqrt.f32 %v5088_v33 }
0x1880   : > { %v9302_v34 = vpop.eup %9301 }
0x1881   : > { %v5090_v6 = vmul.f32 %v9302_v34, %v10703_v20  ;;  %v5648_v34 = vld [vmem:[%s11509_s6 + $0x2] sm:$0x3] }
0x1883   : > { %v5098_v59 = vmul.f32 %v5096_v4, %v5090_v6  ;;  %v5707_v6 = vsel %vm1808_vm2, %v5648_v34, 0 }
0x1885   : > { %v5099_v1 = vpack.c.bf16 %v5098_v59, %v5098_v59 }
0x1887   : > { %8647 = vmatmul.mubr.msk.bf16.vlgmr.msra.gmra.mrb[96].mxu1 %vm1224_vm0, %v5099_v1  ;;  %8663 = vmatmul.mubr.msk.bf16.vlgmr.msra.gmra.mrb[88].mxu0 %vm1224_vm0, %v5099_v1 }
0x1888   : > { %8651 = vmatpush3.bf16.msra.mxu1 %v9173_v9  ;;  %8675 = vmatpush3.bf16.msra.mxu0 %v9174_v39 }
0x1889   : > { %8652 = vmatprep.subr.bf16.mxu1 %v9610_v5  ;;  %8676 = vmatprep.subr.bf16.mxu0 %v9610_v5 }
0x188a   : > { %8654 = vmatprep.mubr.msk.bf16.mxu1 %vm9611_vm1, %v9610_v5  ;;  %8678 = vmatprep.mubr.msk.bf16.mxu0 %vm9611_vm1, %v9610_v5 }
0x188c   : > { %8653 = vmatpush3.bf16.msra.mxu1 %v9175_v41  ;;  %8677 = vmatpush3.bf16.msra.mxu0 %v9176_v42 }
0x188d   : > { %8666 = vmatprep.subr.bf16.mxu1 %v9610_v5  ;;  %8690 = vmatprep.subr.bf16.mxu0 %v9610_v5 }
0x188f   : > { %8655 = vmatmul.mubr.msk.bf16.vlgmr.msra.gmra.mrb[100].mxu1 %vm1224_vm0, %v5099_v1  ;;  %8679 = vmatmul.mubr.msk.bf16.vlgmr.msra.gmra.mrb[92].mxu0 %vm1224_vm0, %v5099_v1 }
0x1890   : > { %8667 = vmatpush3.bf16.msra.mxu1 %v9177_v15  ;;  %8691 = vmatpush3.bf16.msra.mxu0 %v9178_v43 }
0x1891   : > { %8668 = vmatprep.subr.bf16.mxu1 %v9610_v5  ;;  %8692 = vmatprep.subr.bf16.mxu0 %v9610_v5 }
0x1892   : > { %8670 = vmatprep.mubr.msk.bf16.mxu1 %vm9611_vm1, %v9610_v5  ;;  %8694 = vmatprep.mubr.msk.bf16.mxu0 %vm9611_vm1, %v9610_v5 }
0x1894   : > { %8669 = vmatpush3.bf16.msra.mxu1 %v9179_v38  ;;  %8693 = vmatpush3.bf16.msra.mxu0 %v9180_v48 }
0x1895   : > { %8682 = vmatprep.subr.bf16.mxu1 %v9610_v5  ;;  %8706 = vmatprep.subr.bf16.mxu0 %v9610_v5 }
0x1897   : > { %8671 = vmatmul.mubr.msk.bf16.vlgmr.msra.gmra.mrb[104].mxu1 %vm1224_vm0, %v5099_v1  ;;  %8695 = vmatmul.mubr.msk.bf16.vlgmr.msra.gmra.mrb[96].mxu0 %vm1224_vm0, %v5099_v1 }
0x1898   : > { %8683 = vmatpush3.bf16.msra.mxu1 %v9181_v14  ;;  %8686 = vmatprep.mubr.msk.bf16.mxu1 %vm9611_vm1, %v9610_v5 }
0x1899   : > { %8684 = vmatprep.subr.bf16.mxu1 %v9610_v5  ;;  %8708 = vmatprep.mubr.msk.bf16.mxu0 %vm9611_vm1, %v9610_v5 }
0x189a   : > { %8707 = vmatpush3.bf16.msra.mxu0 %v5658_v32 }
0x189b   : > { %8718 = vmatprep.subr.bf16.mxu0 %v9610_v5 }
0x189c   : > { %8685 = vmatpush3.bf16.msra.mxu1 %v9182_v45 }
0x189d   : > { %8698 = vmatprep.subr.bf16.mxu1 %v9610_v5 }
0x189f   : > { %8687 = vmatmul.mubr.msk.bf16.vlgmr.msra.gmra.mrb[108].mxu1 %vm1224_vm0, %v5099_v1 }
0x18a0   : > { %8699 = vmatpush3.bf16.msra.mxu1 %v9183_v24  ;;  %8702 = vmatprep.mubr.msk.bf16.mxu1 %vm9611_vm1, %v9610_v5 }
0x18a1   : > { %8700 = vmatprep.subr.bf16.mxu1 %v9610_v5 }
0x18a4   : > { %8701 = vmatpush3.bf16.msra.mxu1 %v9184_v51 }
0x18a5   : > { %8712 = vmatprep.subr.bf16.mxu1 %v9610_v5 }
0x18a7   : > { %8703 = vmatmul.mubr.msk.bf16.vlgmr.msra.gmra.mrb[112].mxu1 %vm1224_vm0, %v5099_v1 }
0x18a8   : > { %8714 = vmatprep.mubr.msk.bf16.mxu1 %vm9611_vm1, %v9610_v5  ;;  %8713 = vmatpush3.bf16.msra.mxu1 %v5707_v6 }
0x18a9   : > { %8724 = vmatprep.subr.bf16.mxu1 %v9610_v5 }
0x195a   : > { %v10772_v63 = vpop.f32.mrb[96].mxu1  ;;  %v10774_v23 = vpop.f32.mrb[88].mxu0 }
0x195b   : > { %v5583_v44 = vmul.f32 %v10497_v49, %v10772_v63  ;;  %v8648_v57 = vpop.f32.mrb[97].mxu1  ;;  %v8664_v26 = vpop.f32.mrb[89].mxu0  ;;  %v5585_v47 = vmul.f32 %v10497_v49, %v10774_v23  ;;  %v5581_v43 = vmul.f32 %v10774_v23, %v9997_v18 }
0x195c   : > { %v5184_v55 = vpop.f32.mrb[98].mxu1  ;;  %v5288_v29 = vpop.f32.mrb[90].mxu0 }
0x195d   : > { %5591 = vrot.lane.b32.xlu1 %v5583_v44, %s11495_s5  ;;  %v8649_v27 = vpop.f32.mrb[99].mxu1  ;;  %v8665_v58 = vpop.f32.mrb[91].mxu0  ;;  %v5555_v44 = vmul.f32 %v10772_v63, %v10010_v37  ;;  %v5557_v29 = vmul.f32 %v10774_v23, %v10010_v37 }
0x1962   : > { %v10779_v61 = vpop.f32.mrb[100].mxu1  ;;  %v10781_v60 = vpop.f32.mrb[92].mxu0 }
0x1963   : > { %v8656_v62 = vpop.f32.mrb[101].mxu1  ;;  %v8680_v11 = vpop.f32.mrb[93].mxu0  ;;  %v5584_v30 = vmul.f32 %v10497_v49, %v10779_v61  ;;  %v5623_v53 = vmul.f32 %v10497_v49, %v10781_v60  ;;  %v5580_v1 = vmul.f32 %v10779_v61, %v9997_v18  ;;  %v5621_v55 = vmul.f32 %v10781_v60, %v9997_v18 }
0x1964   : > { %v5236_v13 = vpop.f32.mrb[102].mxu1  ;;  %v5392_v2 = vpop.f32.mrb[94].mxu0  ;;  %v5556_v27 = vmul.f32 %v10779_v61, %v10010_v37 }
0x1965   : > { %5593 = vrot.lane.b32.xlu0 %v5584_v30, %s11495_s5  ;;  %v8657_v3 = vpop.f32.mrb[103].mxu1  ;;  %v8681_v10 = vpop.f32.mrb[95].mxu0 }
0x1966   : > { %v5609_v3 = vmul.f32 %v10781_v60, %v10010_v37 }
0x1969   : > { %5595 = vrot.lane.b32.xlu0 %v5585_v47, %s11495_s5  ;;  %v5649_v47 = vld [vmem:[%s11509_s6 + $0x4] sm:$0x3] }
0x196a   : > { %v10789_v50 = vpop.f32.mrb[104].mxu1  ;;  %v10791_v12 = vpop.f32.mrb[96].mxu0 }
0x196b   : > { %v5586_v19 = vmul.f32 %v10497_v49, %v10789_v50  ;;  %v8672_v21 = vpop.f32.mrb[105].mxu1  ;;  %v8696_v46 = vpop.f32.mrb[97].mxu0  ;;  %v5582_v45 = vmul.f32 %v10789_v50, %v9997_v18  ;;  %v5558_v30 = vmul.f32 %v10789_v50, %v10010_v37 }
0x196c   : > { %v5340_v22 = vpop.f32.mrb[106].mxu1  ;;  %v5496_v8 = vpop.f32.mrb[98].mxu0  ;;  %v5650_v21 = vld [vmem:[%s11509_s6 + $0x6] sm:$0x3] }
0x196d   : > { %5597 = vrot.lane.b32.xlu1 %v5586_v19, %s11495_s5  ;;  %v8673_v7 = vpop.f32.mrb[107].mxu1  ;;  %5627 = vrot.lane.b32.xlu0 %v5623_v53, %s11495_s5  ;;  %v8697_v36 = vpop.f32.mrb[99].mxu0  ;;  %v5756_v53 = vsel %vm1808_vm2, %v5649_v47, 0  ;;  %v5805_v46 = vsel %vm1808_vm2, %v5650_v21, 0 }
0x1972   : > { %v10799_v52 = vpop.f32.mrb[108].mxu1 }
0x1973   : > { %v5624_v25 = vmul.f32 %v10497_v49, %v10799_v52  ;;  %v8688_v56 = vpop.f32.mrb[109].mxu1  ;;  %v5579_v49 = vmul.f32 %v10772_v63, %v9997_v18  ;;  %v5622_v11 = vmul.f32 %v10799_v52, %v9997_v18  ;;  %v5610_v18 = vmul.f32 %v10799_v52, %v10010_v37 }
0x1974   : > { %v5444_v40 = vpop.f32.mrb[110].mxu1 }
0x1975   : > { %5629 = vrot.lane.b32.xlu1 %v5624_v25, %s11495_s5  ;;  %v8689_v28 = vpop.f32.mrb[111].mxu1  ;;  %s11510_s5 = sld [smem:[#allocation39_spill]]  ;;  %v5551_v25 = vmul.f32 %v10576_v0, %v10772_v63 }
0x197a   : > { %v10807_v33 = vpop.f32.mrb[112].mxu1 }
0x197b   : > { %v8704_v17 = vpop.f32.mrb[113].mxu1  ;;  %v5639_v37 = vld [vmem:[%s11510_s5] sm:$0x3]  ;;  %v5640_v36 = vld [vmem:[%s11510_s5 + $0x2] sm:$0x3] }
0x197c   : > { %v5548_v54 = vpop.f32.mrb[114].mxu1  ;;  %v5851_v8 = vsel %vm1808_vm2, %v5639_v37, 0  ;;  %v5897_v56 = vsel %vm1808_vm2, %v5640_v36, 0  ;;  %v5641_v28 = vld [vmem:[%s11510_s5 + $0x4] sm:$0x3] }
0x197d   : > { %v8705_v4 = vpop.f32.mrb[115].mxu1  ;;  %v5552_v54 = vmul.f32 %v10576_v0, %v10779_v61  ;;  %v5943_v63 = vsel %vm1808_vm2, %v5641_v28, 0  ;;  %v5642_v6 = vld [vmem:[%s11510_s5 + $0x6] sm:$0x3]  ;;  %s11513_s5 = sshll.u32 %s10339_s1, 5 }
0x197e   : > { %s11146_s6 = scalar_lea.vmem [#allocation10], %s11513_s5  ;;  %s11514_s5 = sld [smem:[#allocation38_spill]] }
0x19cf   : > { %v5592_v59 = vpop.permute.xlu1 %5591 }
0x19d0   : > { %v5603_v9 = vadd.f32 %v5592_v59, %v5579_v49  ;;  %v5553_v59 = vmul.f32 %v10576_v0, %v10774_v23 }
0x19d2   : > { %v5643_v39 = vpack.c.bf16 %v5603_v9, %v5603_v9 }
0x19d4   : > { %5652 = vrot.lane.b32.xlu0 %v5643_v39, %s11496_s7  ;;  %v5989_v39 = vsel %vm1808_vm2, %v5642_v6, 0 }
0x19d7   : > { %v5594_v41 = vpop.permute.xlu0 %5593 }
0x19d8   : > { %v5604_v42 = vadd.f32 %v5594_v41, %v5580_v1 }
0x19da   : > { %v5644_v15 = vpack.c.bf16 %v5604_v42, %v5604_v42  ;;  %v5554_v42 = vmul.f32 %v10576_v0, %v10789_v50 }
0x19db   : > { %v5596_v38 = vpop.permute.xlu0 %5595 }
0x19dc   : > { %v5605_v48 = vadd.f32 %v5596_v38, %v5581_v43  ;;  %5701 = vrot.lane.b32.xlu1 %v5644_v15, %s11496_s7 }
0x19de   : > { %v5645_v14 = vpack.c.bf16 %v5605_v48, %v5605_v48 }
0x19df   : > { %v5598_v24 = vpop.permute.xlu1 %5597  ;;  %v5628_v26 = vpop.permute.xlu0 %5627 }
0x19e0   : > { %v5606_v51 = vadd.f32 %v5598_v24, %v5582_v45  ;;  %5750 = vrot.lane.b32.xlu0 %v5645_v14, %s11496_s7  ;;  %v5633_v58 = vadd.f32 %v5628_v26, %v5621_v55 }
0x19e2   : > { %v5646_v57 = vpack.c.bf16 %v5606_v51, %v5606_v51  ;;  %v6037_v13 = vpack.c.bf16 %v5633_v58, %v5633_v58 }
0x19e4   : > { %5799 = vrot.lane.b32.xlu1 %v5646_v57, %s11496_s7  ;;  %5563 = vrot.lane.b32.xlu0 %v5555_v44, %s11496_s7  ;;  %v6033_v44 = vld [vmem:[%s11512_s17] sm:$0x3] }
0x19e5   : > { %v6231_v57 = vsel %vm1808_vm2, %v6033_v44, 0 }
0x19e7   : > { %v5630_v62 = vpop.permute.xlu1 %5629 }
0x19e8   : > { %5565 = vrot.lane.b32.xlu1 %v5556_v27, %s11496_s7  ;;  %5567 = vrot.lane.b32.xlu0 %v5557_v29, %s11496_s7  ;;  %v5634_v2 = vadd.f32 %v5630_v62, %v5622_v11  ;;  %v6034_v29 = vld [vmem:[%s11512_s17 + $0x2] sm:$0x3] }
0x19e9   : > { %v9386_v27 = vld [vmem:[%s11476_s9] sm:$0xff]  ;;  %v6274_v11 = vsel %vm1808_vm2, %v6034_v29, 0 }
0x19ea   : > { %v6038_v10 = vpack.c.bf16 %v5634_v2, %v5634_v2  ;;  %v5607_v58 = vmul.f32 %v9386_v27, %v10781_v60 }
0x19ec   : > { %5569 = vrot.lane.b32.xlu1 %v5558_v30, %s11496_s7  ;;  %6044 = vrot.lane.b32.xlu0 %v6037_v13, %s11496_s7  ;;  %v6035_v30 = vld [vmem:[%s11512_s17 + $0x4] sm:$0x3] }
0x19ed   : > { %v6320_v60 = vsel %vm1808_vm2, %v6035_v30, 0 }
0x19f0   : > { %6136 = vrot.lane.b32.xlu1 %v6038_v10, %s11496_s7  ;;  %5613 = vrot.lane.b32.xlu0 %v5609_v3, %s11496_s7  ;;  %v6036_v3 = vld [vmem:[%s11512_s17 + $0x6] sm:$0x3]  ;;  %v5608_v10 = vmul.f32 %v9386_v27, %v10799_v52 }
0x19f1   : > { %v6363_v47 = vsel %vm1808_vm2, %v6036_v3, 0 }
0x19f4   : > { %5615 = vrot.lane.b32.xlu1 %v5610_v18, %s11496_s7  ;;  %s11511_s7 = sld [smem:[#allocation42_spill]] }
0x19fa   : > { %v6039_v41 = vld [vmem:[%s11511_s7] sm:$0x3]  ;;  %v6040_v38 = vld [vmem:[%s11511_s7 + $0x2] sm:$0x3]  ;;  %v6041_v48 = vld [vmem:[%s11511_s7 + $0x4] sm:$0x3] }
0x19fb   : > { %v6050_v43 = vsel %vm1808_vm2, %v6039_v41, 0  ;;  %v6093_v50 = vsel %vm1808_vm2, %v6040_v38, 0  ;;  %v6142_v14 = vsel %vm1808_vm2, %v6041_v48, 0  ;;  %v6042_v24 = vld [vmem:[%s11511_s7 + $0x6] sm:$0x3]  ;;  %s11518_s7 = sld [smem:[#allocation48_spill]] }
0x19fc   : > { %v6185_v51 = vsel %vm1808_vm2, %v6042_v24, 0 }
0x1a46   : > { %v5653_v19 = vpop.permute.xlu0 %5652 }
0x1a47   : > { %8709 = vmatmul.mubr.msk.bf16.vlgmr.msra.gmra.mrb[100].mxu0 %vm1804_vm3, %v5653_v19 }
0x1a48   : > { %8719 = vmatpush3.bf16.msra.mxu0 %v5756_v53  ;;  %8720 = vmatprep.mubr.msk.bf16.mxu0 %vm9611_vm1, %v9610_v5 }
0x1a49   : > { %8730 = vmatprep.subr.bf16.mxu0 %v9610_v5 }
0x1a4e   : > { %v5702_v22 = vpop.permute.xlu1 %5701 }
0x1a4f   : > { %8715 = vmatmul.mubr.msk.bf16.vlgmr.msra.gmra.mrb[116].mxu1 %vm1804_vm3, %v5702_v22 }
0x1a50   : > { %8725 = vmatpush3.bf16.msra.mxu1 %v5805_v46  ;;  %8726 = vmatprep.mubr.msk.bf16.mxu1 %vm9611_vm1, %v9610_v5 }
0x1a51   : > { %8736 = vmatprep.subr.bf16.mxu1 %v9610_v5 }
0x1a52   : > { %v5751_v7 = vpop.permute.xlu0 %5750 }
0x1a53   : > { %8721 = vmatmul.mubr.msk.bf16.vlgmr.msra.gmra.mrb[104].mxu0 %vm1804_vm3, %v5751_v7 }
0x1a54   : > { %8731 = vmatpush3.bf16.msra.mxu0 %v5851_v8  ;;  %8732 = vmatprep.mubr.msk.bf16.mxu0 %vm9611_vm1, %v9610_v5 }
0x1a55   : > { %8742 = vmatprep.subr.bf16.mxu0 %v9610_v5 }
0x1a56   : > { %v5800_v40 = vpop.permute.xlu1 %5799  ;;  %v5564_v31 = vpop.permute.xlu0 %5563 }
0x1a57   : > { %v5575_v32 = vsub.f32 %v5551_v25, %v5564_v31  ;;  %8727 = vmatmul.mubr.msk.bf16.vlgmr.msra.gmra.mrb[120].mxu1 %vm1804_vm3, %v5800_v40 }
0x1a58   : > { %8737 = vmatpush3.bf16.msra.mxu1 %v5897_v56  ;;  %8738 = vmatprep.mubr.msk.bf16.mxu1 %vm9611_vm1, %v9610_v5 }
0x1a59   : > { %v5635_v17 = vpack.c.bf16 %v5575_v32, %v5575_v32  ;;  %8748 = vmatprep.subr.bf16.mxu1 %v9610_v5 }
0x1a5a   : > { %v5566_v4 = vpop.permute.xlu1 %5565  ;;  %v5568_v34 = vpop.permute.xlu0 %5567 }
0x1a5b   : > { %v5576_v49 = vsub.f32 %v5552_v54, %v5566_v4  ;;  %8733 = vmatmul.mubr.msk.bf16.vlgmr.msra.gmra.mrb[100].mxu0 %vm1804_vm3, %v5635_v17  ;;  %v5577_v9 = vsub.f32 %v5553_v59, %v5568_v34 }
0x1a5c   : > { %8743 = vmatpush3.bf16.msra.mxu0 %v5943_v63  ;;  %8744 = vmatprep.mubr.msk.bf16.mxu0 %vm9611_vm1, %v9610_v5 }
0x1a5d   : > { %v5636_v61 = vpack.c.bf16 %v5576_v49, %v5576_v49  ;;  %8754 = vmatprep.subr.bf16.mxu0 %v9610_v5  ;;  %v5637_v23 = vpack.c.bf16 %v5577_v9, %v5577_v9 }
0x1a5e   : > { %v5570_v1 = vpop.permute.xlu1 %5569  ;;  %v6045_v45 = vpop.permute.xlu0 %6044 }
0x1a5f   : > { %8739 = vmatmul.mubr.msk.bf16.vlgmr.msra.gmra.mrb[116].mxu1 %vm1804_vm3, %v5636_v61  ;;  %v5578_v15 = vsub.f32 %v5554_v42, %v5570_v1 }
0x1a60   : > { %8749 = vmatpush3.bf16.msra.mxu1 %v5989_v39  ;;  %8750 = vmatprep.mubr.msk.bf16.mxu1 %vm9611_vm1, %v9610_v5 }
0x1a61   : > { %8760 = vmatprep.subr.bf16.mxu1 %v9610_v5  ;;  %v5638_v0 = vpack.c.bf16 %v5578_v15, %v5578_v15 }
0x1a62   : > { %v6137_v26 = vpop.permute.xlu1 %6136  ;;  %v5614_v55 = vpop.permute.xlu0 %5613 }
0x1a63   : > { %8745 = vmatmul.mubr.msk.bf16.vlgmr.msra.gmra.mrb[104].mxu0 %vm1804_vm3, %v5637_v23  ;;  %v5619_v62 = vsub.f32 %v5607_v58, %v5614_v55 }
0x1a64   : > { %8755 = vmatpush3.bf16.msra.mxu0 %v6050_v43  ;;  %8756 = vmatprep.mubr.msk.bf16.mxu0 %vm9611_vm1, %v9610_v5 }
0x1a65   : > { %8766 = vmatprep.subr.bf16.mxu0 %v9610_v5  ;;  %v6031_v13 = vpack.c.bf16 %v5619_v62, %v5619_v62 }
0x1a66   : > { %v5616_v2 = vpop.permute.xlu1 %5615 }
0x1a67   : > { %8751 = vmatmul.mubr.msk.bf16.vlgmr.msra.gmra.mrb[120].mxu1 %vm1804_vm3, %v5638_v0  ;;  %v5620_v18 = vsub.f32 %v5608_v10, %v5616_v2 }
0x1a68   : > { %8761 = vmatpush3.bf16.msra.mxu1 %v6093_v50  ;;  %8762 = vmatprep.mubr.msk.bf16.mxu1 %vm9611_vm1, %v9610_v5 }
0x1a69   : > { %8772 = vmatprep.subr.bf16.mxu1 %v9610_v5  ;;  %v6032_v53 = vpack.c.bf16 %v5620_v18, %v5620_v18 }
0x1a6b   : > { %8757 = vmatmul.mubr.msk.bf16.vlgmr.msra.gmra.mrb[108].mxu0 %vm1804_vm3, %v6045_v45 }
0x1a6c   : > { %8767 = vmatpush3.bf16.msra.mxu0 %v6142_v14  ;;  %8768 = vmatprep.mubr.msk.bf16.mxu0 %vm9611_vm1, %v9610_v5 }
0x1a6d   : > { %8778 = vmatprep.subr.bf16.mxu0 %v9610_v5 }
0x1a6f   : > { %8763 = vmatmul.mubr.msk.bf16.vlgmr.msra.gmra.mrb[124].mxu1 %vm1804_vm3, %v6045_v45 }
0x1a70   : > { %8773 = vmatpush3.bf16.msra.mxu1 %v6185_v51  ;;  %8774 = vmatprep.mubr.msk.bf16.mxu1 %vm9611_vm1, %v9610_v5 }
0x1a71   : > { %8784 = vmatprep.subr.bf16.mxu1 %v9610_v5 }
0x1a73   : > { %8769 = vmatmul.mubr.msk.bf16.vlgmr.msra.gmra.mrb[112].mxu0 %vm1804_vm3, %v6137_v26 }
0x1a74   : > { %8779 = vmatpush3.bf16.msra.mxu0 %v6231_v57  ;;  %8780 = vmatprep.mubr.msk.bf16.mxu0 %vm9611_vm1, %v9610_v5 }
0x1a75   : > { %8790 = vmatprep.subr.bf16.mxu0 %v9610_v5 }
0x1a77   : > { %8775 = vmatmul.mubr.msk.bf16.vlgmr.msra.gmra.mrb[128].mxu1 %vm1804_vm3, %v6137_v26 }
0x1a78   : > { %8785 = vmatpush3.bf16.msra.mxu1 %v6274_v11  ;;  %8786 = vmatprep.mubr.msk.bf16.mxu1 %vm9611_vm1, %v9610_v5 }
0x1a79   : > { %8796 = vmatprep.subr.bf16.mxu1 %v9610_v5 }
0x1a7b   : > { %8781 = vmatmul.mubr.msk.bf16.vlgmr.msra.gmra.mrb[108].mxu0 %vm1804_vm3, %v6031_v13 }
0x1a7c   : > { %8791 = vmatpush3.bf16.msra.mxu0 %v6320_v60  ;;  %8792 = vmatprep.mubr.msk.bf16.mxu0 %vm9611_vm1, %v9610_v5 }
0x1a7d   : > { %8802 = vmatprep.subr.bf16.mxu0 %v9610_v5 }
0x1a7f   : > { %8787 = vmatmul.mubr.msk.bf16.vlgmr.msra.gmra.mrb[124].mxu1 %vm1804_vm3, %v6031_v13 }
0x1a80   : > { %8797 = vmatpush3.bf16.msra.mxu1 %v6363_v47  ;;  %8798 = vmatprep.mubr.msk.bf16.mxu1 %vm9611_vm1, %v9610_v5 }
0x1a81   : > { %8808 = vmatprep.subr.bf16.mxu1 %v9610_v5 }
0x1a83   : > { %8793 = vmatmul.mubr.msk.bf16.vlgmr.msra.gmra.mrb[112].mxu0 %vm1804_vm3, %v6032_v53 }
0x1a84   : > { %8804 = vmatprep.mubr.msk.bf16.mxu0 %vm9611_vm1, %v9610_v5 }
0x1a87   : > { %8799 = vmatmul.mubr.msk.bf16.vlgmr.msra.gmra.mrb[128].mxu1 %vm1804_vm3, %v6032_v53 }
0x1a88   : > { %8810 = vmatprep.mubr.msk.bf16.mxu1 %vm9611_vm1, %v9610_v5 }
0x1b2e   : > { %v10949_v52 = vpop.f32.mrb[100].mxu0 }
0x1b2f   : > { %v8734_v19 = vpop.f32.mrb[101].mxu0  ;;  %v6449_v6 = vsub.f32 0.0, %v10949_v52  ;;  %v6405_v30 = vsel %vm2557_vm4, %v10949_v52, -inf }
0x1b30   : > { %v5890_v21 = vpop.f32.mrb[102].mxu0 }
0x1b31   : > { %v8735_v46 = vpop.f32.mrb[103].mxu0  ;;  %v6453_v15 = vsel %vm2557_vm4, %v6449_v6, -inf }
0x1b32   : > { %v10951_v22 = vpop.f32.mrb[116].mxu1 }
0x1b33   : > { %v8740_v37 = vpop.f32.mrb[117].mxu1  ;;  %v6450_v41 = vsub.f32 0.0, %v10951_v22  ;;  %v6408_v60 = vsel %vm2557_vm4, %v10951_v22, -inf }
0x1b34   : > { %v5936_v8 = vpop.f32.mrb[118].mxu1 }
0x1b35   : > { %v8741_v7 = vpop.f32.mrb[119].mxu1  ;;  %v6456_v45 = vsel %vm2557_vm4, %v6450_v41, -inf }
0x1b36   : > { %v10953_v36 = vpop.f32.mrb[104].mxu0 }
0x1b37   : > { %v8746_v25 = vpop.f32.mrb[105].mxu0  ;;  %v6451_v48 = vsub.f32 0.0, %v10953_v36  ;;  %v6411_v3 = vsel %vm2557_vm4, %v10953_v36, -inf }
0x1b38   : > { %v5982_v56 = vpop.f32.mrb[106].mxu0 }
0x1b39   : > { %v8747_v40 = vpop.f32.mrb[107].mxu0  ;;  %v6459_v27 = vsel %vm2557_vm4, %v6451_v48, -inf }
0x1b3a   : > { %v10955_v31 = vpop.f32.mrb[120].mxu1 }
0x1b3b   : > { %v8752_v28 = vpop.f32.mrb[121].mxu1  ;;  %v6452_v55 = vsub.f32 0.0, %v10955_v31  ;;  %v6414_v18 = vsel %vm2557_vm4, %v10955_v31, -inf }
0x1b3c   : > { %v6028_v32 = vpop.f32.mrb[122].mxu1 }
0x1b3d   : > { %v8753_v17 = vpop.f32.mrb[123].mxu1  ;;  %v6462_v62 = vsel %vm2557_vm4, %v6452_v55, -inf }
0x1b4e   : > { %v10957_v54 = vpop.f32.mrb[108].mxu0 }
0x1b4f   : > { %v6541_v63 = vsub.f32 0.0, %v10957_v54  ;;  %v8782_v4 = vpop.f32.mrb[109].mxu0  ;;  %v6497_v11 = vsel %vm2557_vm4, %v10957_v54, -inf }
0x1b50   : > { %v6270_v34 = vpop.f32.mrb[110].mxu0 }
0x1b51   : > { %v8783_v49 = vpop.f32.mrb[111].mxu0  ;;  %v6545_v59 = vsel %vm2557_vm4, %v6541_v63, -inf }
0x1b52   : > { %v10962_v61 = vpop.f32.mrb[124].mxu1  ;;  %6546 = vmax.xlane.f32.xlu0 %v6545_v59 }
0x1b53   : > { %v6542_v9 = vsub.f32 0.0, %v10962_v61  ;;  %v8788_v39 = vpop.f32.mrb[125].mxu1  ;;  %v6500_v13 = vsel %vm2557_vm4, %v10962_v61, -inf }
0x1b54   : > { %v6313_v1 = vpop.f32.mrb[126].mxu1 }
0x1b55   : > { %v8789_v42 = vpop.f32.mrb[127].mxu1  ;;  %v6548_v23 = vsel %vm2557_vm4, %v6542_v9, -inf }
0x1b56   : > { %6549 = vmax.xlane.f32.xlu1 %v6548_v23  ;;  %6454 = vmax.xlane.f32.xlu0 %v6453_v15  ;;  %v10968_v43 = vpop.f32.mrb[112].mxu0 }
0x1b57   : > { %v6543_v38 = vsub.f32 0.0, %v10968_v43  ;;  %v8794_v0 = vpop.f32.mrb[113].mxu0  ;;  %v6503_v2 = vsel %vm2557_vm4, %v10968_v43, -inf }
0x1b58   : > { %v6359_v50 = vpop.f32.mrb[114].mxu0 }
0x1b59   : > { %v8795_v14 = vpop.f32.mrb[115].mxu0  ;;  %v6551_v24 = vsel %vm2557_vm4, %v6543_v38, -inf }
0x1b5a   : > { %6457 = vmax.xlane.f32.xlu1 %v6456_v45  ;;  %v10974_v51 = vpop.f32.mrb[128].mxu1  ;;  %6552 = vmax.xlane.f32.xlu0 %v6551_v24 }
0x1b5b   : > { %v6544_v44 = vsub.f32 0.0, %v10974_v51  ;;  %v8800_v57 = vpop.f32.mrb[129].mxu1  ;;  %v6506_v10 = vsel %vm2557_vm4, %v10974_v51, -inf }
0x1b5c   : > { %v6402_v26 = vpop.f32.mrb[130].mxu1 }
0x1b5d   : > { %v8801_v29 = vpop.f32.mrb[131].mxu1  ;;  %v6554_v58 = vsel %vm2557_vm4, %v6544_v44, -inf }
0x1b5e   : > { %6460 = vmax.xlane.f32.xlu1 %v6459_v27  ;;  %6555 = vmax.xlane.f32.xlu0 %v6554_v58 }
0x1b62   : > { %6463 = vmax.xlane.f32.xlu1 %v6462_v62  ;;  %6498 = vmax.xlane.f32.xlu0 %v6497_v11 }
0x1b66   : > { %6406 = vmax.xlane.f32.xlu1 %v6405_v30  ;;  %6501 = vmax.xlane.f32.xlu0 %v6500_v13 }
0x1b6a   : > { %6409 = vmax.xlane.f32.xlu1 %v6408_v60  ;;  %6504 = vmax.xlane.f32.xlu0 %v6503_v2 }
0x1b6e   : > { %6412 = vmax.xlane.f32.xlu1 %v6411_v3  ;;  %6507 = vmax.xlane.f32.xlu0 %v6506_v10 }
0x1b72   : > { %6415 = vmax.xlane.f32.xlu0 %v6414_v18 }
0x1bdf   : > { %v6547_v47 = vpop.xlane.xlu0 %6546 }
0x1be0   : > { %v6557_v53 = vsub.f32 %v6541_v63, %v6547_v47 }
0x1be2   : > { %v6561_v19 = vmul.f32 1.442695, %v6557_v53 }
0x1be3   : > { %v6550_v21 = vpop.xlane.xlu1 %6549  ;;  %v6455_v46 = vpop.xlane.xlu0 %6454 }
0x1be4   : > { %9303 = vpow2.f32 %v6561_v19  ;;  %v6558_v37 = vsub.f32 %v6542_v9, %v6550_v21  ;;  %v6465_v8 = vsub.f32 %v6449_v6, %v6455_v46 }
0x1be6   : > { %v6563_v7 = vmul.f32 1.442695, %v6558_v37  ;;  %v6469_v25 = vmul.f32 1.442695, %v6465_v8 }
0x1be7   : > { %v6458_v56 = vpop.xlane.xlu1 %6457  ;;  %v6553_v40 = vpop.xlane.xlu0 %6552 }
0x1be8   : > { %9305 = vpow2.f32 %v6563_v7  ;;  %v6466_v28 = vsub.f32 %v6450_v41, %v6458_v56  ;;  %v6559_v32 = vsub.f32 %v6543_v38, %v6553_v40 }
0x1be9   : > { %9307 = vpow2.f32 %v6469_v25 }
0x1bea   : > { %v6471_v17 = vmul.f32 1.442695, %v6466_v28  ;;  %v6565_v4 = vmul.f32 1.442695, %v6559_v32 }
0x1beb   : > { %v6461_v34 = vpop.xlane.xlu1 %6460  ;;  %v6556_v49 = vpop.xlane.xlu0 %6555 }
0x1bec   : > { %9309 = vpow2.f32 %v6471_v17  ;;  %v6467_v63 = vsub.f32 %v6451_v48, %v6461_v34  ;;  %v6560_v59 = vsub.f32 %v6544_v44, %v6556_v49 }
0x1bed   : > { %9311 = vpow2.f32 %v6565_v4 }
0x1bee   : > { %v10997_v39 = vpop.eup %9303  ;;  %v6473_v9 = vmul.f32 1.442695, %v6467_v63  ;;  %v6567_v6 = vmul.f32 1.442695, %v6560_v59 }
0x1bef   : > { %v6464_v1 = vpop.xlane.xlu1 %6463  ;;  %v6499_v42 = vpop.xlane.xlu0 %6498  ;;  %v6569_v23 = vsel %vm2557_vm4, %v10997_v39, 0.0 }
0x1bf0   : > { %9313 = vpow2.f32 %v6473_v9  ;;  %v6468_v41 = vsub.f32 %v6452_v55, %v6464_v1  ;;  %v6509_v15 = vsub.f32 %v10957_v54, %v6499_v42  ;;  %6570 = vadd.xlane.f32.xlu1 %v6569_v23 }
0x1bf1   : > { %9315 = vpow2.f32 %v6567_v6 }
0x1bf2   : > { %v11002_v38 = vpop.eup %9305  ;;  %v6475_v0 = vmul.f32 1.442695, %v6468_v41  ;;  %v6513_v50 = vmul.f32 1.442695, %v6509_v15 }
0x1bf3   : > { %v11004_v48 = vpop.eup %9307  ;;  %v6407_v14 = vpop.xlane.xlu1 %6406  ;;  %v6572_v24 = vsel %vm2557_vm4, %v11002_v38, 0.0 }
0x1bf4   : > { %v6502_v45 = vpop.xlane.xlu0 %6501  ;;  %9317 = vpow2.f32 %v6475_v0  ;;  %v6417_v44 = vsub.f32 %v10949_v52, %v6407_v14  ;;  %v6477_v54 = vsel %vm2557_vm4, %v11004_v48, 0.0  ;;  %6573 = vadd.xlane.f32.xlu0 %v6572_v24 }
0x1bf5   : > { %v6510_v57 = vsub.f32 %v10962_v61, %v6502_v45  ;;  %9319 = vpow2.f32 %v6513_v50  ;;  %6478 = vadd.xlane.f32.xlu1 %v6477_v54 }
0x1bf6   : > { %v11012_v26 = vpop.eup %9309  ;;  %v6421_v55 = vmul.f32 1.442695, %v6417_v44 }
0x1bf7   : > { %v6515_v29 = vmul.f32 1.442695, %v6510_v57  ;;  %v11014_v27 = vpop.eup %9311  ;;  %v6410_v58 = vpop.xlane.xlu1 %6409  ;;  %v6480_v11 = vsel %vm2557_vm4, %v11012_v26, 0.0 }
0x1bf8   : > { %v6505_v62 = vpop.xlane.xlu0 %6504  ;;  %9321 = vpow2.f32 %v6421_v55  ;;  %v6418_v52 = vsub.f32 %v10951_v22, %v6410_v58  ;;  %v6575_v30 = vsel %vm2557_vm4, %v11014_v27, 0.0 }
0x1bf9   : > { %v6511_v61 = vsub.f32 %v10968_v43, %v6505_v62  ;;  %9323 = vpow2.f32 %v6515_v29  ;;  %6481 = vadd.xlane.f32.xlu1 %v6480_v11  ;;  %6576 = vadd.xlane.f32.xlu0 %v6575_v30 }
0x1bfa   : > { %v11022_v13 = vpop.eup %9313  ;;  %v6423_v60 = vmul.f32 1.442695, %v6418_v52 }
0x1bfb   : > { %v6517_v2 = vmul.f32 1.442695, %v6511_v61  ;;  %v11024_v3 = vpop.eup %9315  ;;  %v6413_v10 = vpop.xlane.xlu1 %6412  ;;  %v6483_v47 = vsel %vm2557_vm4, %v11022_v13, 0.0 }
0x1bfc   : > { %v6508_v18 = vpop.xlane.xlu0 %6507  ;;  %9325 = vpow2.f32 %v6423_v60  ;;  %v6419_v22 = vsub.f32 %v10953_v36, %v6413_v10  ;;  %v6578_v53 = vsel %vm2557_vm4, %v11024_v3, 0.0 }
0x1bfd   : > { %v6512_v43 = vsub.f32 %v10974_v51, %v6508_v18  ;;  %9327 = vpow2.f32 %v6517_v2  ;;  %6484 = vadd.xlane.f32.xlu1 %v6483_v47  ;;  %6579 = vadd.xlane.f32.xlu0 %v6578_v53 }
0x1bfe   : > { %v11032_v19 = vpop.eup %9317  ;;  %v6425_v21 = vmul.f32 1.442695, %v6419_v22 }
0x1bff   : > { %v6519_v46 = vmul.f32 1.442695, %v6512_v43  ;;  %v11034_v37 = vpop.eup %9319  ;;  %v6486_v7 = vsel %vm2557_vm4, %v11032_v19, 0.0 }
0x1c00   : > { %v6416_v8 = vpop.xlane.xlu0 %6415  ;;  %9329 = vpow2.f32 %v6425_v21  ;;  %v6521_v51 = vsel %vm2557_vm4, %v11034_v37, 0.0 }
0x1c01   : > { %v6420_v36 = vsub.f32 %v10955_v31, %v6416_v8  ;;  %9331 = vpow2.f32 %v6519_v46  ;;  %6487 = vadd.xlane.f32.xlu1 %v6486_v7  ;;  %6522 = vadd.xlane.f32.xlu0 %v6521_v51 }
0x1c02   : > { %v11041_v25 = vpop.eup %9321 }
0x1c03   : > { %v6427_v56 = vmul.f32 1.442695, %v6420_v36  ;;  %v11043_v40 = vpop.eup %9323  ;;  %v6429_v28 = vsel %vm2557_vm4, %v11041_v25, 0.0 }
0x1c04   : > { %v6524_v32 = vsel %vm2557_vm4, %v11043_v40, 0.0 }
0x1c05   : > { %9333 = vpow2.f32 %v6427_v56  ;;  %6430 = vadd.xlane.f32.xlu1 %v6429_v28  ;;  %6525 = vadd.xlane.f32.xlu0 %v6524_v32 }
0x1c06   : > { %v11049_v31 = vpop.eup %9325 }
0x1c07   : > { %v11051_v17 = vpop.eup %9327  ;;  %v6432_v4 = vsel %vm2557_vm4, %v11049_v31, 0.0 }
0x1c08   : > { %v6527_v34 = vsel %vm2557_vm4, %v11051_v17, 0.0 }
0x1c09   : > { %6433 = vadd.xlane.f32.xlu1 %v6432_v4  ;;  %6528 = vadd.xlane.f32.xlu0 %v6527_v34 }
0x1c0a   : > { %v11057_v49 = vpop.eup %9329 }
0x1c0b   : > { %v11059_v63 = vpop.eup %9331  ;;  %v6435_v59 = vsel %vm2557_vm4, %v11057_v49, 0.0 }
0x1c0c   : > { %v6530_v9 = vsel %vm2557_vm4, %v11059_v63, 0.0 }
0x1c0d   : > { %6436 = vadd.xlane.f32.xlu1 %v6435_v59  ;;  %6531 = vadd.xlane.f32.xlu0 %v6530_v9 }
0x1c0f   : > { %v11065_v6 = vpop.eup %9333 }
0x1c10   : > { %v6438_v1 = vsel %vm2557_vm4, %v11065_v6, 0.0 }
0x1c11   : > { %6439 = vadd.xlane.f32.xlu0 %v6438_v1 }
0x1c7d   : > { %v6571_v42 = vpop.xlane.xlu1 %6570 }
0x1c7e   : > { %9335 = vrcp.f32 %v6571_v42 }
0x1c81   : > { %v6574_v23 = vpop.xlane.xlu0 %6573 }
0x1c82   : > { %v6479_v41 = vpop.xlane.xlu1 %6478  ;;  %9337 = vrcp.f32 %v6574_v23 }
0x1c83   : > { %9339 = vrcp.f32 %v6479_v41 }
0x1c86   : > { %v6482_v15 = vpop.xlane.xlu1 %6481  ;;  %v6577_v0 = vpop.xlane.xlu0 %6576 }
0x1c87   : > { %9341 = vrcp.f32 %v6482_v15 }
0x1c88   : > { %v9336_v50 = vpop.eup %9335  ;;  %9343 = vrcp.f32 %v6577_v0 }
0x1c89   : > { %v6582_v14 = vmul.f32 %v9336_v50, %v10997_v39 }
0x1c8a   : > { %v6485_v45 = vpop.xlane.xlu1 %6484  ;;  %v6580_v24 = vpop.xlane.xlu0 %6579 }
0x1c8b   : > { %9345 = vrcp.f32 %v6485_v45  ;;  %v6601_v44 = vpack.c.bf16 %v6582_v14, %v6582_v14 }
0x1c8c   : > { %v9338_v57 = vpop.eup %9337  ;;  %9347 = vrcp.f32 %v6580_v24 }
0x1c8d   : > { %v9340_v54 = vpop.eup %9339  ;;  %v6609_v55 = vsel %vm2557_vm4, %v6601_v44, 0  ;;  %v6584_v29 = vmul.f32 %v9338_v57, %v11002_v38 }
0x1c8e   : > { %v6488_v58 = vpop.xlane.xlu1 %6487  ;;  %v6523_v62 = vpop.xlane.xlu0 %6522  ;;  %8803 = vmatpush3.bf16.xpose.msra.mxu0 %v6609_v55  ;;  %v6490_v11 = vmul.f32 %v9340_v54, %v11004_v48 }
0x1c8f   : > { %9349 = vrcp.f32 %v6488_v58  ;;  %v6602_v52 = vpack.c.bf16 %v6584_v29, %v6584_v29  ;;  %8814 = vmatprep.subr.bf16.mxu0 %v9610_v5  ;;  %v7005_v29 = vpack.c.bf16 %v10791_v12, %v10791_v12 }
0x1c90   : > { %9351 = vrcp.f32 %v6523_v62  ;;  %v6597_v38 = vpack.c.bf16 %v6490_v11, %v6490_v11 }
0x1c91   : > { %v9342_v39 = vpop.eup %9341  ;;  %v6655_v61 = vsel %vm2557_vm4, %v6602_v52, 0 }
0x1c92   : > { %v9344_v30 = vpop.eup %9343  ;;  %v6431_v60 = vpop.xlane.xlu1 %6430  ;;  %8809 = vmatpush3.bf16.xpose.msra.mxu1 %v6655_v61  ;;  %v6492_v10 = vmul.f32 %v9342_v39, %v11012_v26 }
0x1c93   : > { %v6526_v2 = vpop.xlane.xlu0 %6525  ;;  %9353 = vrcp.f32 %v6431_v60  ;;  %v6586_v18 = vmul.f32 %v9344_v30, %v11014_v27  ;;  %8820 = vmatprep.subr.bf16.mxu1 %v9610_v5 }
0x1c94   : > { %9355 = vrcp.f32 %v6526_v2  ;;  %v6598_v21 = vpack.c.bf16 %v6492_v10, %v6492_v10 }
0x1c95   : > { %v9346_v48 = vpop.eup %9345  ;;  %8805 = vmatmul.mubr.msk.bf16.vlgmr.msra.gmra.mrb[116].mxu0 %vm2557_vm4, %v6597_v38  ;;  %v6603_v47 = vpack.c.bf16 %v6586_v18, %v6586_v18 }
0x1c96   : > { %v9348_v22 = vpop.eup %9347  ;;  %v6434_v43 = vpop.xlane.xlu1 %6433  ;;  %8816 = vmatprep.mubr.msk.bf16.mxu0 %vm9611_vm1, %v9610_v5  ;;  %v6494_v8 = vmul.f32 %v9346_v48, %v11022_v13 }
0x1c97   : > { %v6529_v53 = vpop.xlane.xlu0 %6528  ;;  %9357 = vrcp.f32 %v6434_v43  ;;  %v6701_v26 = vsel %vm2557_vm4, %v6603_v47, 0  ;;  %v6588_v46 = vmul.f32 %v9348_v22, %v11024_v3 }
0x1c98   : > { %9359 = vrcp.f32 %v6529_v53  ;;  %8815 = vmatpush3.bf16.xpose.msra.mxu0 %v6701_v26  ;;  %v6599_v4 = vpack.c.bf16 %v6494_v8, %v6494_v8 }
0x1c99   : > { %v9350_v27 = vpop.eup %9349  ;;  %8811 = vmatmul.mubr.msk.bf16.vlgmr.msra.gmra.mrb[132].mxu1 %vm2557_vm4, %v6598_v21  ;;  %v6604_v7 = vpack.c.bf16 %v6588_v46, %v6588_v46  ;;  %8826 = vmatprep.subr.bf16.mxu0 %v9610_v5 }
0x1c9a   : > { %v9352_v36 = vpop.eup %9351  ;;  %v6437_v51 = vpop.xlane.xlu1 %6436  ;;  %8822 = vmatprep.mubr.msk.bf16.mxu1 %vm9611_vm1, %v9610_v5  ;;  %v6496_v13 = vmul.f32 %v9350_v27, %v11032_v19 }
0x1c9b   : > { %v6532_v56 = vpop.xlane.xlu0 %6531  ;;  %9361 = vrcp.f32 %v6437_v51  ;;  %v6747_v28 = vsel %vm2557_vm4, %v6604_v7, 0  ;;  %v6534_v3 = vmul.f32 %v9352_v36, %v11034_v37 }
0x1c9c   : > { %9363 = vrcp.f32 %v6532_v56  ;;  %8821 = vmatpush3.bf16.xpose.msra.mxu1 %v6747_v28  ;;  %v6600_v23 = vpack.c.bf16 %v6496_v13, %v6496_v13  ;;  %v7006_v13 = vpack.c.bf16 %v10807_v33, %v10807_v33 }
0x1c9d   : > { %v9354_v32 = vpop.eup %9353  ;;  %v6593_v34 = vpack.c.bf16 %v6534_v3, %v6534_v3  ;;  %8832 = vmatprep.subr.bf16.mxu1 %v9610_v5 }
0x1c9e   : > { %v9356_v59 = vpop.eup %9355  ;;  %v6442_v19 = vmul.f32 %v9354_v32, %v11041_v25 }
0x1c9f   : > { %v6440_v9 = vpop.xlane.xlu0 %6439  ;;  %8817 = vmatmul.mubr.msk.bf16.vlgmr.msra.gmra.mrb[120].mxu0 %vm2557_vm4, %v6599_v4  ;;  %v6793_v1 = vsel %vm2557_vm4, %v6593_v34, 0  ;;  %v6536_v42 = vmul.f32 %v9356_v59, %v11043_v40 }
0x1ca0   : > { %9365 = vrcp.f32 %v6440_v9  ;;  %8827 = vmatpush3.bf16.xpose.msra.mxu0 %v6793_v1  ;;  %8828 = vmatprep.mubr.msk.bf16.mxu0 %vm9611_vm1, %v9610_v5  ;;  %v6589_v45 = vpack.c.bf16 %v6442_v19, %v6442_v19  ;;  %v7100_v9 = vsel %vm3165_vm5, %v7006_v13, 0 }
0x1ca1   : > { %v9358_v37 = vpop.eup %9357  ;;  %v6594_v41 = vpack.c.bf16 %v6536_v42, %v6536_v42  ;;  %8838 = vmatprep.subr.bf16.mxu0 %v9610_v5 }
0x1ca2   : > { %v9360_v15 = vpop.eup %9359  ;;  %v6444_v14 = vmul.f32 %v9358_v37, %v11049_v31 }
0x1ca3   : > { %8823 = vmatmul.mubr.msk.bf16.vlgmr.msra.gmra.mrb[136].mxu1 %vm2557_vm4, %v6600_v23  ;;  %v6839_v0 = vsel %vm2557_vm4, %v6594_v41, 0  ;;  %v6538_v50 = vmul.f32 %v9360_v15, %v11051_v17 }
0x1ca4   : > { %8833 = vmatpush3.bf16.xpose.msra.mxu1 %v6839_v0  ;;  %8834 = vmatprep.mubr.msk.bf16.mxu1 %vm9611_vm1, %v9610_v5  ;;  %v6590_v54 = vpack.c.bf16 %v6444_v14, %v6444_v14 }
0x1ca5   : > { %v9362_v40 = vpop.eup %9361  ;;  %v6595_v25 = vpack.c.bf16 %v6538_v50, %v6538_v50  ;;  %8844 = vmatprep.subr.bf16.mxu1 %v9610_v5  ;;  %v9185_v50 = vld [vmem:[%s11514_s5] sm:$0xff]  }
0x1ca6   : > { %v9364_v24 = vpop.eup %9363  ;;  %v6446_v17 = vmul.f32 %v9362_v40, %v11057_v49  ;;  %v7011_v49 = vsel %vm3165_vm5, %v7005_v29, 0 }
0x1ca7   : > { %8829 = vmatmul.mubr.msk.bf16.vlgmr.msra.gmra.mrb[116].mxu0 %vm2557_vm4, %v6589_v45  ;;  %v6885_v44 = vsel %vm2557_vm4, %v6595_v25, 0  ;;  %v6540_v57 = vmul.f32 %v9364_v24, %v11059_v63  ;;  %v9186_v45 = vld [vmem:[%s11514_s5 + $0x8] sm:$0xff]   ;;  %s11515_s5 = sld [smem:[#allocation44_spill]] }
0x1ca8   : > { %8839 = vmatpush3.bf16.xpose.msra.mxu0 %v6885_v44  ;;  %8840 = vmatprep.mubr.msk.bf16.mxu0 %vm9611_vm1, %v9610_v5  ;;  %v6591_v62 = vpack.c.bf16 %v6446_v17, %v6446_v17 }
0x1ca9   : > { %v6596_v55 = vpack.c.bf16 %v6540_v57, %v6540_v57  ;;  %8850 = vmatprep.subr.bf16.mxu0 %v9610_v5 }
0x1caa   : > { %v9366_v31 = vpop.eup %9365 }
0x1cab   : > { %8835 = vmatmul.mubr.msk.bf16.vlgmr.msra.gmra.mrb[132].mxu1 %vm2557_vm4, %v6590_v54  ;;  %v6931_v58 = vsel %vm2557_vm4, %v6596_v55, 0  ;;  %v6448_v63 = vmul.f32 %v9366_v31, %v11065_v6 }
0x1cac   : > { %8845 = vmatpush3.bf16.xpose.msra.mxu1 %v6931_v58  ;;  %8846 = vmatprep.mubr.msk.bf16.mxu1 %vm9611_vm1, %v9610_v5 }
0x1cad   : > { %8856 = vmatprep.subr.bf16.mxu1 %v9610_v5  ;;  %v6592_v12 = vpack.c.bf16 %v6448_v63, %v6448_v63 }
0x1caf   : > { %8841 = vmatmul.mubr.msk.bf16.vlgmr.msra.gmra.mrb[120].mxu0 %vm2557_vm4, %v6591_v62 }
0x1cb0   : > { %8851 = vmatpush3.bf16.msra.mxu0 %v7011_v49  ;;  %8852 = vmatprep.mubr.msk.bf16.mxu0 %vm9611_vm1, %v9610_v5 }
0x1cb1   : > { %8862 = vmatprep.subr.bf16.mxu0 %v9610_v5 }
0x1cb3   : > { %8847 = vmatmul.mubr.msk.bf16.vlgmr.msra.gmra.mrb[136].mxu1 %vm2557_vm4, %v6592_v12 }
0x1cb4   : > { %8857 = vmatpush3.bf16.msra.mxu1 %v7011_v49  ;;  %8858 = vmatprep.mubr.msk.bf16.mxu1 %vm9611_vm1, %v9610_v5 }
0x1cb5   : > { %8868 = vmatprep.subr.bf16.mxu1 %v9610_v5 }
0x1d7a   : > { %v6829_v6 = vpop.f32.mrb[116].mxu0 }
0x1d7b   : > { %v6973_v11 = vsel %vm10322_vm6, %v6829_v6, 0.0  ;;  %v8830_v52 = vpop.f32.mrb[117].mxu0 }
0x1d7c   : > { %v6977_v39 = vsel %vm2557_vm4, %v6973_v11, 0.0  ;;  %v6832_v61 = vpop.f32.mrb[118].mxu0 }
0x1d7d   : > { %6978 = vadd.xlane.f32.xlu1 %v6977_v39  ;;  %v8831_v30 = vpop.f32.mrb[119].mxu0 }
0x1d7e   : > { %v6875_v60 = vpop.f32.mrb[132].mxu1 }
0x1d7f   : > { %v6974_v2 = vsel %vm10322_vm6, %v6875_v60, 0.0  ;;  %v8836_v10 = vpop.f32.mrb[133].mxu1 }
0x1d80   : > { %v6980_v38 = vsel %vm2557_vm4, %v6974_v2, 0.0  ;;  %v6878_v18 = vpop.f32.mrb[134].mxu1 }
0x1d81   : > { %6981 = vadd.xlane.f32.xlu0 %v6980_v38  ;;  %v8837_v48 = vpop.f32.mrb[135].mxu1 }
0x1d82   : > { %v6921_v47 = vpop.f32.mrb[120].mxu0 }
0x1d83   : > { %v6975_v22 = vsel %vm10322_vm6, %v6921_v47, 0.0  ;;  %v8842_v43 = vpop.f32.mrb[121].mxu0 }
0x1d84   : > { %v6983_v53 = vsel %vm2557_vm4, %v6975_v22, 0.0  ;;  %v6924_v26 = vpop.f32.mrb[122].mxu0 }
0x1d85   : > { %6984 = vadd.xlane.f32.xlu1 %v6983_v53  ;;  %v8843_v21 = vpop.f32.mrb[123].mxu0 }
0x1d86   : > { %v6967_v46 = vpop.f32.mrb[136].mxu1 }
0x1d87   : > { %v6976_v27 = vsel %vm10322_vm6, %v6967_v46, 0.0  ;;  %v8848_v8 = vpop.f32.mrb[137].mxu1 }
0x1d88   : > { %v6986_v7 = vsel %vm2557_vm4, %v6976_v27, 0.0  ;;  %v6970_v36 = vpop.f32.mrb[138].mxu1 }
0x1d89   : > { %6987 = vadd.xlane.f32.xlu0 %v6986_v7  ;;  %v8849_v51 = vpop.f32.mrb[139].mxu1 }
0x1e0a   : > { %v6979_v56 = vpop.xlane.xlu1 %6978 }
0x1e0b   : > { %9367 = vrcp.f32 %v6979_v56 }
0x1e0e   : > { %v6982_v28 = vpop.xlane.xlu0 %6981 }
0x1e0f   : > { %9369 = vrcp.f32 %v6982_v28 }
0x1e12   : > { %v6985_v3 = vpop.xlane.xlu1 %6984 }
0x1e13   : > { %9371 = vrcp.f32 %v6985_v3 }
0x1e15   : > { %v9368_v32 = vpop.eup %9367 }
0x1e16   : > { %v6990_v4 = vmul.f32 %v9368_v32, %v6973_v11  ;;  %v6988_v35 = vpop.xlane.xlu0 %6987 }
0x1e17   : > { %9373 = vrcp.f32 %v6988_v35 }
0x1e18   : > { %v7001_v34 = vpack.c.bf16 %v6990_v4, %v6990_v4  ;;  %6997 = vst.msk [vmem:[%s11146_s6] sm:$0xff] %vm2557_vm4, %v6990_v4 }
0x1e19   : > { %v9370_v59 = vpop.eup %9369 }
0x1e1a   : > { %v6992_v1 = vmul.f32 %v9370_v59, %v6974_v2  ;;  %8853 = vmatmul.mubr.msk.bf16.vlgmr.msra.gmra.mrb[124].mxu0 %vm2557_vm4, %v7001_v34 }
0x1e1b   : > { %8863 = vmatpush3.bf16.msra.mxu0 %v7100_v9  ;;  %8864 = vmatprep.mubr.msk.bf16.mxu0 %vm9611_vm1, %v9610_v5 }
0x1e1c   : > { %v7002_v33 = vpack.c.bf16 %v6992_v1, %v6992_v1  ;;  %8874 = vmatprep.subr.bf16.mxu0 %v9610_v5  ;;  %6998 = vst.msk [vmem:[%s11146_s6 + $0x8] sm:$0xff] %vm2557_vm4, %v6992_v1  ;;  %v9190_v1 = vld [vmem:[%s11518_s7 + $0x8] sm:$0xff]  }
0x1e1d   : > { %v9372_v42 = vpop.eup %9371 }
0x1e1e   : > { %v6994_v37 = vmul.f32 %v9372_v42, %v6975_v22  ;;  %8859 = vmatmul.mubr.msk.bf16.vlgmr.msra.gmra.mrb[140].mxu1 %vm2557_vm4, %v7002_v33  ;;  %v7262_v22 = vld [vmem:[%s11515_s5] sm:$0x1]  ;;  %v9191_v33 = vld [vmem:[%s11518_s7 + $0x10] sm:$0xff]   ;;  %v9192_v42 = vld [vmem:[%s11518_s7 + $0x18] sm:$0xff]   ;;  %s11217_s5 = sshll.u32 %s9850_s0, 7 }
0x1e1f   : > { %8869 = vmatpush3.bf16.msra.mxu1 %v7100_v9  ;;  %8870 = vmatprep.mubr.msk.bf16.mxu1 %vm9611_vm1, %v9610_v5  ;;  %v7271_v43 = vadd.f32 1.0, %v7262_v22  ;;  %v9189_v9 = vld [vmem:[%s11518_s7] sm:$0xff]   ;;  %s11519_s7 = scalar_lea.vmem [#allocation5], %s10420_s3 }
0x1e20   : > { %v7003_v19 = vpack.c.bf16 %v6994_v37, %v6994_v37  ;;  %8882 = vmatprep.subr.bf16.mxu1 %v9610_v5  ;;  %6999 = vst.msk [vmem:[%s11146_s6 + $0x10] sm:$0xff] %vm2557_vm4, %v6994_v37  ;;  %s7513_s9 = sshll.u32 %s11519_s7, 4  ;;  %s11225_s9 = int_to_ptr.vmem [resolvable:$true] %s7513_s9 }
0x1e21   : > { %v9374_v23 = vpop.eup %9373  ;;  %v7276_v53 = vrot.slane %v7271_v43, %v9910_v16  ;;  %s9387_s17 = scalar_lea.vmem %s11225_s9, 128  ;;  %p9394_p0 = scmp.lt.s32.totalorder %s11225_s9, %s9392_s21 }
0x1e22   : > { %v6996_v41 = vmul.f32 %v9374_v23, %v6976_v27  ;;  %8865 = vmatmul.mubr.msk.bf16.vlgmr.msra.gmra.mrb[128].mxu0 %vm2557_vm4, %v7003_v19  ;;  %p9388_p11 = scmp.ne.s32.totalorder %s11225_s9, %s9387_s17  ;;  %p9395_p1 = scmp.lt.s32.totalorder %s9393_s24, %s9387_s17 }
0x1e23   : > { %8878 = vmatprep.mubr.msk.bf16.mxu0 %vm9611_vm1, %v9610_v5  ;;  %8875 = vmatpush3.bf16.msra.mxu0 %v9185_v50 }
0x1e24   : > { %v7004_v15 = vpack.c.bf16 %v6996_v41, %v6996_v41  ;;  %7000 = vst.msk [vmem:[%s11146_s6 + $0x18] sm:$0xff] %vm2557_vm4, %v6996_v41  ;;  %8876 = vmatprep.subr.bf16.mxu0 %v9610_v5  ;;  %p9389_p12 = pnand %p9388_p11, %p9869_p5  ;;  %p9396_p2 = por %p9395_p1, %p9394_p0 }
0x1e26   : > { %8871 = vmatmul.mubr.msk.bf16.vlgmr.msra.gmra.mrb[144].mxu1 %vm2557_vm4, %v7004_v15  ;;  %p9390_p13 = pneg %p9389_p12 }
0x1e27   : > { %8886 = vmatprep.mubr.msk.bf16.mxu1 %vm9611_vm1, %v9610_v5  ;;  %8877 = vmatpush3.bf16.msra.mxu0 %v9186_v45 }
0x1e28   : > { %8890 = vmatprep.subr.bf16.mxu0 %v9610_v5  ;;  %p9397_p3 = pnand %p9396_p2, %p9390_p13 }
0x1eed   : > { %v7047_v0 = vpop.f32.mrb[124].mxu0 }
0x1eee   : > { %7185 = vst.msk [vmem:[#allocation2] sm:$0xff] %vm2557_vm4, %v7047_v0  ;;  %v8854_v40 = vpop.f32.mrb[125].mxu0 }
0x1eef   : > { %v7050_v14 = vpop.f32.mrb[126].mxu0 }
0x1ef0   : > { %v8855_v25 = vpop.f32.mrb[127].mxu0 }
0x1ef1   : > { %v7090_v24 = vpop.f32.mrb[140].mxu1 }
0x1ef2   : > { %v8860_v44 = vpop.f32.mrb[141].mxu1  ;;  %7187 = vrot.lane.b32.xlu1 %v7090_v24, %s11498_s8 }
0x1ef3   : > { %v7093_v57 = vpop.f32.mrb[142].mxu1 }
0x1ef4   : > { %v8861_v17 = vpop.f32.mrb[143].mxu1 }
0x1ef5   : > { %v7136_v54 = vpop.f32.mrb[128].mxu0 }
0x1ef6   : > { %7192 = vrot.lane.b32.xlu0 %v7136_v54, %s11499_s10  ;;  %v8866_v55 = vpop.f32.mrb[129].mxu0  ;;  %s11517_s10 = sld [smem:[#allocation45_spill]] }
0x1ef7   : > { %v7139_v31 = vpop.f32.mrb[130].mxu0 }
0x1ef8   : > { %v8867_v29 = vpop.f32.mrb[131].mxu0 }
0x1ef9   : > { %v7179_v58 = vpop.f32.mrb[144].mxu1 }
0x1efa   : > { %v8872_v63 = vpop.f32.mrb[145].mxu1  ;;  %7197 = vrot.lane.b32.xlu1 %v7179_v58, %s11500_s12  ;;  %s11516_s12 = sld [smem:[#allocation47_spill]] }
0x1efb   : > { %v7182_v62 = vpop.f32.mrb[146].mxu1 }
0x1efc   : > { %v8873_v49 = vpop.f32.mrb[147].mxu1 }
0x1f00   : > { %v9187_v36 = vld [vmem:[%s11516_s12] sm:$0xff]   ;;  %v9188_v51 = vld [vmem:[%s11516_s12 + $0x8] sm:$0xff]   ;;  %s7539_s12 = sshll.u32 %s10346_s18, 4  ;;  %s11252_s12 = int_to_ptr.vmem [resolvable:$true] %s7539_s12 }
0x1f01   : > { %8883 = vmatpush3.bf16.msra.mxu1 %v9187_v36 }
0x1f02   : > { %8884 = vmatprep.subr.bf16.mxu1 %v9610_v5 }
0x1f05   : > { %8885 = vmatpush3.bf16.msra.mxu1 %v9188_v51 }
0x1f64   : > { %v7188_v12 = vpop.permute.xlu1 %7187 }
0x1f65   : > { %7190 = vst.msk [vmem:[#allocation2] sm:$0xff] %vm3346_vm7, %v7188_v12 }
0x1f68   : > { %v7193_v6 = vpop.permute.xlu0 %7192 }
0x1f69   : > { %7195 = vst.msk [vmem:[#allocation2] sm:$0xff] %vm3352_vm8, %v7193_v6 }
0x1f6c   : > { %v7198_v11 = vpop.permute.xlu1 %7197 }
0x1f6d   : > { %7200 = vst.msk [vmem:[#allocation2] sm:$0xff] %vm3358_vm9, %v7198_v11 }
0x1f74   : > { %v7201_v52 = vld [vmem:[#allocation2] sm:$0xff] }
0x1f75   : > { %v7202_v39 = vpack.c.bf16 %v7201_v52, %v7201_v52 }
0x1f77   : > { %8879 = vmatmul.mubr.msk.bf16.vlgmr.msra.gmra.mrb[132].mxu0 %vm1224_vm0, %v7202_v39 }
0x1f78   : > { %8898 = vmatprep.mubr.msk.bf16.mxu0 %vm9611_vm1, %v9610_v5  ;;  %8891 = vmatpush3.bf16.msra.mxu0 %v9189_v9 }
0x1f79   : > { %8892 = vmatprep.subr.bf16.mxu0 %v9610_v5 }
0x1f7c   : > { %8893 = vmatpush3.bf16.msra.mxu0 %v9190_v1 }
0x1f7d   : > { %8894 = vmatprep.subr.bf16.mxu0 %v9610_v5 }
0x1f80   : > { %8895 = vmatpush3.bf16.msra.mxu0 %v9191_v33 }
0x1f81   : > { %8896 = vmatprep.subr.bf16.mxu0 %v9610_v5 }
0x1f84   : > { %8897 = vmatpush3.bf16.msra.mxu0 %v9192_v42 }
0x204a   : > { %v7256_v61 = vpop.f32.mrb[132].mxu0 }
0x204b   : > { %v7263_v30 = vmul.f32 %v7256_v61, %v7256_v61  ;;  %v8880_v60 = vpop.f32.mrb[133].mxu0 }
0x204c   : > { %v7259_v2 = vpop.f32.mrb[134].mxu0 }
0x204d   : > { %v8881_v10 = vpop.f32.mrb[135].mxu0  ;;  %v7264_v38 = vsel %vm1224_vm0, %v7263_v30, 0.0 }
0x204e   : > { %7265 = vadd.xlane.f32.xlu1 %v7264_v38 }
0x20db   : > { %v7266_v18 = vpop.xlane.xlu1 %7265 }
0x20dc   : > { %v7267_v48 = vmul.f32 0.03125, %v7266_v18 }
0x20de   : > { %v7268_v47 = vadd.f32 1e-06, %v7267_v48 }
0x20e0   : > { %9375 = vrsqrt.f32 %v7268_v47 }
0x20ea   : > { %v9376_v26 = vpop.eup %9375 }
0x20eb   : > { %v7270_v21 = vmul.f32 %v9376_v26, %v7256_v61 }
0x20ed   : > { %v7278_v46 = vmul.f32 %v7276_v53, %v7270_v21 }
0x20ef   : > { %v11189_v27 = vadd.f32 %v7278_v46, %v10703_v20  ;;  %v7280_v20 = vld [vmem:[%s11517_s10] sm:$0x1]  ;;  %s11221_s10 = scalar_lea.hbm %s11473_s27, %s11217_s5 }
0x20f0   : > { %v7289_v32 = vadd.f32 1.0, %v7280_v20 }
0x20f1   : > { %v7281_v8 = vmul.f32 %v11189_v27, %v11189_v27 }
0x20f2   : > { %v7294_v13 = vrot.slane %v7289_v32, %v9910_v16 }
0x20f3   : > { %v7282_v7 = vsel %vm1224_vm0, %v7281_v8, 0.0 }
0x20f4   : > { %7283 = vadd.xlane.f32.xlu0 %v7282_v7 }
0x2181   : > { %v7284_v56 = vpop.xlane.xlu0 %7283 }
0x2182   : > { %v7285_v28 = vmul.f32 0.03125, %v7284_v56 }
0x2184   : > { %v7286_v3 = vadd.f32 1e-06, %v7285_v28 }
0x2186   : > { %9377 = vrsqrt.f32 %v7286_v3 }
0x2190   : > { %v9378_v4 = vpop.eup %9377 }
0x2191   : > { %v7288_v35 = vmul.f32 %v9378_v4, %v11189_v27 }
0x2193   : > { %v7296_v34 = vmul.f32 %v7294_v13, %v7288_v35 }
0x2195   : > { %v7297_v59 = vpack.c.bf16 %v7296_v34, %v7296_v34 }
0x2197   : > { %8887 = vmatmul.mubr.msk.bf16.vlgmr.msra.gmra.mrb[148].mxu1 %vm1224_vm0, %v7297_v59 }
0x226a   : > { %v7351_v37 = vpop.f32.mrb[148].mxu1 }
0x226b   : > { %7367 = vrot.lane.b32.xlu0 %v7351_v37, %s11505_s14  ;;  %v8888_v19 = vpop.f32.mrb[149].mxu1  ;;  %v7357_v15 = vmul.f32 %v7351_v37, %v7351_v37  ;;  %s7471_s14 = sand.u32 1, %s9850_s0  }
0x226c   : > { %v7354_v23 = vpop.f32.mrb[150].mxu1  ;;  %s11230_s13 = scalar_lea.sflag [#allocation6], %s7471_s14 }
0x226d   : > { %v8889_v41 = vpop.f32.mrb[151].mxu1  ;;  %v7358_v0 = vmul.f32 %v7357_v15, %v7351_v37 }
0x226f   : > { %v7359_v50 = vmul.f32 0.044715, %v7358_v0 }
0x2271   : > { %v7360_v40 = vadd.f32 %v7359_v50, %v7351_v37 }
0x2273   : > { %v7361_v14 = vmul.f32 0.7978846, %v7360_v40 }
0x2275   : > { %9379 = vtanh.f32 %v7361_v14 }
0x227f   : > { %v9380_v45 = vpop.eup %9379 }
0x2280   : > { %v7363_v25 = vadd.f32 1.0, %v9380_v45 }
0x2282   : > { %v7364_v5 = vmul.f32 0.5, %v7363_v25 }
0x2284   : > { %v7365_v24 = vmul.f32 %v7364_v5, %v7351_v37 }
0x22dd   : > { %v7368_v44 = vpop.permute.xlu0 %7367 }
0x22de   : > { %v7370_v57 = vmul.f32 %v7368_v44, %v7365_v24 }
0x22e0   : > { %v7371_v17 = vpack.c.bf16 %v7370_v57, %v7370_v57 }
0x22e2   : > { %8899 = vmatmul.mubr.msk.bf16.vlgmr.msra.gmra.mrb[136].mxu0 %vm3563_vm10, %v7371_v17 }
0x23b5   : > { %v11210_v54 = vpop.f32.mrb[136].mxu0 }
0x23b6   : > { %v7448_v55 = vmul.f32 %v11210_v54, %v11210_v54  ;;  %v8900_v31 = vpop.f32.mrb[137].mxu0 }
0x23b7   : > { %v7444_v29 = vpop.f32.mrb[138].mxu0 }
0x23b8   : > { %v8901_v58 = vpop.f32.mrb[139].mxu0  ;;  %v7449_v63 = vsel %vm1224_vm0, %v7448_v55, 0.0 }
0x23b9   : > { %7450 = vadd.xlane.f32.xlu1 %v7449_v63 }
0x23ba   : > { %9400 = shalt.err (!%p9397_p3)
}
0x23bb   : > { %s9401_s7 = scalar_lea.hbm %s11221_s10, 128  ;;  %s9405_s19 = scalar_lea.hbm %s11473_s27, 256 }
0x23bc   : > { %p9402_p4 = scmp.ne.s32.totalorder %s11221_s10, %s9401_s7  ;;  %p9406_p9 = scmp.lt.u32.totalorder %s11221_s10, %s11473_s27 }
0x23bd   : > { %p9407_p10 = scmp.lt.u32.totalorder %s9405_s19, %s9401_s7  ;;  %p9409_p12 = scmp.lt.u32.totalorder %s9401_s7, %s11221_s10 }
0x23be   : > { %p9403_p7 = pnand %p9402_p4, %p9869_p5 }
0x23bf   : > { %p9408_p11 = por %p9407_p10, %p9406_p9 }
0x23c0   : > { %p9404_p8 = pneg %p9403_p7 }
0x23c1   : > { %p9410_p0 = por %p9409_p12, %p9408_p11 }
0x23c3   : > { %p9411_p13 = pnand %p9410_p0, %p9404_p8 }
0x23c5   : > { %9414 = shalt.err (!%p9411_p13)
}
0x23c6   : > { %9015 = dma.vmem_to_hbm [thread:$0]  (%p9869_p5), %s11225_s9, 128, %s11221_s10, %s11230_s13  }
0x23c7   : > { %s7555_s17 = sshll.u32 %s11146_s6, 4  ;;  %s7975_s21 = sshll.u32 %s9850_s0, 9  ;;  %s11288_s17 = int_to_ptr.vmem [resolvable:$true] %s7555_s17 }
0x23c8   : > { %s11259_s24 = scalar_lea.hbm %s11471_s30, %s7975_s21  ;;  %s11263_s7 = scalar_lea.sflag [#allocation9], %s7471_s14 }
0x23c9   : > { %s9415_s19 = scalar_lea.vmem %s11252_s12, 512  ;;  %s9619_s9 = smov [#allocation8]  }
0x23ca   : > { %p9416_p1 = scmp.ne.s32.totalorder %s11252_s12, %s9415_s19  ;;  %s9419_s18 = sshll.u32 %s9619_s9, 4  ;;  %s9420_s18 = int_to_ptr.vmem [resolvable:$false] %s9419_s18 }
0x23cb   : > { %s9421_s10 = scalar_lea.vmem %s9420_s18, 1024  ;;  %p9422_p4 = scmp.lt.s32.totalorder %s11252_s12, %s9420_s18 }
0x23cc   : > { %p9417_p2 = pnand %p9416_p1, %p9869_p5  ;;  %p9423_p7 = scmp.lt.s32.totalorder %s9421_s10, %s9415_s19 }
0x23ce   : > { %p9418_p3 = pneg %p9417_p2  ;;  %p9424_p8 = por %p9423_p7, %p9422_p4 }
0x23d0   : > { %p9425_p9 = pnand %p9424_p8, %p9418_p3 }
0x23d2   : > { %9428 = shalt.err (!%p9425_p9)
}
0x23d3   : > { %s9429_s14 = scalar_lea.hbm %s11259_s24, 512  ;;  %s9433_s9 = scalar_lea.hbm %s11471_s30, 1024 }
0x23d4   : > { %p9430_p10 = scmp.ne.s32.totalorder %s11259_s24, %s9429_s14  ;;  %p9434_p0 = scmp.lt.u32.totalorder %s11259_s24, %s11471_s30 }
0x23d5   : > { %p9435_p13 = scmp.lt.u32.totalorder %s9433_s9, %s9429_s14  ;;  %p9437_p2 = scmp.lt.u32.totalorder %s9429_s14, %s11259_s24 }
0x23d6   : > { %p9431_p11 = pnand %p9430_p10, %p9869_p5 }
0x23d7   : > { %p9436_p1 = por %p9435_p13, %p9434_p0 }
0x23d8   : > { %p9432_p12 = pneg %p9431_p11 }
0x23d9   : > { %p9438_p4 = por %p9437_p2, %p9436_p1 }
0x23db   : > { %p9439_p3 = pnand %p9438_p4, %p9432_p12 }
0x23dd   : > { %9442 = shalt.err (!%p9439_p3)
}
0x23de   : > { %s9620_s19 = smov 128   ;;  %s11520_s18 = sld [smem:[#allocation49_spill]] }
0x23df   : > { %9017 = dma.vmem_to_hbm [thread:$0]  (%p9869_p5), %s11252_s12, 512, %s11259_s24, %s11263_s7, %s9620_s19, %s9620_s19, %s11498_s8  }
0x23e0   : > { %s11521_s14 = scalar_lea.vmem [#allocation3], %s10420_s3  ;;  %s11299_s25 = scalar_lea.hbm %s9827_s20, %s7975_s21 }
0x23e1   : > { %s7500_s9 = sshll.u32 %s11521_s14, 4  ;;  %s7467_s27 = scalar_lea.sflag [#allocation4], %s10339_s1  ;;  %s7501_s9 = int_to_ptr.vmem [resolvable:$true] %s7500_s9 }
0x23e2   : > { %s9443_s29 = scalar_lea.vmem %s7501_s9, 128  ;;  %s9621_s30 = smov [#allocation3]  }
0x23e3   : > { %p9444_p7 = scmp.ne.s32.totalorder %s7501_s9, %s9443_s29  ;;  %s9447_s11 = sshll.u32 %s9621_s30, 4  ;;  %s9448_s11 = int_to_ptr.vmem [resolvable:$false] %s9447_s11 }
0x23e4   : > { %s11292_s10 = scalar_lea.hbm %s11520_s18, %s11217_s5  ;;  %s9449_s6 = scalar_lea.vmem %s9448_s11, 256 }
0x23e5   : > { %p9445_p8 = pnand %p9444_p7, %p9869_p5  ;;  %p9450_p10 = scmp.lt.s32.totalorder %s7501_s9, %s9448_s11 }
0x23e6   : > { %p9451_p11 = scmp.lt.s32.totalorder %s9449_s6, %s9443_s29 }
0x23e7   : > { %p9446_p9 = pneg %p9445_p8 }
0x23e8   : > { %p9452_p12 = por %p9451_p11, %p9450_p10 }
0x23ea   : > { %p9453_p0 = pnand %p9452_p12, %p9446_p9 }
0x23ec   : > { %9456 = shalt.err (!%p9453_p0)
}
0x23ed   : > { %s9457_s0 = scalar_lea.hbm %s11292_s10, 128  ;;  %s9461_s30 = scalar_lea.hbm %s11520_s18, 256 }
0x23ee   : > { %p9458_p13 = scmp.ne.s32.totalorder %s11292_s10, %s9457_s0  ;;  %p9462_p4 = scmp.lt.u32.totalorder %s11292_s10, %s11520_s18 }
0x23ef   : > { %p9463_p3 = scmp.lt.u32.totalorder %s9461_s30, %s9457_s0  ;;  %p9465_p8 = scmp.lt.u32.totalorder %s9457_s0, %s11292_s10 }
0x23f0   : > { %p9459_p1 = pnand %p9458_p13, %p9869_p5 }
0x23f1   : > { %p9464_p7 = por %p9463_p3, %p9462_p4 }
0x23f2   : > { %p9460_p2 = pneg %p9459_p1 }
0x23f3   : > { %p9466_p10 = por %p9465_p8, %p9464_p7 }
0x23f5   : > { %p9467_p9 = pnand %p9466_p10, %p9460_p2 }
0x23f7   : > { %9470 = shalt.err (!%p9467_p9)
}
0x23f8   : > { %9014 = dma.vmem_to_hbm [thread:$0]  (%p9869_p5), %s7501_s9, 128, %s11292_s10, %s7467_s27  }
0x23f9   : > { %s9471_s29 = scalar_lea.vmem %s11288_s17, 512  ;;  %s9622_s1 = smov [#allocation10]  }
0x23fa   : > { %p9472_p11 = scmp.ne.s32.totalorder %s11288_s17, %s9471_s29  ;;  %s9475_s11 = sshll.u32 %s9622_s1, 4  ;;  %s9476_s11 = int_to_ptr.vmem [resolvable:$false] %s9475_s11 }
0x23fb   : > { %s9477_s12 = scalar_lea.vmem %s9476_s11, 1024  ;;  %p9478_p13 = scmp.lt.s32.totalorder %s11288_s17, %s9476_s11 }
0x23fc   : > { %p9473_p12 = pnand %p9472_p11, %p9869_p5  ;;  %p9479_p1 = scmp.lt.s32.totalorder %s9477_s12, %s9471_s29 }
0x23fe   : > { %p9474_p0 = pneg %p9473_p12  ;;  %p9480_p2 = por %p9479_p1, %p9478_p13 }
0x2400   : > { %p9481_p4 = pnand %p9480_p2, %p9474_p0 }
0x2402   : > { %9484 = shalt.err (!%p9481_p4)
}
0x2403   : > { %s9485_s27 = scalar_lea.hbm %s11299_s25, 512  ;;  %s9489_s21 = scalar_lea.hbm %s9827_s20, 1024 }
0x2404   : > { %p9486_p3 = scmp.ne.s32.totalorder %s11299_s25, %s9485_s27  ;;  %p9490_p10 = scmp.lt.u32.totalorder %s11299_s25, %s9827_s20 }
0x2405   : > { %p9491_p9 = scmp.lt.u32.totalorder %s9489_s21, %s9485_s27  ;;  %p9493_p12 = scmp.lt.u32.totalorder %s9485_s27, %s11299_s25 }
0x2406   : > { %p9487_p7 = pnand %p9486_p3, %p9869_p5 }
0x2407   : > { %p9492_p11 = por %p9491_p9, %p9490_p10 }
0x2408   : > { %p9488_p8 = pneg %p9487_p7 }
0x2409   : > { %p9494_p13 = por %p9493_p12, %p9492_p11 }
0x240b   : > { %p9495_p0 = pnand %p9494_p13, %p9488_p8 }
0x240d   : > { %9498 = shalt.err (!%p9495_p0)
}
0x240e   : > { %s11522_s24 = sld [smem:[#allocation46_spill]]  ;;  %s1194_s10 = scalar_lea.vmem [#allocation7], %s10420_s3 }
0x240f   : > { %9018 = dma.vmem_to_hbm [thread:$0]  (%p9869_p5), %s11288_s17, 512, %s11299_s25, %s11263_s7, %s9620_s19, %s9620_s19, %s11498_s8  }
0x2410   : > { %s7526_s14 = sshll.u32 %s1194_s10, 4  ;;  %s11343_s9 = scalar_lea.hbm %s9817_s4, %s11217_s5  ;;  %s7527_s14 = int_to_ptr.vmem [resolvable:$true] %s7526_s14 }
0x2411   : > { %s9499_s25 = scalar_lea.vmem %s7527_s14, 128  ;;  %s9623_s8 = smov [#allocation7]  }
0x2412   : > { %p9500_p1 = scmp.ne.s32.totalorder %s7527_s14, %s9499_s25  ;;  %s9503_s17 = sshll.u32 %s9623_s8, 4  ;;  %s9504_s17 = int_to_ptr.vmem [resolvable:$false] %s9503_s17 }
0x2413   : > { %s9505_s7 = scalar_lea.vmem %s9504_s17, 256  ;;  %p9506_p3 = scmp.lt.s32.totalorder %s7527_s14, %s9504_s17 }
0x2414   : > { %v7447_v6 = vld [vmem:[%s11522_s24] sm:$0x1]  ;;  %p9501_p2 = pnand %p9500_p1, %p9869_p5  ;;  %p9507_p7 = scmp.lt.s32.totalorder %s9505_s7, %s9499_s25 }
0x2415   : > { %v7456_v11 = vadd.f32 1.0, %v7447_v6 }
0x2416   : > { %p9502_p4 = pneg %p9501_p2  ;;  %p9508_p8 = por %p9507_p7, %p9506_p3 }
0x2417   : > { %v7461_v52 = vrot.slane %v7456_v11, %v9910_v16 }
0x2418   : > { %p9509_p10 = pnand %p9508_p8, %p9502_p4 }
0x2446   : > { %v7451_v62 = vpop.xlane.xlu1 %7450 }
0x2447   : > { %v7452_v49 = vmul.f32 0.03125, %v7451_v62 }
0x2449   : > { %v7453_v12 = vadd.f32 1e-06, %v7452_v49 }
0x244b   : > { %9381 = vrsqrt.f32 %v7453_v12 }
0x2455   : > { %v9382_v39 = vpop.eup %9381 }
0x2456   : > { %v7455_v61 = vmul.f32 %v9382_v39, %v11210_v54 }
0x2458   : > { %v7463_v30 = vmul.f32 %v7461_v52, %v7455_v61 }
0x245a   : > { %v7464_v60 = vadd.f32 %v7463_v30, %v11189_v27 }
0x245c   : > { %7465 = vst.msk [vmem:[%s1194_s10] sm:$0xff] %vm1224_vm0, %v7464_v60 }
0x245d   : > { %9512 = shalt.err (!%p9509_p10)
}
0x245e   : > { %s9513_s3 = scalar_lea.hbm %s11343_s9, 128  ;;  %s9517_s5 = scalar_lea.hbm %s9817_s4, 256 }
0x245f   : > { %p9514_p9 = scmp.ne.s32.totalorder %s11343_s9, %s9513_s3  ;;  %p9518_p13 = scmp.lt.u32.totalorder %s11343_s9, %s9817_s4 }
0x2460   : > { %p9519_p0 = scmp.lt.u32.totalorder %s9517_s5, %s9513_s3  ;;  %p9521_p2 = scmp.lt.u32.totalorder %s9513_s3, %s11343_s9 }
0x2461   : > { %p9515_p11 = pnand %p9514_p9, %p9869_p5 }
0x2462   : > { %p9520_p1 = por %p9519_p0, %p9518_p13 }
0x2463   : > { %p9516_p12 = pneg %p9515_p11 }
0x2464   : > { %p9522_p3 = por %p9521_p2, %p9520_p1 }
0x2466   : > { %p9523_p4 = pnand %p9522_p3, %p9516_p12 }
0x2468   : > { %9526 = shalt.err (!%p9523_p4)
}
0x2469   : > { %9016 = dma.vmem_to_hbm [thread:$0]  (%p9869_p5), %s7527_s14, 128, %s11343_s9, %s11230_s13  }
0x246a PF: > { %p9040_p7 = scmp.ge.s32.totalorder %s9569_s28, 2  ;;  %s7570_s19 = sand.u32 1, %s9557_s22  }
0x246b   : > { %s7571_s6 = scalar_lea.sflag [#allocation4], %s7570_s19 }
0x246c   : > { %p9025_p8 = pnand %p9040_p7, %p9873_p6 }
0x246e   : > { %9544 = dma.done.wait (!%p9025_p8), %s7571_s6, 128  }
0x246f   : > { %9546 = vsyncadd (!%p9025_p8), %s7571_s6, 4294967168  ;;  %s11523_s0 = sadd.s32 4294967294, %s9569_s28  }
0x2470   : > { %s7579_s30 = sand.u32 1, %s11523_s0  }
0x2471   : > { %s7580_s29 = scalar_lea.sflag [#allocation6], %s7579_s30 }
0x2472   : > { %9548 = dma.done.wait (!%p9025_p8), %s7580_s29, 256  }
0x2473   : > { %9550 = vsyncadd (!%p9025_p8), %s7580_s29, 4294967040  ;;  %s7598_s15 = scalar_lea.sflag [#allocation9], %s7579_s30 }
0x2474   : > { %9552 = dma.done.wait (!%p9025_p8), %s7598_s15, 1024  }
0x2475   : > { %9554 = vsyncadd (!%p9025_p8), %s7598_s15, 4294966272  ;;  %s11524_s13 = sld [smem:[#allocation52_spill]]  ;;  %p96_p5 = scmp.ge.s32.totalorder %s9854_s2, 4  }
0x2476   : > { %s11525_s22 = smov %s9561_s23  ;;  %s11526_s23 = smov %s9565_s26 }
0x2477   : > { %s11528_s28 = smov %s9854_s2  ;;  %98 = sbr.rel (!%p96_p5) target bundleno = 100 (0x64), region = 298 }
0x247b   : > { %s11527_s26 = smov %s11524_s13 }
0x247e   :  { %7612 = vsyncpa [#allocation4], 1 }
0x247f   :  { %7614 = vsyncpa [#allocation4 + $0x1], 1 }
0x2480   :  { %7615 = vsyncpa [#allocation6], 1 }
0x2481   :  { %7617 = vsyncpa [#allocation6 + $0x1], 1 }
0x2482   :  { %7618 = vsyncpa [#allocation9], 1 }
0x2483   :  { %7620 = vsyncpa [#allocation9 + $0x1], 1 }

</bundles_post_ra>
